<compile_context>
chip_gen: v5e
topology: v5e:2x2
jax: 0.10.0
libtpu: 0.0.40
codegen_flags: <defaults>
</compile_context>

<pallas_src>
import jax
import jax.numpy as jnp
from jax import lax
from jax.experimental import pallas as pl
from jax.experimental.pallas import tpu as pltpu

_EPS = 1e-5
_VMEM_LIMIT = 32 * 1024 * 1024


def _cparams(n_grid_dims):
    return pltpu.CompilerParams(
        dimension_semantics=("parallel",) * n_grid_dims,
        vmem_limit_bytes=_VMEM_LIMIT,
    )


# ---------------------------------------------------------------------------
# Path A: flattened-batch matmul kernel (+ bias [+ LeakyReLU]) for conv0/conv3
# ---------------------------------------------------------------------------
def _make_mm_kernel(do_leaky: bool):
    def kernel(x_ref, w_ref, b_ref, o_ref):
        # x_ref: (TM, K) bf16 patches, w_ref: (K, Cp) bf16, b_ref: (1, Cp) f32
        y = jnp.dot(x_ref[...], w_ref[...], preferred_element_type=jnp.float32)
        y = y + b_ref[...]
        if do_leaky:
            y = jnp.where(y > 0, y, 0.2 * y)
        o_ref[...] = y.astype(o_ref.dtype)

    return kernel


def _pick_tile(m, cap=256, min_steps=4):
    """Row tile: <= cap, multiple of 8, prefer a divisor of m, aim >=min_steps steps."""
    t = min(cap, max(8, m))
    while t > 64 and m < min_steps * t:
        t //= 2
    t = max(8, (t // 8) * 8)
    for cand in range(t, 7, -8):
        if m % cand == 0:
            return cand
    return t  # non-divisor: pl.cdiv grid + partial tail block (rows independent)


def _im2col(x_nhwc):
    """k=4, s=2, p=1 patches; K-order = (kh, kw, cin). Returns (N, OH, OW, 16*C)."""
    N, H, W, C = x_nhwc.shape
    OH, OW = H // 2, W // 2
    xp = jnp.pad(x_nhwc, ((0, 0), (1, 1), (1, 1), (0, 0)))
    taps = []
    for kh in range(4):
        for kw in range(4):
            taps.append(xp[:, kh:kh + 2 * OH:2, kw:kw + 2 * OW:2, :])
    patches = jnp.stack(taps, axis=3)                       # (N, OH, OW, 16, C)
    return patches.reshape(N, OH, OW, 16 * C)


def _conv_plain(x_nhwc, w, b, *, do_leaky, out_dtype, pad_cout_to=None):
    """Conv2d(4,2,1) + bias [+ LeakyReLU(0.2)], no norm. Batch flattened into M."""
    N, H, W, Cin = x_nhwc.shape
    Cout = w.shape[0]
    OH, OW = H // 2, W // 2
    M = N * OH * OW
    K = 16 * Cin

    # NOTE: no HBM-side zero padding of the contraction dim (K=48 stays 48).
    patches = _im2col(x_nhwc).reshape(M, K).astype(jnp.bfloat16)
    # Reorder the (small) weight instead of transposing the big patch tensor.
    wmat = jnp.transpose(w, (2, 3, 1, 0)).reshape(K, Cout)   # (kh,kw,cin) x cout
    bvec = b.reshape(1, Cout).astype(jnp.float32)

    # Optionally pad Cout for lane-dense stores (final layer: 1 -> 128).
    Cp = Cout if pad_cout_to is None else max(Cout, pad_cout_to)
    if Cp != Cout:
        wmat = jnp.pad(wmat, ((0, 0), (0, Cp - Cout)))
        bvec = jnp.pad(bvec, ((0, 0), (0, Cp - Cout)))
    wmat = wmat.astype(jnp.bfloat16)

    TM = _pick_tile(M)
    out = pl.pallas_call(
        _make_mm_kernel(do_leaky),
        out_shape=jax.ShapeDtypeStruct((M, Cp), out_dtype),
        grid=(pl.cdiv(M, TM),),
        in_specs=[
            pl.BlockSpec((TM, K), lambda m: (m, 0)),
            pl.BlockSpec((K, Cp), lambda m: (0, 0)),
            pl.BlockSpec((1, Cp), lambda m: (0, 0)),
        ],
        out_specs=pl.BlockSpec((TM, Cp), lambda m: (m, 0)),
        compiler_params=_cparams(1),
    )(patches, wmat, bvec)

    if Cp != Cout:
        out = out[:, :Cout]        # fuses into the following reshape/transpose
    return out.reshape(N, OH, OW, Cout)


# ---------------------------------------------------------------------------
# Path B: fused conv (4 shifted matmuls, K=4*Cin) + InstanceNorm + LeakyReLU
# ---------------------------------------------------------------------------
def _make_conv_in_lrelu_kernel(OH: int, OW: int, PW: int, eps: float = _EPS):
    M = OH * PW                        # output rows incl. 2 garbage cols per row
    inv_n = 1.0 / float(OH * OW)

    def kernel(x_ref, w_ref, o_ref):
        # x_ref: (Lp, 4*Cin) bf16 parity-concat planes of one sample
        # w_ref: (4, 4*Cin, Ct) bf16, first axis = shift (dh, dw)
        # o_ref: (M, Ct)
        acc = jnp.dot(x_ref[pl.ds(0, M), :], w_ref[0],
                      preferred_element_type=jnp.float32)
        for shift in range(1, 4):
            dh, dw = divmod(shift, 2)
            s = dh * PW + dw                                   # static offset
            acc = acc + jnp.dot(x_ref[pl.ds(s, M), :], w_ref[shift],
                                preferred_element_type=jnp.float32)

        # In-kernel validity mask for the 2 garbage columns per output row.
        col = lax.broadcasted_iota(jnp.int32, (M, 1), 0) % PW
        mask = (col < OW).astype(jnp.float32)

        # One-pass InstanceNorm (biased variance) over valid positions, f32.
        yv = acc * mask
        s1 = jnp.sum(yv, axis=0, keepdims=True)                # (1, Ct)
        s2 = jnp.sum(yv * yv, axis=0, keepdims=True)
        mean = s1 * inv_n
        var = jnp.maximum(s2 * inv_n - mean * mean, 0.0)
        y = (acc - mean) * lax.rsqrt(var + eps)
        y = jnp.where(y > 0, y, 0.2 * y)                       # LeakyReLU(0.2)
        # Zero the garbage columns so the output can be consumed still-padded.
        o_ref[...] = (y * mask).astype(o_ref.dtype)

    return kernel


def _conv_in_lrelu(x_nhwc, w, *, input_has_pad_cols=False, keep_pad_cols=False,
                   out_dtype=jnp.bfloat16):
    """Conv2d(4,2,1,bias=False) + InstanceNorm2d + LeakyReLU(0.2), fully fused."""
    N, H, Wd, Cin = x_nhwc.shape
    if input_has_pad_cols:
        Wd = Wd - 2                    # trailing 2 width cols are already zeros
    Cout = w.shape[0]
    OH, OW = H // 2, Wd // 2
    PH, PW = OH + 2, OW + 2            # parity-plane extents (incl. zero padding)
    Lp = PH * PW
    Kc = 4 * Cin
    M = OH * PW

    # Pad to (H+4, Wd+4) = ((1,3),(1,3)); if the input already carries 2
    # trailing zero cols, only ((1,3),(1,1)) is needed.
    wpad = (1, 1) if input_has_pad_cols else (1, 3)
    xp = jnp.pad(x_nhwc, ((0, 0), (1, 3), wpad, (0, 0)))
    # Space-to-depth: concatenate the 4 row/col parity planes along channels.
    xs = xp.reshape(N, PH, 2, PW, 2, Cin)
    xs = jnp.transpose(xs, (0, 1, 3, 2, 4, 5)).reshape(N, Lp, Kc)
    xs = xs.astype(jnp.bfloat16)

    # weight (Cout, Cin, 4, 4) -> [shift=(dh,dw), (p,q,cin), Cout]
    wt = jnp.transpose(w, (2, 3, 1, 0)).reshape(2, 2, 2, 2, Cin, Cout)  # dh,p,dw,q
    wt = jnp.transpose(wt, (0, 2, 1, 3, 4, 5)).reshape(4, Kc, Cout)
    wt = wt.astype(jnp.bfloat16)

    Ct = min(Cout, 128)                # per-channel stats -> exact Cout tiling
    n_ct = Cout // Ct

    out = pl.pallas_call(
        _make_conv_in_lrelu_kernel(OH, OW, PW),
        out_shape=jax.ShapeDtypeStruct((N, M, Cout), out_dtype),
        grid=(N, n_ct),
        in_specs=[
            pl.BlockSpec((None, Lp, Kc), lambda n, c: (n, 0, 0)),
            pl.BlockSpec((4, Kc, Ct), lambda n, c: (0, 0, c)),
        ],
        out_specs=pl.BlockSpec((None, M, Ct), lambda n, c: (n, 0, c)),
        compiler_params=_cparams(2),
    )(xs, wt)

    out = out.reshape(N, OH, PW, Cout)
    if keep_pad_cols:
        return out                     # trailing 2 width columns are zeros
    return out[:, :, :OW, :]


# ---------------------------------------------------------------------------
# Discriminator (parameters initialized deterministically in-script)
# ---------------------------------------------------------------------------
class Discriminator:
    def __init__(self, input_channel_size: int, key=None):
        if key is None:
            key = jax.random.PRNGKey(42)
        k = jax.random.split(key, 6)
        std = 0.02  # deterministic synthetic weights

        # Conv2d(in, 64, 4, 2, 1) with bias
        self.w0 = std * jax.random.normal(k[0], (64, input_channel_size, 4, 4), jnp.float32)
        self.b0 = std * jax.random.normal(k[1], (64,), jnp.float32)
        # Conv2d(64, 128, 4, 2, 1, bias=False) + InstanceNorm + LeakyReLU
        self.w1 = std * jax.random.normal(k[2], (128, 64, 4, 4), jnp.float32)
        # Conv2d(128, 256, 4, 2, 1, bias=False) + InstanceNorm + LeakyReLU
        self.w2 = std * jax.random.normal(k[3], (256, 128, 4, 4), jnp.float32)
        # Conv2d(256, 1, 4, 2, 1) with bias
        self.w3 = std * jax.random.normal(k[4], (1, 256, 4, 4), jnp.float32)
        self.b3 = std * jax.random.normal(k[5], (1,), jnp.float32)

    def __call__(self, x_nchw):
        # NCHW (PyTorch layout) -> NHWC internally.
        x = jnp.transpose(x_nchw, (0, 2, 3, 1)).astype(jnp.float32)
        # conv0 + LeakyReLU (bias, no norm); stores bf16 activations
        x = _conv_plain(x, self.w0, self.b0, do_leaky=True, out_dtype=jnp.bfloat16)
        # conv1: fused conv + InstanceNorm + LeakyReLU; keep padded layout so
        # conv2 consumes it without a slice + full re-pad round trip.
        x = _conv_in_lrelu(x, self.w1, keep_pad_cols=True)
        # conv2: same fused kernel, consuming the already-right-padded layout.
        x = _conv_in_lrelu(x, self.w2, input_has_pad_cols=True, keep_pad_cols=False)
        # conv3 (bias, no norm, no activation); Cout padded to 128 lanes in-kernel,
        # sliced back as part of the final reshape/transpose.
        x = _conv_plain(x, self.w3, self.b3, do_leaky=False,
                        out_dtype=jnp.float32, pad_cout_to=128)
        # back to NCHW
        return jnp.transpose(x, (0, 3, 1, 2))


if __name__ == "__main__":
    input_channel_size = 3
    disc = Discriminator(input_channel_size)

    key = jax.random.PRNGKey(0)
    # small NCHW input consistent with the module: (batch, 3, 32, 32)
    x = jax.random.normal(key, (2, input_channel_size, 32, 32), jnp.float32)

    fwd = jax.jit(disc.__call__)
    out = fwd(x)
    jax.block_until_ready(out)

    assert out.shape == (2, 1, 2, 2), out.shape
    assert out.dtype == jnp.float32
    assert bool(jnp.all(jnp.isfinite(out)))
    print("KERNEL_OK")
</pallas_src>

<mosaic_0001>
module attributes {stable_mosaic.version = 11 : i64} {
  func.func @kernel(%arg0: i32, %arg1: memref<128x48xbf16, #tpu.memory_space<vmem>>, %arg2: memref<48x64xbf16, #tpu.memory_space<vmem>>, %arg3: memref<1x64xf32, #tpu.memory_space<vmem>>, %arg4: memref<128x64xbf16, #tpu.memory_space<vmem>>) attributes {dimension_semantics = [#tpu.dimension_semantics<parallel>], iteration_bounds = array<i64: 4>, scalar_prefetch = 0 : i64, scratch_operands = 0 : i64, tpu.core_type = #tpu.core_type<tc>, window_params = [{transform_indices = @transform_0, window_bounds = array<i64: 128, 48>}, {pipeline_mode = #tpu.pipeline_mode<synchronous>, transform_indices = @transform_1, window_bounds = array<i64: 48, 64>}, {pipeline_mode = #tpu.pipeline_mode<synchronous>, transform_indices = @transform_2, window_bounds = array<i64: 1, 64>}, {transform_indices = @transform_3, window_bounds = array<i64: 128, 64>}]} {
    %c0 = arith.constant 0 : index
    %c0_0 = arith.constant 0 : index
    %0 = vector.load %arg1[%c0, %c0_0] : memref<128x48xbf16, #tpu.memory_space<vmem>>, vector<128x48xbf16>
    %c0_1 = arith.constant 0 : index
    %c0_2 = arith.constant 0 : index
    %1 = vector.load %arg2[%c0_1, %c0_2] : memref<48x64xbf16, #tpu.memory_space<vmem>>, vector<48x64xbf16>
    %cst = arith.constant dense<0.000000e+00> : vector<128x64xf32>
    %2 = tpu.matmul %0, %1, %cst {dimension_numbers = #tpu.dot_dimension_numbers<[1], [0], [0], [1], [0, 0, 1, 1], [], []>} : vector<128x48xbf16>, vector<48x64xbf16>, vector<128x64xf32> -> vector<128x64xf32>
    %c0_3 = arith.constant 0 : index
    %c0_4 = arith.constant 0 : index
    %3 = vector.load %arg3[%c0_3, %c0_4] : memref<1x64xf32, #tpu.memory_space<vmem>>, vector<1x64xf32>
    %4 = vector.broadcast %3 : vector<1x64xf32> to vector<128x64xf32>
    %5 = arith.addf %2, %4 : vector<128x64xf32>
    %cst_5 = arith.constant 0.000000e+00 : f32
    %6 = vector.broadcast %cst_5 : f32 to vector<128x64xf32>
    %7 = arith.cmpf ogt, %5, %6 : vector<128x64xf32>
    %cst_6 = arith.constant 2.000000e-01 : f32
    %8 = vector.broadcast %cst_6 : f32 to vector<128x64xf32>
    %9 = arith.mulf %8, %5 : vector<128x64xf32>
    %10 = arith.select %7, %5, %9 : vector<128x64xi1>, vector<128x64xf32>
    %11 = arith.truncf %10 : vector<128x64xf32> to vector<128x64xbf16>
    %c0_7 = arith.constant 0 : index
    %c0_8 = arith.constant 0 : index
    %12 = vector.load %arg4[%c0_7, %c0_8] : memref<128x64xbf16, #tpu.memory_space<vmem>>, vector<128x64xbf16>
    tpu.vector_store %arg4[%c0_7, %c0_8], %11 {strides = array<i32>} : memref<128x64xbf16, #tpu.memory_space<vmem>>, vector<128x64xbf16>,
    return
  }
  func.func @transform_0(%arg0: i32) -> (i32, i32) {
    %c0_i32 = arith.constant 0 : i32
    %c0_i32_0 = arith.constant 0 : i32
    return %arg0, %c0_i32 : i32, i32
  }
  func.func @transform_1(%arg0: i32) -> (i32, i32) {
    %c0_i32 = arith.constant 0 : i32
    %c0_i32_0 = arith.constant 0 : i32
    %c0_i32_1 = arith.constant 0 : i32
    return %c0_i32, %c0_i32_0 : i32, i32
  }
  func.func @transform_2(%arg0: i32) -> (i32, i32) {
    %c0_i32 = arith.constant 0 : i32
    %c0_i32_0 = arith.constant 0 : i32
    %c0_i32_1 = arith.constant 0 : i32
    return %c0_i32, %c0_i32_0 : i32, i32
  }
  func.func @transform_3(%arg0: i32) -> (i32, i32) {
    %c0_i32 = arith.constant 0 : i32
    %c0_i32_0 = arith.constant 0 : i32
    return %arg0, %c0_i32 : i32, i32
  }
}

module attributes {stable_mosaic.version = 11 : i64} {
  func.func @kernel(%arg0: i32, %arg1: i32, %arg2: memref<1x100x256xbf16, #tpu.memory_space<vmem>>, %arg3: memref<4x256x128xbf16, #tpu.memory_space<vmem>>, %arg4: memref<1x80x128xbf16, #tpu.memory_space<vmem>>) attributes {dimension_semantics = [#tpu.dimension_semantics<parallel>, #tpu.dimension_semantics<parallel>], iteration_bounds = array<i64: 2, 1>, scalar_prefetch = 0 : i64, scratch_operands = 0 : i64, tpu.core_type = #tpu.core_type<tc>, window_params = [{transform_indices = @transform_0, window_bounds = array<i64: 1, 100, 256>}, {transform_indices = @transform_1, window_bounds = array<i64: 4, 256, 128>}, {transform_indices = @transform_2, window_bounds = array<i64: 1, 80, 128>}]} {
    %c0 = arith.constant 0 : index
    %c0_0 = arith.constant 0 : index
    %c0_1 = arith.constant 0 : index
    %0 = vector.load %arg2[%c0, %c0_0, %c0_1] : memref<1x100x256xbf16, #tpu.memory_space<vmem>>, vector<1x80x256xbf16>
    %1 = vector.shape_cast %0 : vector<1x80x256xbf16> to vector<80x256xbf16>
    %c0_2 = arith.constant 0 : index
    %c0_3 = arith.constant 0 : index
    %c0_4 = arith.constant 0 : index
    %2 = vector.load %arg3[%c0_2, %c0_3, %c0_4] : memref<4x256x128xbf16, #tpu.memory_space<vmem>>, vector<1x256x128xbf16>
    %3 = vector.shape_cast %2 : vector<1x256x128xbf16> to vector<256x128xbf16>
    %cst = arith.constant dense<0.000000e+00> : vector<80x128xf32>
    %4 = tpu.matmul %1, %3, %cst {dimension_numbers = #tpu.dot_dimension_numbers<[1], [0], [0], [1], [0, 0, 1, 1], [], []>} : vector<80x256xbf16>, vector<256x128xbf16>, vector<80x128xf32> -> vector<80x128xf32>
    %c0_5 = arith.constant 0 : index
    %c1 = arith.constant 1 : index
    %c0_6 = arith.constant 0 : index
    %5 = vector.load %arg2[%c0_5, %c1, %c0_6] : memref<1x100x256xbf16, #tpu.memory_space<vmem>>, vector<1x80x256xbf16>
    %6 = vector.shape_cast %5 : vector<1x80x256xbf16> to vector<80x256xbf16>
    %c1_7 = arith.constant 1 : index
    %c0_8 = arith.constant 0 : index
    %c0_9 = arith.constant 0 : index
    %7 = vector.load %arg3[%c1_7, %c0_8, %c0_9] : memref<4x256x128xbf16, #tpu.memory_space<vmem>>, vector<1x256x128xbf16>
    %8 = vector.shape_cast %7 : vector<1x256x128xbf16> to vector<256x128xbf16>
    %cst_10 = arith.constant dense<0.000000e+00> : vector<80x128xf32>
    %9 = tpu.matmul %6, %8, %cst_10 {dimension_numbers = #tpu.dot_dimension_numbers<[1], [0], [0], [1], [0, 0, 1, 1], [], []>} : vector<80x256xbf16>, vector<256x128xbf16>, vector<80x128xf32> -> vector<80x128xf32>
    %10 = arith.addf %4, %9 : vector<80x128xf32>
    %c0_11 = arith.constant 0 : index
    %c10 = arith.constant 10 : index
    %c0_12 = arith.constant 0 : index
    %11 = vector.load %arg2[%c0_11, %c10, %c0_12] : memref<1x100x256xbf16, #tpu.memory_space<vmem>>, vector<1x80x256xbf16>
    %12 = vector.shape_cast %11 : vector<1x80x256xbf16> to vector<80x256xbf16>
    %c2 = arith.constant 2 : index
    %c0_13 = arith.constant 0 : index
    %c0_14 = arith.constant 0 : index
    %13 = vector.load %arg3[%c2, %c0_13, %c0_14] : memref<4x256x128xbf16, #tpu.memory_space<vmem>>, vector<1x256x128xbf16>
    %14 = vector.shape_cast %13 : vector<1x256x128xbf16> to vector<256x128xbf16>
    %cst_15 = arith.constant dense<0.000000e+00> : vector<80x128xf32>
    %15 = tpu.matmul %12, %14, %cst_15 {dimension_numbers = #tpu.dot_dimension_numbers<[1], [0], [0], [1], [0, 0, 1, 1], [], []>} : vector<80x256xbf16>, vector<256x128xbf16>, vector<80x128xf32> -> vector<80x128xf32>
    %16 = arith.addf %10, %15 : vector<80x128xf32>
    %c0_16 = arith.constant 0 : index
    %c11 = arith.constant 11 : index
    %c0_17 = arith.constant 0 : index
    %17 = vector.load %arg2[%c0_16, %c11, %c0_17] : memref<1x100x256xbf16, #tpu.memory_space<vmem>>, vector<1x80x256xbf16>
    %18 = vector.shape_cast %17 : vector<1x80x256xbf16> to vector<80x256xbf16>
    %c3 = arith.constant 3 : index
    %c0_18 = arith.constant 0 : index
    %c0_19 = arith.constant 0 : index
    %19 = vector.load %arg3[%c3, %c0_18, %c0_19] : memref<4x256x128xbf16, #tpu.memory_space<vmem>>, vector<1x256x128xbf16>
    %20 = vector.shape_cast %19 : vector<1x256x128xbf16> to vector<256x128xbf16>
    %cst_20 = arith.constant dense<0.000000e+00> : vector<80x128xf32>
    %21 = tpu.matmul %18, %20, %cst_20 {dimension_numbers = #tpu.dot_dimension_numbers<[1], [0], [0], [1], [0, 0, 1, 1], [], []>} : vector<80x256xbf16>, vector<256x128xbf16>, vector<80x128xf32> -> vector<80x128xf32>
    %22 = arith.addf %16, %21 : vector<80x128xf32>
    %23 = tpu.iota {dimensions = array<i32: 0>} : vector<80x1xi32>
    %c10_i32 = arith.constant 10 : i32
    %c0_i32 = arith.constant 0 : i32
    %24 = arith.cmpi eq, %c10_i32, %c0_i32 : i32
    %c1_i32 = arith.constant 1 : i32
    %25 = arith.select %24, %c1_i32, %c10_i32 : i32
    %26 = vector.broadcast %25 : i32 to vector<80x1xi32>
    %27 = arith.remsi %23, %26 : vector<80x1xi32>
    %c0_i32_21 = arith.constant 0 : i32
    %28 = vector.broadcast %c0_i32_21 : i32 to vector<80x1xi32>
    %29 = arith.cmpi ne, %27, %28 : vector<80x1xi32>
    %c0_i32_22 = arith.constant 0 : i32
    %30 = vector.broadcast %c0_i32_22 : i32 to vector<80x1xi32>
    %31 = arith.cmpi slt, %27, %30 : vector<80x1xi32>
    %c0_i32_23 = arith.constant 0 : i32
    %32 = arith.cmpi slt, %25, %c0_i32_23 : i32
    %33 = vector.broadcast %32 : i1 to vector<80x1xi1>
    %34 = vector.broadcast %33 : vector<80x1xi1> to vector<80x1xi1>
    %35 = arith.xori %31, %34 : vector<80x1xi1>
    %36 = arith.andi %35, %29 : vector<80x1xi1>
    %37 = vector.broadcast %25 : i32 to vector<80x1xi32>
    %38 = arith.addi %27, %37 : vector<80x1xi32>
    %39 = arith.select %36, %38, %27 : vector<80x1xi1>, vector<80x1xi32>
    %c8_i32 = arith.constant 8 : i32
    %40 = vector.broadcast %c8_i32 : i32 to vector<80x1xi32>
    %41 = arith.cmpi slt, %39, %40 : vector<80x1xi32>
    %42 = arith.extui %41 : vector<80x1xi1> to vector<80x1xi32>
    %43 = arith.sitofp %42 : vector<80x1xi32> to vector<80x1xf32>
    %44 = vector.broadcast %43 : vector<80x1xf32> to vector<80x128xf32>
    %45 = arith.mulf %22, %44 : vector<80x128xf32>
    %cst_24 = arith.constant dense<0.000000e+00> : vector<128xf32>
    %46 = vector.multi_reduction <add>, %45, %cst_24 [0] : vector<80x128xf32> to vector<128xf32>
    %47 = vector.shape_cast %46 : vector<128xf32> to vector<1x128xf32>
    %48 = arith.mulf %45, %45 : vector<80x128xf32>
    %cst_25 = arith.constant dense<0.000000e+00> : vector<128xf32>
    %49 = vector.multi_reduction <add>, %48, %cst_25 [0] : vector<80x128xf32> to vector<128xf32>
    %50 = vector.shape_cast %49 : vector<128xf32> to vector<1x128xf32>
    %cst_26 = arith.constant 1.562500e-02 : f32
    %51 = vector.broadcast %cst_26 : f32 to vector<1x128xf32>
    %52 = arith.mulf %47, %51 : vector<1x128xf32>
    %cst_27 = arith.constant 1.562500e-02 : f32
    %53 = vector.broadcast %cst_27 : f32 to vector<1x128xf32>
    %54 = arith.mulf %50, %53 : vector<1x128xf32>
    %55 = arith.mulf %52, %52 : vector<1x128xf32>
    %56 = arith.subf %54, %55 : vector<1x128xf32>
    %cst_28 = arith.constant 0.000000e+00 : f32
    %57 = vector.broadcast %cst_28 : f32 to vector<1x128xf32>
    %58 = arith.maximumf %56, %57 : vector<1x128xf32>
    %59 = vector.broadcast %52 : vector<1x128xf32> to vector<80x128xf32>
    %60 = arith.subf %22, %59 : vector<80x128xf32>
    %cst_29 = arith.constant 9.99999974E-6 : f32
    %61 = vector.broadcast %cst_29 : f32 to vector<1x128xf32>
    %62 = arith.addf %58, %61 : vector<1x128xf32>
    %63 = math.rsqrt %62 : vector<1x128xf32>
    %64 = vector.broadcast %63 : vector<1x128xf32> to vector<80x128xf32>
    %65 = arith.mulf %60, %64 : vector<80x128xf32>
    %cst_30 = arith.constant 0.000000e+00 : f32
    %66 = vector.broadcast %cst_30 : f32 to vector<80x128xf32>
    %67 = arith.cmpf ogt, %65, %66 : vector<80x128xf32>
    %cst_31 = arith.constant 2.000000e-01 : f32
    %68 = vector.broadcast %cst_31 : f32 to vector<80x128xf32>
    %69 = arith.mulf %68, %65 : vector<80x128xf32>
    %70 = arith.select %67, %65, %69 : vector<80x128xi1>, vector<80x128xf32>
    %71 = vector.broadcast %43 : vector<80x1xf32> to vector<80x128xf32>
    %72 = arith.mulf %70, %71 : vector<80x128xf32>
    %73 = arith.truncf %72 : vector<80x128xf32> to vector<80x128xbf16>
    %c0_32 = arith.constant 0 : index
    %c0_33 = arith.constant 0 : index
    %c0_34 = arith.constant 0 : index
    %74 = vector.load %arg4[%c0_32, %c0_33, %c0_34] : memref<1x80x128xbf16, #tpu.memory_space<vmem>>, vector<1x80x128xbf16>
    %75 = vector.shape_cast %74 : vector<1x80x128xbf16> to vector<80x128xbf16>
    %76 = vector.shape_cast %73 : vector<80x128xbf16> to vector<1x80x128xbf16>
    tpu.vector_store %arg4[%c0_32, %c0_33, %c0_34], %76 {strides = array<i32>} : memref<1x80x128xbf16, #tpu.memory_space<vmem>>, vector<1x80x128xbf16>,
    return
  }
  func.func @transform_0(%arg0: i32, %arg1: i32) -> (i32, i32, i32) {
    %c0_i32 = arith.constant 0 : i32
    %c0_i32_0 = arith.constant 0 : i32
    %c0_i32_1 = arith.constant 0 : i32
    return %arg0, %c0_i32, %c0_i32_0 : i32, i32, i32
  }
  func.func @transform_1(%arg0: i32, %arg1: i32) -> (i32, i32, i32) {
    %c0_i32 = arith.constant 0 : i32
    %c0_i32_0 = arith.constant 0 : i32
    %c0_i32_1 = arith.constant 0 : i32
    return %c0_i32, %c0_i32_0, %arg1 : i32, i32, i32
  }
  func.func @transform_2(%arg0: i32, %arg1: i32) -> (i32, i32, i32) {
    %c0_i32 = arith.constant 0 : i32
    %c0_i32_0 = arith.constant 0 : i32
    return %arg0, %c0_i32, %arg1 : i32, i32, i32
  }
}

module attributes {stable_mosaic.version = 11 : i64} {
  func.func @kernel(%arg0: i32, %arg1: i32, %arg2: memref<1x36x512xbf16, #tpu.memory_space<vmem>>, %arg3: memref<4x512x128xbf16, #tpu.memory_space<vmem>>, %arg4: memref<1x24x128xbf16, #tpu.memory_space<vmem>>) attributes {dimension_semantics = [#tpu.dimension_semantics<parallel>, #tpu.dimension_semantics<parallel>], iteration_bounds = array<i64: 2, 2>, scalar_prefetch = 0 : i64, scratch_operands = 0 : i64, tpu.core_type = #tpu.core_type<tc>, window_params = [{transform_indices = @transform_0, window_bounds = array<i64: 1, 36, 512>}, {transform_indices = @transform_1, window_bounds = array<i64: 4, 512, 128>}, {transform_indices = @transform_2, window_bounds = array<i64: 1, 24, 128>}]} {
    %c0 = arith.constant 0 : index
    %c0_0 = arith.constant 0 : index
    %c0_1 = arith.constant 0 : index
    %0 = vector.load %arg2[%c0, %c0_0, %c0_1] : memref<1x36x512xbf16, #tpu.memory_space<vmem>>, vector<1x24x512xbf16>
    %1 = vector.shape_cast %0 : vector<1x24x512xbf16> to vector<24x512xbf16>
    %c0_2 = arith.constant 0 : index
    %c0_3 = arith.constant 0 : index
    %c0_4 = arith.constant 0 : index
    %2 = vector.load %arg3[%c0_2, %c0_3, %c0_4] : memref<4x512x128xbf16, #tpu.memory_space<vmem>>, vector<1x512x128xbf16>
    %3 = vector.shape_cast %2 : vector<1x512x128xbf16> to vector<512x128xbf16>
    %cst = arith.constant dense<0.000000e+00> : vector<24x128xf32>
    %4 = tpu.matmul %1, %3, %cst {dimension_numbers = #tpu.dot_dimension_numbers<[1], [0], [0], [1], [0, 0, 1, 1], [], []>} : vector<24x512xbf16>, vector<512x128xbf16>, vector<24x128xf32> -> vector<24x128xf32>
    %c0_5 = arith.constant 0 : index
    %c1 = arith.constant 1 : index
    %c0_6 = arith.constant 0 : index
    %5 = vector.load %arg2[%c0_5, %c1, %c0_6] : memref<1x36x512xbf16, #tpu.memory_space<vmem>>, vector<1x24x512xbf16>
    %6 = vector.shape_cast %5 : vector<1x24x512xbf16> to vector<24x512xbf16>
    %c1_7 = arith.constant 1 : index
    %c0_8 = arith.constant 0 : index
    %c0_9 = arith.constant 0 : index
    %7 = vector.load %arg3[%c1_7, %c0_8, %c0_9] : memref<4x512x128xbf16, #tpu.memory_space<vmem>>, vector<1x512x128xbf16>
    %8 = vector.shape_cast %7 : vector<1x512x128xbf16> to vector<512x128xbf16>
    %cst_10 = arith.constant dense<0.000000e+00> : vector<24x128xf32>
    %9 = tpu.matmul %6, %8, %cst_10 {dimension_numbers = #tpu.dot_dimension_numbers<[1], [0], [0], [1], [0, 0, 1, 1], [], []>} : vector<24x512xbf16>, vector<512x128xbf16>, vector<24x128xf32> -> vector<24x128xf32>
    %10 = arith.addf %4, %9 : vector<24x128xf32>
    %c0_11 = arith.constant 0 : index
    %c6 = arith.constant 6 : index
    %c0_12 = arith.constant 0 : index
    %11 = vector.load %arg2[%c0_11, %c6, %c0_12] : memref<1x36x512xbf16, #tpu.memory_space<vmem>>, vector<1x24x512xbf16>
    %12 = vector.shape_cast %11 : vector<1x24x512xbf16> to vector<24x512xbf16>
    %c2 = arith.constant 2 : index
    %c0_13 = arith.constant 0 : index
    %c0_14 = arith.constant 0 : index
    %13 = vector.load %arg3[%c2, %c0_13, %c0_14] : memref<4x512x128xbf16, #tpu.memory_space<vmem>>, vector<1x512x128xbf16>
    %14 = vector.shape_cast %13 : vector<1x512x128xbf16> to vector<512x128xbf16>
    %cst_15 = arith.constant dense<0.000000e+00> : vector<24x128xf32>
    %15 = tpu.matmul %12, %14, %cst_15 {dimension_numbers = #tpu.dot_dimension_numbers<[1], [0], [0], [1], [0, 0, 1, 1], [], []>} : vector<24x512xbf16>, vector<512x128xbf16>, vector<24x128xf32> -> vector<24x128xf32>
    %16 = arith.addf %10, %15 : vector<24x128xf32>
    %c0_16 = arith.constant 0 : index
    %c7 = arith.constant 7 : index
    %c0_17 = arith.constant 0 : index
    %17 = vector.load %arg2[%c0_16, %c7, %c0_17] : memref<1x36x512xbf16, #tpu.memory_space<vmem>>, vector<1x24x512xbf16>
    %18 = vector.shape_cast %17 : vector<1x24x512xbf16> to vector<24x512xbf16>
    %c3 = arith.constant 3 : index
    %c0_18 = arith.constant 0 : index
    %c0_19 = arith.constant 0 : index
    %19 = vector.load %arg3[%c3, %c0_18, %c0_19] : memref<4x512x128xbf16, #tpu.memory_space<vmem>>, vector<1x512x128xbf16>
    %20 = vector.shape_cast %19 : vector<1x512x128xbf16> to vector<512x128xbf16>
    %cst_20 = arith.constant dense<0.000000e+00> : vector<24x128xf32>
    %21 = tpu.matmul %18, %20, %cst_20 {dimension_numbers = #tpu.dot_dimension_numbers<[1], [0], [0], [1], [0, 0, 1, 1], [], []>} : vector<24x512xbf16>, vector<512x128xbf16>, vector<24x128xf32> -> vector<24x128xf32>
    %22 = arith.addf %16, %21 : vector<24x128xf32>
    %23 = tpu.iota {dimensions = array<i32: 0>} : vector<24x1xi32>
    %c6_i32 = arith.constant 6 : i32
    %c0_i32 = arith.constant 0 : i32
    %24 = arith.cmpi eq, %c6_i32, %c0_i32 : i32
    %c1_i32 = arith.constant 1 : i32
    %25 = arith.select %24, %c1_i32, %c6_i32 : i32
    %26 = vector.broadcast %25 : i32 to vector<24x1xi32>
    %27 = arith.remsi %23, %26 : vector<24x1xi32>
    %c0_i32_21 = arith.constant 0 : i32
    %28 = vector.broadcast %c0_i32_21 : i32 to vector<24x1xi32>
    %29 = arith.cmpi ne, %27, %28 : vector<24x1xi32>
    %c0_i32_22 = arith.constant 0 : i32
    %30 = vector.broadcast %c0_i32_22 : i32 to vector<24x1xi32>
    %31 = arith.cmpi slt, %27, %30 : vector<24x1xi32>
    %c0_i32_23 = arith.constant 0 : i32
    %32 = arith.cmpi slt, %25, %c0_i32_23 : i32
    %33 = vector.broadcast %32 : i1 to vector<24x1xi1>
    %34 = vector.broadcast %33 : vector<24x1xi1> to vector<24x1xi1>
    %35 = arith.xori %31, %34 : vector<24x1xi1>
    %36 = arith.andi %35, %29 : vector<24x1xi1>
    %37 = vector.broadcast %25 : i32 to vector<24x1xi32>
    %38 = arith.addi %27, %37 : vector<24x1xi32>
    %39 = arith.select %36, %38, %27 : vector<24x1xi1>, vector<24x1xi32>
    %c4_i32 = arith.constant 4 : i32
    %40 = vector.broadcast %c4_i32 : i32 to vector<24x1xi32>
    %41 = arith.cmpi slt, %39, %40 : vector<24x1xi32>
    %42 = arith.extui %41 : vector<24x1xi1> to vector<24x1xi32>
    %43 = arith.sitofp %42 : vector<24x1xi32> to vector<24x1xf32>
    %44 = vector.broadcast %43 : vector<24x1xf32> to vector<24x128xf32>
    %45 = arith.mulf %22, %44 : vector<24x128xf32>
    %cst_24 = arith.constant dense<0.000000e+00> : vector<128xf32>
    %46 = vector.multi_reduction <add>, %45, %cst_24 [0] : vector<24x128xf32> to vector<128xf32>
    %47 = vector.shape_cast %46 : vector<128xf32> to vector<1x128xf32>
    %48 = arith.mulf %45, %45 : vector<24x128xf32>
    %cst_25 = arith.constant dense<0.000000e+00> : vector<128xf32>
    %49 = vector.multi_reduction <add>, %48, %cst_25 [0] : vector<24x128xf32> to vector<128xf32>
    %50 = vector.shape_cast %49 : vector<128xf32> to vector<1x128xf32>
    %cst_26 = arith.constant 6.250000e-02 : f32
    %51 = vector.broadcast %cst_26 : f32 to vector<1x128xf32>
    %52 = arith.mulf %47, %51 : vector<1x128xf32>
    %cst_27 = arith.constant 6.250000e-02 : f32
    %53 = vector.broadcast %cst_27 : f32 to vector<1x128xf32>
    %54 = arith.mulf %50, %53 : vector<1x128xf32>
    %55 = arith.mulf %52, %52 : vector<1x128xf32>
    %56 = arith.subf %54, %55 : vector<1x128xf32>
    %cst_28 = arith.constant 0.000000e+00 : f32
    %57 = vector.broadcast %cst_28 : f32 to vector<1x128xf32>
    %58 = arith.maximumf %56, %57 : vector<1x128xf32>
    %59 = vector.broadcast %52 : vector<1x128xf32> to vector<24x128xf32>
    %60 = arith.subf %22, %59 : vector<24x128xf32>
    %cst_29 = arith.constant 9.99999974E-6 : f32
    %61 = vector.broadcast %cst_29 : f32 to vector<1x128xf32>
    %62 = arith.addf %58, %61 : vector<1x128xf32>
    %63 = math.rsqrt %62 : vector<1x128xf32>
    %64 = vector.broadcast %63 : vector<1x128xf32> to vector<24x128xf32>
    %65 = arith.mulf %60, %64 : vector<24x128xf32>
    %cst_30 = arith.constant 0.000000e+00 : f32
    %66 = vector.broadcast %cst_30 : f32 to vector<24x128xf32>
    %67 = arith.cmpf ogt, %65, %66 : vector<24x128xf32>
    %cst_31 = arith.constant 2.000000e-01 : f32
    %68 = vector.broadcast %cst_31 : f32 to vector<24x128xf32>
    %69 = arith.mulf %68, %65 : vector<24x128xf32>
    %70 = arith.select %67, %65, %69 : vector<24x128xi1>, vector<24x128xf32>
    %71 = vector.broadcast %43 : vector<24x1xf32> to vector<24x128xf32>
    %72 = arith.mulf %70, %71 : vector<24x128xf32>
    %73 = arith.truncf %72 : vector<24x128xf32> to vector<24x128xbf16>
    %c0_32 = arith.constant 0 : index
    %c0_33 = arith.constant 0 : index
    %c0_34 = arith.constant 0 : index
    %74 = vector.load %arg4[%c0_32, %c0_33, %c0_34] : memref<1x24x128xbf16, #tpu.memory_space<vmem>>, vector<1x24x128xbf16>
    %75 = vector.shape_cast %74 : vector<1x24x128xbf16> to vector<24x128xbf16>
    %76 = vector.shape_cast %73 : vector<24x128xbf16> to vector<1x24x128xbf16>
    tpu.vector_store %arg4[%c0_32, %c0_33, %c0_34], %76 {strides = array<i32>} : memref<1x24x128xbf16, #tpu.memory_space<vmem>>, vector<1x24x128xbf16>,
    return
  }
  func.func @transform_0(%arg0: i32, %arg1: i32) -> (i32, i32, i32) {
    %c0_i32 = arith.constant 0 : i32
    %c0_i32_0 = arith.constant 0 : i32
    %c0_i32_1 = arith.constant 0 : i32
    return %arg0, %c0_i32, %c0_i32_0 : i32, i32, i32
  }
  func.func @transform_1(%arg0: i32, %arg1: i32) -> (i32, i32, i32) {
    %c0_i32 = arith.constant 0 : i32
    %c0_i32_0 = arith.constant 0 : i32
    %c0_i32_1 = arith.constant 0 : i32
    return %c0_i32, %c0_i32_0, %arg1 : i32, i32, i32
  }
  func.func @transform_2(%arg0: i32, %arg1: i32) -> (i32, i32, i32) {
    %c0_i32 = arith.constant 0 : i32
    %c0_i32_0 = arith.constant 0 : i32
    return %arg0, %c0_i32, %arg1 : i32, i32, i32
  }
}

module attributes {stable_mosaic.version = 11 : i64} {
  func.func @kernel(%arg0: i32, %arg1: memref<8x4096xbf16, #tpu.memory_space<vmem>>, %arg2: memref<4096x128xbf16, #tpu.memory_space<vmem>>, %arg3: memref<1x128xf32, #tpu.memory_space<vmem>>, %arg4: memref<8x128xf32, #tpu.memory_space<vmem>>) attributes {dimension_semantics = [#tpu.dimension_semantics<parallel>], iteration_bounds = array<i64: 1>, scalar_prefetch = 0 : i64, scratch_operands = 0 : i64, tpu.core_type = #tpu.core_type<tc>, window_params = [{transform_indices = @transform_0, window_bounds = array<i64: 8, 4096>}, {pipeline_mode = #tpu.pipeline_mode<synchronous>, transform_indices = @transform_1, window_bounds = array<i64: 4096, 128>}, {pipeline_mode = #tpu.pipeline_mode<synchronous>, transform_indices = @transform_2, window_bounds = array<i64: 1, 128>}, {transform_indices = @transform_3, window_bounds = array<i64: 8, 128>}]} {
    %c0 = arith.constant 0 : index
    %c0_0 = arith.constant 0 : index
    %0 = vector.load %arg1[%c0, %c0_0] : memref<8x4096xbf16, #tpu.memory_space<vmem>>, vector<8x4096xbf16>
    %c0_1 = arith.constant 0 : index
    %c0_2 = arith.constant 0 : index
    %1 = vector.load %arg2[%c0_1, %c0_2] : memref<4096x128xbf16, #tpu.memory_space<vmem>>, vector<4096x128xbf16>
    %cst = arith.constant dense<0.000000e+00> : vector<8x128xf32>
    %2 = tpu.matmul %0, %1, %cst {dimension_numbers = #tpu.dot_dimension_numbers<[1], [0], [0], [1], [0, 0, 1, 1], [], []>} : vector<8x4096xbf16>, vector<4096x128xbf16>, vector<8x128xf32> -> vector<8x128xf32>
    %c0_3 = arith.constant 0 : index
    %c0_4 = arith.constant 0 : index
    %3 = vector.load %arg3[%c0_3, %c0_4] : memref<1x128xf32, #tpu.memory_space<vmem>>, vector<1x128xf32>
    %4 = vector.broadcast %3 : vector<1x128xf32> to vector<8x128xf32>
    %5 = arith.addf %2, %4 : vector<8x128xf32>
    %c0_5 = arith.constant 0 : index
    %c0_6 = arith.constant 0 : index
    %6 = vector.load %arg4[%c0_5, %c0_6] : memref<8x128xf32, #tpu.memory_space<vmem>>, vector<8x128xf32>
    tpu.vector_store %arg4[%c0_5, %c0_6], %5 {strides = array<i32>} : memref<8x128xf32, #tpu.memory_space<vmem>>, vector<8x128xf32>,
    return
  }
  func.func @transform_0(%arg0: i32) -> (i32, i32) {
    %c0_i32 = arith.constant 0 : i32
    %c0_i32_0 = arith.constant 0 : i32
    return %arg0, %c0_i32 : i32, i32
  }
  func.func @transform_1(%arg0: i32) -> (i32, i32) {
    %c0_i32 = arith.constant 0 : i32
    %c0_i32_0 = arith.constant 0 : i32
    %c0_i32_1 = arith.constant 0 : i32
    return %c0_i32, %c0_i32_0 : i32, i32
  }
  func.func @transform_2(%arg0: i32) -> (i32, i32) {
    %c0_i32 = arith.constant 0 : i32
    %c0_i32_0 = arith.constant 0 : i32
    %c0_i32_1 = arith.constant 0 : i32
    return %c0_i32, %c0_i32_0 : i32, i32
  }
  func.func @transform_3(%arg0: i32) -> (i32, i32) {
    %c0_i32 = arith.constant 0 : i32
    %c0_i32_0 = arith.constant 0 : i32
    return %arg0, %c0_i32 : i32, i32
  }
}

</mosaic_0001>

<bundles_post_ra>
// kernel: a_call__.4
= control target key start
LH: loop header
LB: loop body
LE: loop exit
PB: predicated region body
PF: predicated region fallthrough
CT: control target
= control target key end

     0   :  { %s590_s12 = smov 0   ;;  %s686_s0 = inlined_call_operand.vmem [shape: bf16[512,48], index: 0, kind: input, shape index: {}]   ;;  %s687_s1 = inlined_call_operand.vmem [shape: bf16[48,64], index: 1, kind: input, shape index: {}]   ;;  %s688_s2 = inlined_call_operand.vmem [shape: f32[1,64], index: 2, kind: input, shape index: {}]   ;;  %s689_s3 = inlined_call_operand.vmem [shape: bf16[512,64], index: 3, kind: output, shape index: {}]  }
   0x1 LB: > { %s470_s13 = sadd.s32 4294967295, %s568_s12   ;;  %p474_p0 = scmp.ge.s32.totalorder %s568_s12, 1  ;;  %s568_s12 = sphi %s590_s12, %s13_s12  }
   0x2   : > { %p138_p1 = scmp.lt.s32.totalorder %s568_s12, 5 }
   0x4   : > { %p139_p2 = pnand %p474_p0, %p138_p1 }
   0x5   : > { %s475_s16 = sshll.u32 (!%p139_p2), %s470_s13, 4 }
   0x6   : > { %142 = sbr.rel (%p139_p2) target bundleno = 189 (0xbd), region = 32  ;;  %p163_p3 = scmp.lt.s32.totalorder (!%p139_p2), %s475_s16, 63 }
   0xb   : > { %v543_v0 = vld [vmem:[%s687_s1 + $0x10] sm:$0xff]  ;;  %v542_v1 = vld [vmem:[%s687_s1 + $0x8] sm:$0xff]  ;;  %s691_s16 = smov (!%p163_p3, %s475_s16), 63  ;;  %v541_v2 = vld [vmem:[%s687_s1] sm:$0xff]  ;;  %vm259_vm0 = vcmask 392192   ;;  %vm397_vm3 = vcmask 519168  }
   0xc   : > { %289 = vmatpush.bf16.msra.mxu0 %v543_v0  ;;  %544 = vmatpush.bf16.msra.mxu1 %v543_v0  ;;  %s476_s19 = sshll.u32 %s691_s16, 2  ;;  %v626_v11 = vld [vmem:[%s688_s2] ss:$0 sm:$0xff] }
   0xd   : > { %545 = vmatpush.bf16.msra.mxu2 %v543_v0  ;;  %546 = vmatpush.bf16.msra.mxu3 %v543_v0  ;;  %s166_s24 = scalar_lea.vmem %s686_s0, %s476_s19  ;;  %s635_s29 = scalar_lea.vmem %s689_s3, %s476_s19 }
   0xe   : > { %v533_v3 = vld [vmem:[%s166_s24] sm:$0xff]  ;;  %v535_v4 = vld [vmem:[%s166_s24 + $0x10] sm:$0xff]  ;;  %v534_v7 = vld [vmem:[%s166_s24 + $0x8] sm:$0xff] }
   0xf   : > { %v537_v5 = vld [vmem:[%s166_s24 + $0x20] sm:$0xff]  ;;  %v539_v6 = vld [vmem:[%s166_s24 + $0x30] sm:$0xff]  ;;  %v536_v8 = vld [vmem:[%s166_s24 + $0x18] sm:$0xff] }
  0x10   : > { %290 = vmatpush.bf16.msra.mxu0 %v542_v1  ;;  %547 = vmatpush.bf16.msra.mxu1 %v542_v1  ;;  %v538_v9 = vld [vmem:[%s166_s24 + $0x28] sm:$0xff]  ;;  %v540_v10 = vld [vmem:[%s166_s24 + $0x38] sm:$0xff] }
  0x11   : > { %548 = vmatpush.bf16.msra.mxu2 %v542_v1  ;;  %549 = vmatpush.bf16.msra.mxu3 %v542_v1 }
  0x14   : > { %291 = vmatpush.bf16.msra.mxu0 %v541_v2  ;;  %550 = vmatpush.bf16.msra.mxu1 %v541_v2 }
  0x15   : > { %551 = vmatpush.bf16.msra.mxu2 %v541_v2  ;;  %552 = vmatpush.bf16.msra.mxu3 %v541_v2 }
  0x17   : > { %523 = vmatmul.msk.bf16.vlgmr.msra.gmra.mxu0 %vm259_vm0, %v533_v3  ;;  %525 = vmatmul.msk.bf16.vlgmr.msra.gmra.mxu1 %vm259_vm0, %v535_v4 }
  0x18   : > { %527 = vmatmul.msk.bf16.vlgmr.msra.gmra.mxu2 %vm259_vm0, %v537_v5  ;;  %529 = vmatmul.msk.bf16.vlgmr.msra.gmra.mxu3 %vm259_vm0, %v539_v6 }
  0x27   : > { %524 = vmatmul.msk.bf16.gmra.mxu0 %vm259_vm0, %v534_v7  ;;  %526 = vmatmul.msk.bf16.gmra.mxu1 %vm259_vm0, %v536_v8 }
  0x28   : > { %528 = vmatmul.msk.bf16.gmra.mxu2 %vm259_vm0, %v538_v9  ;;  %530 = vmatmul.msk.bf16.gmra.mxu3 %vm259_vm0, %v540_v10 }
  0x94   : > { %v293_v12 = vpop.f32.mrf.mxu0  ;;  %v303_v13 = vpop.f32.mrf.mxu1 }
  0x95   : > { %v294_v14 = vadd.f32 %v626_v11, %v293_v12  ;;  %v304_v15 = vadd.f32 %v626_v11, %v303_v13 }
  0x97   : > { %vm333_vm1 = vcmp.gt.f32.partialorder %v294_v14, 0.0  ;;  %v349_v16 = vmul.f32 0.2, %v294_v14  ;;  %vm337_vm2 = vcmp.gt.f32.partialorder %v304_v15, 0.0  ;;  %v353_v17 = vmul.f32 0.2, %v304_v15 }
  0x99   : > { %v365_v18 = vsel %vm333_vm1, %v294_v14, %v349_v16  ;;  %v369_v19 = vsel %vm337_vm2, %v304_v15, %v353_v17 }
  0x9a   : > { %v381_v20 = vpack.c.bf16 %v365_v18, %v365_v18  ;;  %v385_v21 = vpack.c.bf16 %v369_v19, %v369_v19 }
  0x9b   : > { %v313_v22 = vpop.f32.mrf.mxu2  ;;  %v323_v23 = vpop.f32.mrf.mxu3 }
  0x9c   : > { %398 = vst.msk [vmem:[%s635_s29] sm:$0xf] %vm397_vm3, %v381_v20  ;;  %v314_v24 = vadd.f32 %v626_v11, %v313_v22  ;;  %v324_v25 = vadd.f32 %v626_v11, %v323_v23  ;;  %v295_v26 = vpop.f32.mrf.mxu0  ;;  %v305_v27 = vpop.f32.mrf.mxu1 }
  0x9d   : > { %402 = vst.msk [vmem:[%s635_s29 + $0x10] sm:$0xf] %vm397_vm3, %v385_v21  ;;  %v296_v28 = vadd.f32 %v626_v11, %v295_v26  ;;  %v306_v29 = vadd.f32 %v626_v11, %v305_v27 }
  0x9e   : > { %vm341_vm4 = vcmp.gt.f32.partialorder %v314_v24, 0.0  ;;  %v357_v30 = vmul.f32 0.2, %v314_v24  ;;  %vm345_vm5 = vcmp.gt.f32.partialorder %v324_v25, 0.0  ;;  %v361_v31 = vmul.f32 0.2, %v324_v25 }
  0x9f   : > { %vm334_vm6 = vcmp.gt.f32.partialorder %v296_v28, 0.0  ;;  %v350_v32 = vmul.f32 0.2, %v296_v28  ;;  %vm338_vm7 = vcmp.gt.f32.partialorder %v306_v29, 0.0  ;;  %v354_v33 = vmul.f32 0.2, %v306_v29 }
  0xa0   : > { %v373_v34 = vsel %vm341_vm4, %v314_v24, %v357_v30  ;;  %v377_v35 = vsel %vm345_vm5, %v324_v25, %v361_v31 }
  0xa1   : > { %v389_v36 = vpack.c.bf16 %v373_v34, %v373_v34  ;;  %v393_v37 = vpack.c.bf16 %v377_v35, %v377_v35  ;;  %v366_v38 = vsel %vm334_vm6, %v296_v28, %v350_v32  ;;  %v370_v39 = vsel %vm338_vm7, %v306_v29, %v354_v33 }
  0xa2   : > { %v382_v40 = vpack.c.bf16 %v366_v38, %v366_v38  ;;  %v386_v41 = vpack.c.bf16 %v370_v39, %v370_v39 }
  0xa3   : > { %406 = vst.msk [vmem:[%s635_s29 + $0x20] sm:$0xf] %vm397_vm3, %v389_v36  ;;  %v315_v42 = vpop.f32.mrf.mxu2  ;;  %v325_v43 = vpop.f32.mrf.mxu3 }
  0xa4   : > { %410 = vst.msk [vmem:[%s635_s29 + $0x30] sm:$0xf] %vm397_vm3, %v393_v37  ;;  %v316_v44 = vadd.f32 %v626_v11, %v315_v42  ;;  %v326_v45 = vadd.f32 %v626_v11, %v325_v43  ;;  %v298_v46 = vpop.f32.mrf.mxu0  ;;  %v308_v47 = vpop.f32.mrf.mxu1 }
  0xa5   : > { %399 = vst.msk [vmem:[%s635_s29 + $0x4] sm:$0xf] %vm397_vm3, %v382_v40  ;;  %v299_v48 = vadd.f32 %v626_v11, %v298_v46  ;;  %v309_v49 = vadd.f32 %v626_v11, %v308_v47 }
  0xa6   : > { %403 = vst.msk [vmem:[%s635_s29 + $0x14] sm:$0xf] %vm397_vm3, %v386_v41  ;;  %vm342_vm8 = vcmp.gt.f32.partialorder %v316_v44, 0.0  ;;  %v358_v50 = vmul.f32 0.2, %v316_v44  ;;  %vm346_vm9 = vcmp.gt.f32.partialorder %v326_v45, 0.0 }
  0xa7   : > { %v362_v51 = vmul.f32 0.2, %v326_v45  ;;  %vm335_vm10 = vcmp.gt.f32.partialorder %v299_v48, 0.0  ;;  %v351_v52 = vmul.f32 0.2, %v299_v48  ;;  %vm339_vm11 = vcmp.gt.f32.partialorder %v309_v49, 0.0 }
  0xa8   : > { %v374_v53 = vsel %vm342_vm8, %v316_v44, %v358_v50  ;;  %v355_v54 = vmul.f32 0.2, %v309_v49 }
  0xa9   : > { %v390_v55 = vpack.c.bf16 %v374_v53, %v374_v53  ;;  %v378_v56 = vsel %vm346_vm9, %v326_v45, %v362_v51  ;;  %v367_v57 = vsel %vm335_vm10, %v299_v48, %v351_v52 }
  0xaa   : > { %v394_v58 = vpack.c.bf16 %v378_v56, %v378_v56  ;;  %v383_v59 = vpack.c.bf16 %v367_v57, %v367_v57  ;;  %v371_v60 = vsel %vm339_vm11, %v309_v49, %v355_v54 }
  0xab   : > { %407 = vst.msk [vmem:[%s635_s29 + $0x24] sm:$0xf] %vm397_vm3, %v390_v55  ;;  %v387_v61 = vpack.c.bf16 %v371_v60, %v371_v60  ;;  %v318_v62 = vpop.f32.mrf.mxu2  ;;  %v328_v63 = vpop.f32.mrf.mxu3 }
  0xac   : > { %411 = vst.msk [vmem:[%s635_s29 + $0x34] sm:$0xf] %vm397_vm3, %v394_v58  ;;  %v319_v0 = vadd.f32 %v626_v11, %v318_v62  ;;  %v329_v1 = vadd.f32 %v626_v11, %v328_v63  ;;  %v300_v2 = vpop.f32.mrf.mxu0  ;;  %v310_v3 = vpop.f32.mrf.mxu1 }
  0xad   : > { %400 = vst.msk [vmem:[%s635_s29 + $0x8] sm:$0xf] %vm397_vm3, %v383_v59  ;;  %v301_v4 = vadd.f32 %v626_v11, %v300_v2  ;;  %v311_v5 = vadd.f32 %v626_v11, %v310_v3 }
  0xae   : > { %404 = vst.msk [vmem:[%s635_s29 + $0x18] sm:$0xf] %vm397_vm3, %v387_v61  ;;  %vm343_vm12 = vcmp.gt.f32.partialorder %v319_v0, 0.0  ;;  %v359_v6 = vmul.f32 0.2, %v319_v0  ;;  %vm347_vm13 = vcmp.gt.f32.partialorder %v329_v1, 0.0 }
  0xaf   : > { %v363_v7 = vmul.f32 0.2, %v329_v1  ;;  %vm336_vm14 = vcmp.gt.f32.partialorder %v301_v4, 0.0  ;;  %v352_v8 = vmul.f32 0.2, %v301_v4  ;;  %vm340_vm15 = vcmp.gt.f32.partialorder %v311_v5, 0.0 }
  0xb0   : > { %v375_v9 = vsel %vm343_vm12, %v319_v0, %v359_v6  ;;  %v356_v10 = vmul.f32 0.2, %v311_v5 }
  0xb1   : > { %v391_v12 = vpack.c.bf16 %v375_v9, %v375_v9  ;;  %v379_v13 = vsel %vm347_vm13, %v329_v1, %v363_v7  ;;  %v368_v14 = vsel %vm336_vm14, %v301_v4, %v352_v8 }
  0xb2   : > { %v395_v15 = vpack.c.bf16 %v379_v13, %v379_v13  ;;  %v384_v16 = vpack.c.bf16 %v368_v14, %v368_v14  ;;  %v372_v17 = vsel %vm340_vm15, %v311_v5, %v356_v10 }
  0xb3   : > { %408 = vst.msk [vmem:[%s635_s29 + $0x28] sm:$0xf] %vm397_vm3, %v391_v12  ;;  %v388_v18 = vpack.c.bf16 %v372_v17, %v372_v17  ;;  %v320_v19 = vpop.f32.mrf.mxu2  ;;  %v330_v20 = vpop.f32.mrf.mxu3 }
  0xb4   : > { %412 = vst.msk [vmem:[%s635_s29 + $0x38] sm:$0xf] %vm397_vm3, %v395_v15  ;;  %v321_v21 = vadd.f32 %v626_v11, %v320_v19  ;;  %v331_v22 = vadd.f32 %v626_v11, %v330_v20 }
  0xb5   : > { %401 = vst.msk [vmem:[%s635_s29 + $0xc] sm:$0xf] %vm397_vm3, %v384_v16 }
  0xb6   : > { %405 = vst.msk [vmem:[%s635_s29 + $0x1c] sm:$0xf] %vm397_vm3, %v388_v18  ;;  %vm344_vm0 = vcmp.gt.f32.partialorder %v321_v21, 0.0  ;;  %v360_v23 = vmul.f32 0.2, %v321_v21  ;;  %vm348_vm1 = vcmp.gt.f32.partialorder %v331_v22, 0.0 }
  0xb7   : > { %v364_v24 = vmul.f32 0.2, %v331_v22 }
  0xb8   : > { %v376_v25 = vsel %vm344_vm0, %v321_v21, %v360_v23 }
  0xb9   : > { %v392_v26 = vpack.c.bf16 %v376_v25, %v376_v25  ;;  %v380_v27 = vsel %vm348_vm1, %v331_v22, %v364_v24 }
  0xba   : > { %v396_v28 = vpack.c.bf16 %v380_v27, %v380_v27 }
  0xbb   : > { %409 = vst.msk [vmem:[%s635_s29 + $0x2c] sm:$0xf] %vm397_vm3, %v392_v26 }
  0xbc   : > { %413 = vst.msk [vmem:[%s635_s29 + $0x3c] sm:$0xf] %vm397_vm3, %v396_v28 }
  0xbd PF: > { %s13_s12 = sadd.s32 1, %s568_s12  }
  0xbe   : > { %p10_p4 = scmp.ge.s32.totalorder %s13_s12, 6  }
  0xc0   :  { %12 = sbr.rel (!%p10_p4) target bundleno = 1 (0x1), region = 62 }

// kernel: a_call__.5
= control target key start
LH: loop header
LB: loop body
LE: loop exit
PB: predicated region body
PF: predicated region fallthrough
CT: control target
= control target key end

     0   :  { %s2621_s9 = smov 0   ;;  %s2623_s10 = smov 0   ;;  %s3329_s0 = inlined_call_operand.vmem [shape: bf16[2,100,256], index: 0, kind: input, shape index: {}]   ;;  %s3330_s1 = inlined_call_operand.vmem [shape: bf16[4,256,128], index: 1, kind: input, shape index: {}]   ;;  %s3331_s2 = inlined_call_operand.vmem [shape: bf16[2,80,128], index: 2, kind: output, shape index: {}]  }
   0x1   :  { %s2625_s11 = smov 0  }
   0x2 LB: > { %s24_s12 = sadd.s32 1, %s2598_s10  ;;  %p1990_p0 = scmp.ge.s32.totalorder %s2602_s11, 1  ;;  %s2602_s11 = sphi %s2625_s11, %s12_s11   ;;  %s2598_s10 = sphi %s2623_s10, %s3355_s10   ;;  %s2594_s9 = sphi %s2621_s9, %s3354_s9  }
   0x3   : > { %p26_p1 = scmp.ge.s32.totalorder %s24_s12, 2  ;;  %p135_p2 = scmp.lt.s32.totalorder %s2602_s11, 3 }
   0x5   : > { %s3357_s12 = smov (%p26_p1, %s24_s12), 0  ;;  %p136_p3 = pnand %p1990_p0, %p135_p2 }
   0x6   : > { %p164_p4 = scmp.lt.s32.totalorder (!%p136_p3), %s2594_s9, 1 }
   0x7   : > { %139 = sbr.rel (%p136_p3) target bundleno = 399 (0x18f), region = 28 }
   0xc   : > { %v2470_v0 = vld [vmem:[%s3330_s1 + $0xb8] sm:$0xff]  ;;  %v2469_v4 = vld [vmem:[%s3330_s1 + $0xb0] sm:$0xff]  ;;  %s3359_s9 = smov (!%p164_p4, %s2594_s9), 1  ;;  %v2468_v8 = vld [vmem:[%s3330_s1 + $0xa8] sm:$0xff]  ;;  %vm302_vm0 = vsmask.f32 7424 }
   0xd   : > { %v2478_v1 = vld [vmem:[%s3330_s1 + $0xf8] sm:$0xff]  ;;  %497 = vmatpush.bf16.msra.mxu0 %v2470_v0  ;;  %v2477_v5 = vld [vmem:[%s3330_s1 + $0xf0] sm:$0xff]  ;;  %s2550_s29 = smul.u32 104, %s3359_s9  ;;  %v2476_v9 = vld [vmem:[%s3330_s1 + $0xe8] sm:$0xff]  ;;  %vm828_vm1 = vcmask 1046528  }
   0xe   : > { %v2454_v2 = vld [vmem:[%s3330_s1 + $0x38] sm:$0xff]  ;;  %531 = vmatpush.bf16.msra.mxu1 %v2478_v1  ;;  %v2453_v6 = vld [vmem:[%s3330_s1 + $0x30] sm:$0xff]  ;;  %v2452_v10 = vld [vmem:[%s3330_s1 + $0x28] sm:$0xff]  ;;  %vm1074_vm2 = vsmask.f32 6400 }
   0xf   : > { %v2462_v3 = vld [vmem:[%s3330_s1 + $0x78] sm:$0xff]  ;;  %671 = vmatpush.bf16.msra.mxu2 %v2454_v2  ;;  %v2461_v7 = vld [vmem:[%s3330_s1 + $0x70] sm:$0xff]  ;;  %v2460_v11 = vld [vmem:[%s3330_s1 + $0x68] sm:$0xff]  ;;  %s2681_s16 = scalar_lea.vmem %s3329_s0, %s2550_s29 }
  0x10   : > { %705 = vmatpush.bf16.msra.mxu3 %v2462_v3  ;;  %v2467_v12 = vld [vmem:[%s3330_s1 + $0xa0] sm:$0xff]  ;;  %v2438_v17 = vld [vmem:[%s2681_s16 + $0x4] sm:$0xf0]  ;;  %v2029_v19 = vld [vmem:[%s2681_s16 + $0x8] sm:$0xf0] }
  0x11   : > { %498 = vmatpush.bf16.msra.mxu0 %v2469_v4  ;;  %v2475_v13 = vld [vmem:[%s3330_s1 + $0xe0] sm:$0xff]  ;;  %v2466_v20 = vld [vmem:[%s3330_s1 + $0x98] sm:$0xff]  ;;  %v2035_v23 = vld [vmem:[%s2681_s16 + $0x10] sm:$0xf] }
  0x12   : > { %532 = vmatpush.bf16.msra.mxu1 %v2477_v5  ;;  %v2451_v14 = vld [vmem:[%s3330_s1 + $0x20] sm:$0xff]  ;;  %v2474_v21 = vld [vmem:[%s3330_s1 + $0xd8] sm:$0xff]  ;;  %v2439_v28 = vld [vmem:[%s2681_s16 + $0x14] sm:$0xf] }
  0x13   : > { %672 = vmatpush.bf16.msra.mxu2 %v2453_v6  ;;  %v2459_v15 = vld [vmem:[%s3330_s1 + $0x60] sm:$0xff]  ;;  %v2450_v22 = vld [vmem:[%s3330_s1 + $0x18] sm:$0xff]  ;;  %v2465_v31 = vld [vmem:[%s3330_s1 + $0x90] sm:$0xff] }
  0x14   : > { %706 = vmatpush.bf16.msra.mxu3 %v2461_v7  ;;  %v2027_v16 = vld [vmem:[%s2681_s16] sm:$0xf]  ;;  %v2437_v18 = vld [vmem:[%s2681_s16 + $0x4] sm:$0xf]  ;;  %v2440_v24 = vld [vmem:[%s2681_s16 + $0x14] sm:$0xf0] }
  0x15   : > { %499 = vmatpush.bf16.msra.mxu0 %v2468_v8  ;;  %v2710_v25 = vor.u32 %v2438_v17, %v2027_v16  ;;  %v2712_v26 = vor.u32 %v2437_v18, %v2029_v19  ;;  %v2458_v27 = vld [vmem:[%s3330_s1 + $0x58] sm:$0xff]  ;;  %v2719_v30 = vor.u32 %v2440_v24, %v2035_v23  ;;  %v2473_v32 = vld [vmem:[%s3330_s1 + $0xd0] sm:$0xff]  ;;  %v2464_v40 = vld [vmem:[%s3330_s1 + $0x88] sm:$0xff] }
  0x16   : > { %533 = vmatpush.bf16.msra.mxu1 %v2476_v9  ;;  %v2037_v29 = vld [vmem:[%s2681_s16 + $0x18] sm:$0xf0]  ;;  %v2449_v36 = vld [vmem:[%s3330_s1 + $0x10] sm:$0xff]  ;;  %v2472_v41 = vld [vmem:[%s3330_s1 + $0xc8] sm:$0xff] }
  0x17   : > { %673 = vmatpush.bf16.msra.mxu2 %v2452_v10  ;;  %v306_v33 = vshll.u32 %v2710_v25, 16  ;;  %v2728_v34 = vor.u32 %v2439_v28, %v2037_v29  ;;  %v318_v35 = vshll.u32 %v2712_v26, 16  ;;  %v2457_v37 = vld [vmem:[%s3330_s1 + $0x50] sm:$0xff]  ;;  %v304_v38 = vshrl.u32 %v2710_v25, 16  ;;  %v2448_v46 = vld [vmem:[%s3330_s1 + $0x8] sm:$0xff]  ;;  %v2463_v48 = vld [vmem:[%s3330_s1 + $0x80] sm:$0xff] }
  0x18   : > { %707 = vmatpush.bf16.msra.mxu3 %v2460_v11  ;;  %v311_v39 = vshll.u32 %v2719_v30, 16  ;;  %v316_v43 = vshrl.u32 %v2712_v26, 16  ;;  %v2456_v47 = vld [vmem:[%s3330_s1 + $0x48] sm:$0xff]  ;;  %v2471_v49 = vld [vmem:[%s3330_s1 + $0xc0] sm:$0xff]  ;;  %v2512_v56 = vld [vmem:[%s3330_s1 + $0x1b8] sm:$0xff]  ;;  %v327_v10 = vshrl.u32 %v2719_v30, 16 }
  0x19   : > { %500 = vmatpush.bf16.msra.mxu0 %v2467_v12  ;;  %v308_v42 = vrot.slane %v306_v33, 1  ;;  %v320_v44 = vrot.slane %v318_v35, 1  ;;  %v323_v45 = vshll.u32 %v2728_v34, 16  ;;  %v2447_v54 = vld [vmem:[%s3330_s1] sm:$0xff]  ;;  %v2520_v57 = vld [vmem:[%s3330_s1 + $0x1f8] sm:$0xff]  ;;  %v2511_v2 = vld [vmem:[%s3330_s1 + $0x1b0] sm:$0xff] }
  0x1a   : > { %534 = vmatpush.bf16.msra.mxu1 %v2475_v13  ;;  %v313_v51 = vrot.slane %v311_v39, 1  ;;  %v2455_v55 = vld [vmem:[%s3330_s1 + $0x40] sm:$0xff]  ;;  %v2496_v60 = vld [vmem:[%s3330_s1 + $0x138] sm:$0xff]  ;;  %v2442_v63 = vld [vmem:[%s2681_s16 + $0x24] sm:$0xf0]  ;;  %v335_v12 = vshrl.u32 %v2728_v34, 16 }
  0x1b   : > { %674 = vmatpush.bf16.msra.mxu2 %v2451_v14  ;;  %v309_v50 = vor.u32 %v308_v42, %v304_v38  ;;  %v321_v52 = vor.u32 %v320_v44, %v316_v43  ;;  %v325_v53 = vrot.slane %v323_v45, 1  ;;  %v2504_v61 = vld [vmem:[%s3330_s1 + $0x178] sm:$0xff]  ;;  %v2043_v62 = vld [vmem:[%s2681_s16 + $0x20] sm:$0xf]  ;;  %v2441_v0 = vld [vmem:[%s2681_s16 + $0x24] sm:$0xf] }
  0x1c   : > { %708 = vmatpush.bf16.msra.mxu3 %v2459_v15  ;;  %v2045_v1 = vld [vmem:[%s2681_s16 + $0x28] sm:$0xf0]  ;;  %v2519_v3 = vld [vmem:[%s3330_s1 + $0x1f0] sm:$0xff]  ;;  %v2791_v4 = vor.u32 %v2442_v63, %v2043_v62  ;;  %v2509_v16 = vld [vmem:[%s3330_s1 + $0x1a0] sm:$0xff]  ;;  %v329_v18 = vor.u32 %v327_v10, %v313_v51 }
  0x1d   : > { %501 = vmatpush.bf16.msra.mxu0 %v2466_v20  ;;  %v314_v58 = vsel %vm302_vm0, %v309_v50, %v313_v51  ;;  %v326_v59 = vsel %vm302_vm0, %v321_v52, %v325_v53  ;;  %v2793_v5 = vor.u32 %v2441_v0, %v2045_v1  ;;  %v2495_v6 = vld [vmem:[%s3330_s1 + $0x130] sm:$0xff]  ;;  %v2510_v8 = vld [vmem:[%s3330_s1 + $0x1a8] sm:$0xff]  ;;  %v2517_v17 = vld [vmem:[%s3330_s1 + $0x1e0] sm:$0xff]  ;;  %v337_v20 = vor.u32 %v335_v12, %v325_v53 }
  0x1e   : > { %535 = vmatpush.bf16.msra.mxu1 %v2474_v21  ;;  %v2503_v7 = vld [vmem:[%s3330_s1 + $0x170] sm:$0xff]  ;;  %v2518_v9 = vld [vmem:[%s3330_s1 + $0x1e8] sm:$0xff]  ;;  %v331_v11 = vshll.u32 %v2791_v4, 16  ;;  %v2501_v23 = vld [vmem:[%s3330_s1 + $0x160] sm:$0xff]  ;;  %v343_v42 = vshrl.u32 %v2791_v4, 16 }
  0x1f   : > { %675 = vmatpush.bf16.msra.mxu2 %v2450_v22  ;;  %v339_v13 = vshll.u32 %v2793_v5, 16  ;;  %v2494_v14 = vld [vmem:[%s3330_s1 + $0x128] sm:$0xff]  ;;  %v2493_v22 = vld [vmem:[%s3330_s1 + $0x120] sm:$0xff]  ;;  %v2508_v24 = vld [vmem:[%s3330_s1 + $0x198] sm:$0xff]  ;;  %v351_v44 = vshrl.u32 %v2793_v5, 16 }
  0x20   : > { %709 = vmatpush.bf16.msra.mxu3 %v2458_v27  ;;  %v2502_v15 = vld [vmem:[%s3330_s1 + $0x168] sm:$0xff]  ;;  %v333_v19 = vrot.slane %v331_v11, 1  ;;  %v2051_v28 = vld [vmem:[%s2681_s16 + $0x30] sm:$0xf]  ;;  %v2444_v29 = vld [vmem:[%s2681_s16 + $0x34] sm:$0xf0] }
  0x21   : > { %502 = vmatpush.bf16.msra.mxu0 %v2465_v31  ;;  %v341_v21 = vrot.slane %v339_v13, 1  ;;  %v2443_v31 = vld [vmem:[%s2681_s16 + $0x34] sm:$0xf]  ;;  %v2492_v33 = vld [vmem:[%s3330_s1 + $0x118] sm:$0xff]  ;;  %v2059_v52 = vld [vmem:[%s2681_s16 + $0x40] sm:$0xf] }
  0x22   : > { %536 = vmatpush.bf16.msra.mxu1 %v2473_v32  ;;  %v2053_v32 = vld [vmem:[%s2681_s16 + $0x38] sm:$0xf0]  ;;  %v2507_v38 = vld [vmem:[%s3330_s1 + $0x190] sm:$0xff]  ;;  %v2446_v53 = vld [vmem:[%s2681_s16 + $0x44] sm:$0xf0] }
  0x23   : > { %676 = vmatpush.bf16.msra.mxu2 %v2449_v36  ;;  %v342_v27 = vsel %vm302_vm0, %v337_v20, %v341_v21  ;;  %v2500_v35 = vld [vmem:[%s3330_s1 + $0x158] sm:$0xff]  ;;  %v2052_v36 = vor.u32 %v2444_v29, %v2051_v28  ;;  %v2515_v39 = vld [vmem:[%s3330_s1 + $0x1d0] sm:$0xff]  ;;  %v2489_v62 = vld [vmem:[%s3330_s1 + $0x100] sm:$0xff] }
  0x24   : > { %710 = vmatpush.bf16.msra.mxu3 %v2457_v37  ;;  %v2056_v37 = vor.u32 %v2443_v31, %v2053_v32  ;;  %v2497_v63 = vld [vmem:[%s3330_s1 + $0x140] sm:$0xff]  ;;  %v2229_v28 = vld [vmem:[%s2681_s16 + $0x10] sm:$0xf0]  ;;  %v2481_v29 = vld [vmem:[%s2681_s16 + $0x1c] sm:$0xf] }
  0x25   : > { %503 = vmatpush.bf16.msra.mxu0 %v2464_v40  ;;  %v2491_v40 = vld [vmem:[%s3330_s1 + $0x110] sm:$0xff]  ;;  %v347_v43 = vshll.u32 %v2052_v36, 16  ;;  %v359_v0 = vshrl.u32 %v2052_v36, 16  ;;  %v2237_v31 = vld [vmem:[%s2681_s16 + $0x20] sm:$0xf0] }
  0x26   : > { %537 = vmatpush.bf16.msra.mxu1 %v2472_v41  ;;  %v2514_v41 = vld [vmem:[%s3330_s1 + $0x1c8] sm:$0xff]  ;;  %v355_v45 = vshll.u32 %v2056_v37, 16 }
  0x27   : > { %677 = vmatpush.bf16.msra.mxu2 %v2448_v46  ;;  %v345_v46 = vor.u32 %v343_v42, %v333_v19 }
  0x28   : > { %711 = vmatpush.bf16.msra.mxu3 %v2456_v47  ;;  %v349_v47 = vrot.slane %v347_v43, 1 }
  0x29   : > { %504 = vmatpush.bf16.msra.mxu0 %v2463_v48  ;;  %v353_v48 = vor.u32 %v351_v44, %v341_v21 }
  0x2a   : > { %538 = vmatpush.bf16.msra.mxu1 %v2471_v49  ;;  %v357_v49 = vrot.slane %v355_v45, 1  ;;  %v350_v50 = vsel %vm302_vm0, %v345_v46, %v349_v47 }
  0x2b   : > { %678 = vmatpush.bf16.msra.mxu2 %v2447_v54  ;;  %v2445_v54 = vld [vmem:[%s2681_s16 + $0x44] sm:$0xf] }
  0x2c   : > { %712 = vmatpush.bf16.msra.mxu3 %v2455_v55  ;;  %505 = vmatmul.bf16.vlgmr.msra.gmra.mxu0 %v314_v58  ;;  %v358_v51 = vsel %vm302_vm0, %v353_v48, %v357_v49  ;;  %v2061_v55 = vld [vmem:[%s2681_s16 + $0x48] sm:$0xf0] }
  0x2d   : > { %539 = vmatmul.bf16.vlgmr.msra.gmra.mxu1 %v326_v59  ;;  %957 = vmatpush.bf16.msrb.mxu0 %v2496_v60  ;;  %v2490_v58 = vld [vmem:[%s3330_s1 + $0x108] sm:$0xff]  ;;  %v2505_v60 = vld [vmem:[%s3330_s1 + $0x180] sm:$0xff] }
  0x2e   : > { %679 = vmatmul.bf16.vlgmr.msra.gmra.mxu2 %v2710_v25  ;;  %991 = vmatpush.bf16.msrb.mxu1 %v2504_v61  ;;  %v2516_v25 = vld [vmem:[%s3330_s1 + $0x1d8] sm:$0xff]  ;;  %v2498_v59 = vld [vmem:[%s3330_s1 + $0x148] sm:$0xff]  ;;  %v2513_v61 = vld [vmem:[%s3330_s1 + $0x1c0] sm:$0xff] }
  0x2f   : > { %1287 = vmatpush.bf16.msrb.mxu2 %v2512_v56  ;;  %713 = vmatmul.bf16.vlgmr.msra.gmra.mxu3 %v2712_v26  ;;  %v334_v26 = vsel %vm302_vm0, %v329_v18, %v333_v19  ;;  %v2060_v56 = vor.u32 %v2446_v53, %v2059_v52 }
  0x30   : > { %1321 = vmatpush.bf16.msrb.mxu3 %v2520_v57  ;;  %v2064_v57 = vor.u32 %v2445_v54, %v2061_v55 }
  0x31   : > { %958 = vmatpush.bf16.msrb.mxu0 %v2495_v6  ;;  %v363_v1 = vshll.u32 %v2060_v56, 16 }
  0x32   : > { %992 = vmatpush.bf16.msrb.mxu1 %v2503_v7 }
  0x33   : > { %1288 = vmatpush.bf16.msrb.mxu2 %v2511_v2  ;;  %v367_v2 = vshrl.u32 %v2056_v37, 16 }
  0x34   : > { %1322 = vmatpush.bf16.msrb.mxu3 %v2519_v3  ;;  %v371_v3 = vshll.u32 %v2064_v57, 16 }
  0x35   : > { %959 = vmatpush.bf16.msrb.mxu0 %v2494_v14  ;;  %v369_v6 = vor.u32 %v367_v2, %v357_v49 }
  0x36   : > { %993 = vmatpush.bf16.msrb.mxu1 %v2502_v15  ;;  %v373_v7 = vrot.slane %v371_v3, 1  ;;  %v375_v15 = vshrl.u32 %v2060_v56, 16 }
  0x37   : > { %1289 = vmatpush.bf16.msrb.mxu2 %v2510_v8  ;;  %v223_v8 = vld [vmem:[%s2681_s16 + $0x50] sm:$0x11] }
  0x38   : > { %1323 = vmatpush.bf16.msrb.mxu3 %v2518_v9  ;;  %v374_v10 = vsel %vm302_vm0, %v369_v6, %v373_v7  ;;  %v288_v11 = vunpack.c.l.b16 %v223_v8  ;;  %v289_v12 = vunpack.c.h.b16 %v223_v8 }
  0x39   : > { %960 = vmatpush.bf16.msrb.mxu0 %v2493_v22 }
  0x3a   : > { %994 = vmatpush.bf16.msrb.mxu1 %v2501_v23  ;;  %v300_v13 = vpack.c.b16 %v288_v11, %v288_v11  ;;  %v301_v14 = vpack.c.b16 %v289_v12, %v289_v12  ;;  %v2227_v23 = vld [vmem:[%s2681_s16 + $0x8] sm:$0xe] }
  0x3b   : > { %1290 = vmatpush.bf16.msrb.mxu2 %v2509_v16 }
  0x3c   : > { %1324 = vmatpush.bf16.msrb.mxu3 %v2517_v17  ;;  %510 = vmatmul.bf16.gmra.mxu0 %v334_v26  ;;  %v379_v16 = vshll.u32 %v300_v13, 16  ;;  %v383_v17 = vshrl.u32 %v2064_v57, 16  ;;  %v387_v18 = vshll.u32 %v301_v14, 16  ;;  %v2482_v26 = vld [vmem:[%s2681_s16 + $0x1c] sm:$0xf0] }
  0x3d   : > { %544 = vmatmul.bf16.gmra.mxu1 %v342_v27  ;;  %961 = vmatpush.bf16.msrb.mxu0 %v2492_v33  ;;  %v2479_v27 = vld [vmem:[%s2681_s16 + $0xc] sm:$0xe] }
  0x3e   : > { %684 = vmatmul.bf16.gmra.mxu2 %v2719_v30  ;;  %995 = vmatpush.bf16.msrb.mxu1 %v2500_v35  ;;  %v2499_v30 = vld [vmem:[%s3330_s1 + $0x150] sm:$0xff]  ;;  %v381_v20 = vrot.slane %v379_v16, 1  ;;  %v385_v21 = vor.u32 %v383_v17, %v373_v7  ;;  %v389_v22 = vrot.slane %v387_v18, 1 }
  0x3f   : > { %1291 = vmatpush.bf16.msrb.mxu2 %v2508_v24  ;;  %718 = vmatmul.bf16.gmra.mxu3 %v2728_v34  ;;  %v2506_v34 = vld [vmem:[%s3330_s1 + $0x188] sm:$0xff]  ;;  %v2480_v24 = vld [vmem:[%s2681_s16 + $0xc] sm:$0xf0] }
  0x40   : > { %1325 = vmatpush.bf16.msrb.mxu3 %v2516_v25  ;;  %v2235_v25 = vld [vmem:[%s2681_s16 + $0x18] sm:$0xf]  ;;  %v390_v33 = vsel %vm302_vm0, %v385_v21, %v389_v22  ;;  %v2228_v35 = vor.u32 %v2480_v24, %v2227_v23  ;;  %v2485_v21 = vld [vmem:[%s2681_s16 + $0x3c] sm:$0xf]  ;;  %v2253_v22 = vld [vmem:[%s2681_s16 + $0x40] sm:$0xf0] }
  0x41   : > { %962 = vmatpush.bf16.msrb.mxu0 %v2491_v40 }
  0x42   : > { %996 = vmatpush.bf16.msrb.mxu1 %v2499_v30  ;;  %v1079_v40 = vshll.u32 %v2228_v35, 16  ;;  %v829_v53 = vrot.slane %v2228_v35, 1 }
  0x43   : > { %1292 = vmatpush.bf16.msrb.mxu2 %v2507_v38  ;;  %v2910_v38 = vor.u32 %v2481_v29, %v2237_v31 }
  0x44   : > { %1326 = vmatpush.bf16.msrb.mxu3 %v2515_v39  ;;  %v1076_v39 = vshrl.u32 %v2228_v35, 16  ;;  %v1081_v46 = vrot.slane %v1079_v40, 2 }
  0x45   : > { %963 = vmatpush.bf16.msrb.mxu0 %v2490_v58  ;;  %v1101_v43 = vshrl.u32 %v2910_v38, 16  ;;  %v1104_v44 = vshll.u32 %v2910_v38, 16 }
  0x46   : > { %997 = vmatpush.bf16.msrb.mxu1 %v2498_v59  ;;  %v1078_v45 = vrot.slane %v1076_v39, 1 }
  0x47   : > { %1293 = vmatpush.bf16.msrb.mxu2 %v2506_v34  ;;  %v1106_v52 = vrot.slane %v1104_v44, 2  ;;  %v2261_v44 = vld [vmem:[%s2681_s16 + $0x50] sm:$0xf0] }
  0x48   : > { %1327 = vmatpush.bf16.msrb.mxu3 %v2514_v41 }
  0x49   : > { %964 = vmatpush.bf16.msrb.mxu0 %v2489_v62  ;;  %v2484_v62 = vld [vmem:[%s2681_s16 + $0x2c] sm:$0xf0] }
  0x4a   : > { %998 = vmatpush.bf16.msrb.mxu1 %v2497_v63  ;;  %v2483_v63 = vld [vmem:[%s2681_s16 + $0x2c] sm:$0xf] }
  0x4b   : > { %1294 = vmatpush.bf16.msrb.mxu2 %v2505_v60 }
  0x4c   : > { %515 = vmatmul.bf16.gmra.mxu0 %v350_v50  ;;  %1328 = vmatpush.bf16.msrb.mxu3 %v2513_v61  ;;  %v2243_v61 = vld [vmem:[%s2681_s16 + $0x28] sm:$0xf] }
  0x4d   : > { %549 = vmatmul.bf16.gmra.mxu1 %v358_v51  ;;  %v1103_v51 = vrot.slane %v1101_v43, 1  ;;  %v2487_v43 = vld [vmem:[%s2681_s16 + $0x4c] sm:$0xf] }
  0x4e   : > { %689 = vmatmul.bf16.gmra.mxu2 %v2791_v4  ;;  %v361_v4 = vor.u32 %v359_v0, %v349_v47  ;;  %v2245_v0 = vld [vmem:[%s2681_s16 + $0x30] sm:$0xf0] }
  0x4f   : > { %723 = vmatmul.bf16.gmra.mxu3 %v2793_v5  ;;  %v365_v5 = vrot.slane %v363_v1, 1  ;;  %v1107_v60 = vor.u32 %v1106_v52, %v1103_v51  ;;  %v2248_v6 = vor.u32 %v2483_v63, %v2245_v0 }
  0x51   : > { %v366_v9 = vsel %vm302_vm0, %v361_v4, %v365_v5  ;;  %v377_v19 = vor.u32 %v375_v15, %v365_v5  ;;  %v2244_v5 = vor.u32 %v2484_v62, %v2243_v61  ;;  %v837_v16 = vrot.slane %v2248_v6, 1 }
  0x53   : > { %v382_v32 = vsel %vm302_vm0, %v377_v19, %v381_v20  ;;  %v1110_v7 = vshrl.u32 %v2244_v5, 16  ;;  %v1113_v8 = vshll.u32 %v2244_v5, 16  ;;  %v835_v15 = vrot.slane %v2244_v5, 1  ;;  %v2251_v19 = vld [vmem:[%s2681_s16 + $0x38] sm:$0xf] }
  0x54   : > { %v2486_v20 = vld [vmem:[%s2681_s16 + $0x3c] sm:$0xf0] }
  0x55   : > { %v1112_v11 = vrot.slane %v1110_v7, 1  ;;  %v1115_v12 = vrot.slane %v1113_v8, 2 }
  0x57   : > { %v1116_v17 = vor.u32 %v1115_v12, %v1112_v11 }
  0x5c   : > { %520 = vmatmul.bf16.gmra.mxu0 %v366_v9  ;;  %v1119_v9 = vshrl.u32 %v2248_v6, 16 }
  0x5d   : > { %554 = vmatmul.bf16.gmra.mxu1 %v374_v10  ;;  %v1122_v10 = vshll.u32 %v2248_v6, 16 }
  0x5e   : > { %694 = vmatmul.bf16.gmra.mxu2 %v2052_v36  ;;  %v2908_v36 = vor.u32 %v2482_v26, %v2235_v25  ;;  %v1121_v13 = vrot.slane %v1119_v9, 1 }
  0x5f   : > { %728 = vmatmul.bf16.gmra.mxu3 %v2056_v37  ;;  %v2232_v37 = vor.u32 %v2479_v27, %v2229_v28  ;;  %v1124_v14 = vrot.slane %v1122_v10, 2  ;;  %v2252_v27 = vor.u32 %v2486_v20, %v2251_v19  ;;  %v2256_v28 = vor.u32 %v2485_v21, %v2253_v22  ;;  %v749_v10 = vld [vmem:[%s2681_s16 + $0x58] sm:$0x11] }
  0x60   : > { %v1084_v30 = vshrl.u32 %v2908_v36, 16  ;;  %v1087_v34 = vshll.u32 %v2908_v36, 16  ;;  %v830_v54 = vrot.slane %v2908_v36, 1  ;;  %v814_v12 = vunpack.c.l.b16 %v749_v10 }
  0x61   : > { %v1093_v41 = vshrl.u32 %v2232_v37, 16  ;;  %v1096_v42 = vshll.u32 %v2232_v37, 16  ;;  %v832_v55 = vrot.slane %v2232_v37, 1  ;;  %v1125_v18 = vor.u32 %v1124_v14, %v1121_v13 }
  0x62   : > { %v1086_v47 = vrot.slane %v1084_v30, 1  ;;  %v1089_v48 = vrot.slane %v1087_v34, 2  ;;  %v831_v1 = vsel %vm828_vm1, %v829_v53, %v830_v54  ;;  %v836_v23 = vsel %vm828_vm1, %v830_v54, %v835_v15 }
  0x63   : > { %v1095_v49 = vrot.slane %v1093_v41, 1  ;;  %v1098_v50 = vrot.slane %v1096_v42, 2  ;;  %v1126_v26 = vsel %vm1074_vm2, %v1107_v60, %v1125_v18  ;;  %v1128_v29 = vshrl.u32 %v2252_v27, 16  ;;  %v2259_v41 = vld [vmem:[%s2681_s16 + $0x48] sm:$0xf] }
  0x64   : > { %v1090_v58 = vor.u32 %v1089_v48, %v1086_v47  ;;  %v1131_v31 = vshll.u32 %v2252_v27, 16  ;;  %v839_v39 = vrot.slane %v2252_v27, 1  ;;  %v841_v40 = vrot.slane %v2256_v28, 1  ;;  %v2488_v42 = vld [vmem:[%s2681_s16 + $0x4c] sm:$0xf0] }
  0x65   : > { %v1099_v59 = vor.u32 %v1098_v50, %v1095_v49  ;;  %v1130_v35 = vrot.slane %v1128_v29, 1  ;;  %v2942_v49 = vor.u32 %v2488_v42, %v2259_v41  ;;  %v2944_v50 = vor.u32 %v2487_v43, %v2261_v44 }
  0x66   : > { %v1117_v25 = vsel %vm1074_vm2, %v1090_v58, %v1116_v17  ;;  %v1133_v36 = vrot.slane %v1131_v31, 2  ;;  %v815_v13 = vunpack.c.h.b16 %v749_v10 }
  0x67   : > { %v1108_v4 = vsel %vm1074_vm2, %v1099_v59, %v1107_v60  ;;  %v1146_v51 = vshrl.u32 %v2942_v49, 16  ;;  %v1149_v52 = vshll.u32 %v2942_v49, 16  ;;  %v1155_v53 = vshrl.u32 %v2944_v50, 16  ;;  %v1035_v59 = vld [vmem:[%s2681_s16 + $0x58] sm:$0x33]  ;;  %s2551_s16 = smul.u32 40, %s3359_s9 }
  0x68   : > { %v1134_v30 = vor.u32 %v1133_v36, %v1130_v35  ;;  %v1158_v54 = vshll.u32 %v2944_v50, 16  ;;  %v843_v60 = vrot.slane %v2942_v49, 1  ;;  %v845_v61 = vrot.slane %v2944_v50, 1 }
  0x69   : > { %v1070_v62 = vunpack.c.l.b16 %v1035_v59  ;;  %s180_s30 = scalar_lea.vmem %s3331_s2, %s2551_s16 }
  0x6a   : > { %v1135_v47 = vsel %vm1074_vm2, %v1116_v17, %v1134_v30  ;;  %v846_v5 = vsel %vm828_vm1, %v841_v40, %v845_v61 }
  0x6b   : > { %v1072_v6 = vpack.c.b16 %v1070_v62, %v1070_v62 }
  0x6c   : > { %525 = vmatmul.bf16.gmra.mxu0 %v382_v32  ;;  %v1137_v32 = vshrl.u32 %v2256_v28, 16 }
  0x6d   : > { %559 = vmatmul.bf16.gmra.mxu1 %v390_v33  ;;  %v1140_v33 = vshll.u32 %v2256_v28, 16  ;;  %v1164_v14 = vshrl.u32 %v1072_v6, 16 }
  0x6e   : > { %699 = vmatmul.bf16.gmra.mxu2 %v2060_v56  ;;  %v833_v56 = vrot.slane %v2910_v38, 1  ;;  %v1139_v37 = vrot.slane %v1137_v32, 1 }
  0x6f   : > { %733 = vmatmul.bf16.gmra.mxu3 %v2064_v57  ;;  %v1082_v57 = vor.u32 %v1081_v46, %v1078_v45  ;;  %v1142_v38 = vrot.slane %v1140_v33, 2  ;;  %v840_v45 = vsel %vm828_vm1, %v835_v15, %v839_v39  ;;  %v842_v46 = vsel %vm828_vm1, %v837_v16, %v841_v40 }
  0x70   : > { %v834_v2 = vsel %vm828_vm1, %v832_v55, %v833_v56  ;;  %v838_v24 = vsel %vm828_vm1, %v833_v56, %v837_v16  ;;  %v1148_v55 = vrot.slane %v1146_v51, 1  ;;  %v1151_v56 = vrot.slane %v1149_v52, 2 }
  0x71   : > { %v1091_v3 = vsel %vm1074_vm2, %v1082_v57, %v1090_v58  ;;  %v1143_v34 = vor.u32 %v1142_v38, %v1139_v37  ;;  %v1157_v57 = vrot.slane %v1155_v53, 1  ;;  %v1160_v58 = vrot.slane %v1158_v54, 2 }
  0x72   : > { %v1152_v63 = vor.u32 %v1151_v56, %v1148_v55  ;;  %v1167_v15 = vshll.u32 %v1072_v6, 16  ;;  %v1365_v53 = vlaneseq }
  0x73   : > { %v1144_v48 = vsel %vm1074_vm2, %v1125_v18, %v1143_v34  ;;  %v1161_v0 = vor.u32 %v1160_v58, %v1157_v57 }
  0x74   : > { %v1153_v8 = vsel %vm1074_vm2, %v1134_v30, %v1152_v63  ;;  %v1169_v27 = vrot.slane %v1167_v15, 2  ;;  %v2968_v56 = vshrl.u32 %v1365_v53, 7 }
  0x75   : > { %v1162_v9 = vsel %vm1074_vm2, %v1143_v34, %v1161_v0 }
  0x7c   : > { %965 = vmatmul.bf16.vlgmr.msrb.gmra.mxu0 %v831_v1  ;;  %v1071_v1 = vunpack.c.h.b16 %v1035_v59 }
  0x7d   : > { %999 = vmatmul.bf16.vlgmr.msrb.gmra.mxu1 %v834_v2 }
  0x7e   : > { %1295 = vmatmul.bf16.vlgmr.msrb.gmra.mxu2 %v1091_v3  ;;  %v1073_v11 = vpack.c.b16 %v1071_v1, %v1071_v1 }
  0x7f   : > { %1329 = vmatmul.bf16.vlgmr.msrb.gmra.mxu3 %v1108_v4  ;;  %v844_v4 = vsel %vm828_vm1, %v839_v39, %v843_v60 }
  0x80   : > { %v1173_v16 = vshrl.u32 %v1073_v11, 16  ;;  %v1176_v17 = vshll.u32 %v1073_v11, 16  ;;  %v2604_v11 = vmov 0  }
  0x82   : > { %v1175_v28 = vrot.slane %v1173_v16, 1  ;;  %v1178_v29 = vrot.slane %v1176_v17, 2 }
  0x84   : > { %v1179_v36 = vor.u32 %v1178_v29, %v1175_v28 }
  0x86   : > { %v1180_v44 = vsel %vm1074_vm2, %v1161_v0, %v1179_v36 }
  0x8c   : > { %970 = vmatmul.bf16.gmra.mxu0 %v836_v23  ;;  %v826_v23 = vpack.c.b16 %v814_v12, %v814_v12 }
  0x8d   : > { %1004 = vmatmul.bf16.gmra.mxu1 %v838_v24  ;;  %v827_v24 = vpack.c.b16 %v815_v13, %v815_v13 }
  0x8e   : > { %1300 = vmatmul.bf16.gmra.mxu2 %v1117_v25  ;;  %v1166_v25 = vrot.slane %v1164_v14, 1  ;;  %v847_v32 = vrot.slane %v826_v23, 1  ;;  %v2976_v14 = vadd.s32 8, %v2968_v56 }
  0x8f   : > { %1334 = vmatmul.bf16.gmra.mxu3 %v1126_v26  ;;  %v849_v33 = vrot.slane %v827_v24, 1 }
  0x90   : > { %v1170_v35 = vor.u32 %v1169_v27, %v1166_v25  ;;  %v848_v34 = vsel %vm828_vm1, %v843_v60, %v847_v32 }
  0x91   : > { %v850_v41 = vsel %vm828_vm1, %v845_v61, %v849_v33  ;;  %v1379_v61 = vand.u32 65535, %v2968_v56  ;;  %v2984_v33 = vadd.s32 16, %v2968_v56 }
  0x92   : > { %v1171_v43 = vsel %vm1074_vm2, %v1152_v63, %v1170_v35  ;;  %v1380_v63 = vshrl.u32 %v2968_v56, 16 }
  0x93   : > { %v1383_v0 = vmul.u32 52428, %v1379_v61  ;;  %v1382_v1 = vmul.u32 52429, %v1379_v61 }
  0x94   : > { %v1385_v6 = vmul.u32 52428, %v1380_v63 }
  0x95   : > { %v1387_v24 = vshrl.u32 %v1383_v0, 16 }
  0x9c   : > { %975 = vmatmul.bf16.gmra.mxu0 %v840_v45 }
  0x9d   : > { %1009 = vmatmul.bf16.gmra.mxu1 %v842_v46 }
  0x9e   : > { %1305 = vmatmul.bf16.gmra.mxu2 %v1135_v47 }
  0x9f   : > { %1339 = vmatmul.bf16.gmra.mxu3 %v1144_v48 }
  0xa9   : > { %v506_v2 = vpop.f32.mrf.mxu0 }
  0xaa   : > { %v540_v3 = vpop.f32.mrf.mxu1 }
  0xab   : > { %v541_v7 = vadd.f32 %v540_v3, %v506_v2  ;;  %v1384_v2 = vmul.u32 52429, %v1380_v63  ;;  %v1386_v3 = vshll.u32 %v1383_v0, 16 }
  0xac   : > { %980 = vmatmul.bf16.gmra.mxu0 %v844_v4 }
  0xad   : > { %1014 = vmatmul.bf16.gmra.mxu1 %v846_v5  ;;  %vm1390_vm3 = vc.u32 %v1382_v1, %v1386_v3  ;;  %v1392_v13 = vadd.s32 %v1386_v3, %v1382_v1 }
  0xae   : > { %1310 = vmatmul.bf16.gmra.mxu2 %v1153_v8  ;;  %v1391_v12 = vsel %vm1390_vm3, 1, %v2604_v11 }
  0xaf   : > { %1344 = vmatmul.bf16.gmra.mxu3 %v1162_v9  ;;  %v1393_v17 = vadd.s32 %v1391_v12, %v1385_v6 }
  0xb1   : > { %v680_v18 = vpop.f32.mrf.mxu2  ;;  %v508_v21 = vpop.f32.mrf.mxu0 }
  0xb2   : > { %v714_v19 = vpop.f32.mrf.mxu3  ;;  %v681_v20 = vadd.f32 %v680_v18, %v541_v7  ;;  %v542_v22 = vpop.f32.mrf.mxu1  ;;  %v1388_v7 = vshll.u32 %v1384_v2, 16  ;;  %v1408_v18 = vand.u32 65535, %v2976_v14 }
  0xb3   : > { %v543_v26 = vadd.f32 %v542_v22, %v508_v21 }
  0xb4   : > { %v2958_v31 = vadd.f32 %v714_v19, %v681_v20  ;;  %vm1394_vm4 = vc.u32 %v1392_v13, %v1388_v7  ;;  %v1409_v20 = vshrl.u32 %v2976_v14, 16  ;;  %v1412_v21 = vmul.u32 52428, %v1408_v18 }
  0xb5   : > { %v1395_v19 = vsel %vm1394_vm4, 1, %v2604_v11  ;;  %v1411_v22 = vmul.u32 52429, %v1408_v18  ;;  %v2997_v13 = vadd.s32 24, %v2968_v56 }
  0xb6   : > { %v1413_v23 = vmul.u32 52429, %v1409_v20  ;;  %v1397_v25 = vadd.s32 %v1395_v19, %v1393_v17  ;;  %v1414_v29 = vmul.u32 52428, %v1409_v20 }
  0xb7   : > { %v1466_v19 = vand.u32 65535, %v2997_v13  ;;  %v1467_v20 = vshrl.u32 %v2997_v13, 16 }
  0xb8   : > { %v1417_v32 = vshll.u32 %v1413_v23, 16 }
  0xb9   : > { %v682_v37 = vpop.f32.mrf.mxu2  ;;  %v511_v40 = vpop.f32.mrf.mxu0 }
  0xba   : > { %v716_v38 = vpop.f32.mrf.mxu3  ;;  %v683_v39 = vadd.f32 %v682_v37, %v543_v26  ;;  %v545_v30 = vpop.f32.mrf.mxu1  ;;  %v1415_v26 = vshll.u32 %v1412_v21, 16 }
  0xbb   : > { %v546_v42 = vadd.f32 %v545_v30, %v511_v40  ;;  %v1389_v40 = vshrl.u32 %v1384_v2, 16 }
  0xbc   : > { %v2964_v45 = vadd.f32 %v716_v38, %v683_v39  ;;  %985 = vmatmul.bf16.gmra.mxu0 %v848_v34  ;;  %vm1419_vm5 = vc.u32 %v1411_v22, %v1415_v26  ;;  %v1421_v38 = vadd.s32 %v1415_v26, %v1411_v22  ;;  %v1437_v34 = vand.u32 65535, %v2984_v33 }
  0xbd   : > { %1019 = vmatmul.bf16.gmra.mxu1 %v850_v41  ;;  %v1420_v30 = vsel %vm1419_vm5, 1, %v2604_v11 }
  0xbe   : > { %1315 = vmatmul.bf16.gmra.mxu2 %v1171_v43  ;;  %v1422_v43 = vadd.s32 %v1420_v30, %v1414_v29  ;;  %vm1423_vm6 = vc.u32 %v1421_v38, %v1417_v32  ;;  %v1470_v29 = vmul.u32 52428, %v1466_v19  ;;  %v1471_v38 = vmul.u32 52429, %v1467_v20 }
  0xbf   : > { %1349 = vmatmul.bf16.gmra.mxu3 %v1180_v44  ;;  %v1416_v44 = vshrl.u32 %v1412_v21, 16 }
  0xc0   : > { %v1473_v30 = vshll.u32 %v1470_v29, 16 }
  0xc1   : > { %v685_v46 = vpop.f32.mrf.mxu2  ;;  %v513_v49 = vpop.f32.mrf.mxu0 }
  0xc2   : > { %v719_v47 = vpop.f32.mrf.mxu3  ;;  %v686_v48 = vadd.f32 %v685_v46, %v546_v42  ;;  %v547_v50 = vpop.f32.mrf.mxu1  ;;  %v1398_v42 = vadd.s32 %v1397_v25, %v1387_v24  ;;  %v1424_v46 = vsel %vm1423_vm6, 1, %v2604_v11  ;;  %v3002_v24 = vadd.s32 32, %v2968_v56 }
  0xc3   : > { %v548_v51 = vadd.f32 %v547_v50, %v513_v49  ;;  %v1426_v49 = vadd.s32 %v1424_v46, %v1422_v43  ;;  %v1440_v50 = vmul.u32 52429, %v1437_v34  ;;  %v1475_v43 = vshll.u32 %v1471_v38, 16 }
  0xc4   : > { %v2966_v52 = vadd.f32 %v719_v47, %v686_v48  ;;  %v1438_v47 = vshrl.u32 %v2984_v33, 16  ;;  %v1441_v48 = vmul.u32 52428, %v1437_v34  ;;  %v1495_v34 = vand.u32 65535, %v3002_v24 }
  0xc6   : > { %v1444_v53 = vshll.u32 %v1441_v48, 16 }
  0xc8   : > { %vm1448_vm7 = vc.u32 %v1440_v50, %v1444_v53  ;;  %v1450_v63 = vadd.s32 %v1444_v53, %v1440_v50 }
  0xc9   : > { %v687_v54 = vpop.f32.mrf.mxu2  ;;  %v516_v58 = vpop.f32.mrf.mxu0 }
  0xca   : > { %v721_v55 = vpop.f32.mrf.mxu3  ;;  %v688_v57 = vadd.f32 %v687_v54, %v548_v51  ;;  %v550_v59 = vpop.f32.mrf.mxu1  ;;  %v1442_v51 = vmul.u32 52429, %v1438_v47  ;;  %v1399_v54 = vadd.s32 %v1398_v42, %v1389_v40  ;;  %v1472_v40 = vmul.u32 52428, %v1467_v20 }
  0xcb   : > { %v551_v60 = vadd.f32 %v550_v59, %v516_v58 }
  0xcc   : > { %v2971_v62 = vadd.f32 %v721_v55, %v688_v57  ;;  %v1418_v55 = vshrl.u32 %v1413_v23, 16  ;;  %v1427_v57 = vadd.s32 %v1426_v49, %v1416_v44  ;;  %v1446_v61 = vshll.u32 %v1442_v51, 16 }
  0xcd   : > { %v1496_v44 = vshrl.u32 %v3002_v24, 16  ;;  %v1499_v49 = vmul.u32 52428, %v1495_v34 }
  0xce   : > { %vm1452_vm8 = vc.u32 %v1450_v63, %v1446_v61  ;;  %v1428_v6 = vadd.s32 %v1427_v57, %v1418_v55  ;;  %v1474_v61 = vshrl.u32 %v1470_v29, 16 }
  0xcf   : > { %v1500_v55 = vmul.u32 52429, %v1496_v44 }
  0xd0   : > { %v1429_v17 = vshrl.u32 %v1428_v6, 3 }
  0xd1   : > { %v690_v4 = vpop.f32.mrf.mxu2  ;;  %v518_v9 = vpop.f32.mrf.mxu0 }
  0xd2   : > { %v724_v5 = vpop.f32.mrf.mxu3  ;;  %v691_v8 = vadd.f32 %v690_v4, %v551_v60  ;;  %v552_v10 = vpop.f32.mrf.mxu1  ;;  %v1443_v60 = vmul.u32 52428, %v1438_v47  ;;  %v1449_v4 = vsel %vm1448_vm7, 1, %v2604_v11 }
  0xd3   : > { %v553_v15 = vadd.f32 %v552_v10, %v518_v9  ;;  %v1445_v9 = vshrl.u32 %v1441_v48, 16  ;;  %v1453_v10 = vsel %vm1452_vm8, 1, %v2604_v11 }
  0xd4   : > { %v2978_v16 = vadd.f32 %v724_v5, %v691_v8  ;;  %v1451_v7 = vadd.s32 %v1449_v4, %v1443_v60  ;;  %v1400_v8 = vshrl.u32 %v1399_v54, 3  ;;  %v1498_v54 = vmul.u32 52429, %v1495_v34 }
  0xd5   : > { %v1476_v4 = vshrl.u32 %v1471_v38, 16 }
  0xd6   : > { %v1455_v12 = vadd.s32 %v1453_v10, %v1451_v7  ;;  %v1401_v23 = vmul.u32 10, %v1400_v8  ;;  %v3021_v7 = vadd.s32 40, %v2968_v56 }
  0xd8   : > { %v1456_v18 = vadd.s32 %v1455_v12, %v1445_v9  ;;  %v1525_v20 = vshrl.u32 %v3021_v7, 16 }
  0xd9   : > { %v692_v27 = vpop.f32.mrf.mxu2  ;;  %v521_v36 = vpop.f32.mrf.mxu0 }
  0xda   : > { %v726_v28 = vpop.f32.mrf.mxu3  ;;  %v693_v35 = vadd.f32 %v692_v27, %v553_v15  ;;  %v555_v37 = vpop.f32.mrf.mxu1  ;;  %v1447_v15 = vshrl.u32 %v1442_v51, 16  ;;  %v3032_v29 = vmul.u32 52429, %v1525_v20 }
  0xdb   : > { %v556_v39 = vadd.f32 %v555_v37, %v521_v36  ;;  %v1430_v37 = vmul.u32 10, %v1429_v17  ;;  %v1524_v17 = vand.u32 65535, %v3021_v7 }
  0xdc   : > { %v2988_v41 = vadd.f32 %v726_v28, %v693_v35  ;;  %v1457_v28 = vadd.s32 %v1456_v18, %v1447_v15  ;;  %v1469_v35 = vmul.u32 52429, %v1466_v19  ;;  %v1503_v18 = vshrl.u32 %v1499_v49, 16 }
  0xdd   : > { %v3012_v47 = vsub.s32 %v2976_v14, %v1430_v37  ;;  %v1501_v14 = vmul.u32 52428, %v1496_v44 }
  0xde   : > { %v1458_v42 = vshrl.u32 %v1457_v28, 3  ;;  %vm1477_vm9 = vc.u32 %v1469_v35, %v1473_v30  ;;  %v1479_v46 = vadd.s32 %v1473_v30, %v1469_v35  ;;  %v1505_v28 = vshrl.u32 %v1500_v55, 16 }
  0xdf   : > { %v1478_v48 = vsel %vm1477_vm9, 1, %v2604_v11  ;;  %vm1667_vm13 = vcmp.ne.s32.totalorder %v3012_v47, 0  ;;  %v1530_v30 = vmul.u32 52428, %v1525_v20  ;;  %vm1677_vm0 = vcmp.lt.s32.totalorder %v3012_v47, 0 }
  0xe0   : > { %v1480_v53 = vadd.s32 %v1478_v48, %v1472_v40  ;;  %vm1481_vm12 = vc.u32 %v1479_v46, %v1475_v43  ;;  %v1459_v60 = vmul.u32 10, %v1458_v42  ;;  %v1533_v43 = vshll.u32 %v3032_v29, 16  ;;  %vm3064_vm6 = vmand %vm1677_vm0, %vm1667_vm13 }
  0xe1   : > { %v695_v58 = vpop.f32.mrf.mxu2  ;;  %v523_v1 = vpop.f32.mrf.mxu0 }
  0xe2   : > { %v729_v59 = vpop.f32.mrf.mxu3  ;;  %v696_v0 = vadd.f32 %v695_v58, %v556_v39  ;;  %v557_v2 = vpop.f32.mrf.mxu1  ;;  %v3007_v39 = vsub.s32 %v2968_v56, %v1401_v23  ;;  %v3026_v10 = vsub.s32 %v2984_v33, %v1459_v60  ;;  %v1527_v23 = vmul.u32 52429, %v1524_v17 }
  0xe3   : > { %v558_v3 = vadd.f32 %v557_v2, %v523_v1  ;;  %v1502_v1 = vshll.u32 %v1499_v49, 16  ;;  %v1504_v2 = vshll.u32 %v1500_v55, 16  ;;  %v1697_v60 = vadd.s32 10, %v3012_v47 }
  0xe4   : > { %v2993_v5 = vadd.f32 %v729_v59, %v696_v0  ;;  %vm1666_vm10 = vcmp.ne.s32.totalorder %v3007_v39, 0  ;;  %vm1676_vm11 = vcmp.lt.s32.totalorder %v3007_v39, 0  ;;  %v1482_v0 = vsel %vm1481_vm12, 1, %v2604_v11 }
  0xe5   : > { %v1484_v6 = vadd.s32 %v1482_v0, %v1480_v53  ;;  %v1696_v8 = vadd.s32 10, %v3007_v39  ;;  %vm1506_vm14 = vc.u32 %v1498_v54, %v1502_v1  ;;  %v1508_v9 = vadd.s32 %v1502_v1, %v1498_v54  ;;  %vm3046_vm2 = vmand %vm1676_vm11, %vm1666_vm10 }
  0xe6   : > { %v1507_v15 = vsel %vm1506_vm14, 1, %v2604_v11  ;;  %vm1668_vm1 = vcmp.ne.s32.totalorder %v3026_v10, 0  ;;  %vm1678_vm4 = vcmp.lt.s32.totalorder %v3026_v10, 0 }
  0xe7   : > { %v1485_v12 = vadd.s32 %v1484_v6, %v1474_v61  ;;  %v1509_v19 = vadd.s32 %v1507_v15, %v1501_v14  ;;  %vm1510_vm15 = vc.u32 %v1508_v9, %v1504_v2  ;;  %vm3073_vm7 = vmand %vm1678_vm4, %vm1668_vm1 }
  0xe9   : > { %v697_v21 = vpop.f32.mrf.mxu2  ;;  %v526_v26 = vpop.f32.mrf.mxu0 }
  0xea   : > { %v731_v22 = vpop.f32.mrf.mxu3  ;;  %v698_v25 = vadd.f32 %v697_v21, %v558_v3  ;;  %v560_v27 = vpop.f32.mrf.mxu1  ;;  %v1486_v21 = vadd.s32 %v1485_v12, %v1476_v4 }
  0xeb   : > { %v561_v32 = vadd.f32 %v560_v27, %v526_v26 }
  0xec   : > { %v3004_v36 = vadd.f32 %v731_v22, %v698_v25  ;;  %v1511_v22 = vsel %vm1510_vm15, 1, %v2604_v11  ;;  %v1528_v25 = vmul.u32 52428, %v1524_v17  ;;  %v1487_v40 = vshrl.u32 %v1486_v21, 3 }
  0xed   : > { %v1513_v33 = vadd.s32 %v1511_v22, %v1509_v19  ;;  %v1707_v19 = vsel %vm3064_vm6, %v1697_v60, %v3012_v47 }
  0xee   : > { %v1531_v34 = vshll.u32 %v1528_v25, 16  ;;  %v1488_v48 = vmul.u32 10, %v1487_v40  ;;  %vm1717_vm13 = vcmp.lt.s32.totalorder %v1707_v19, 8 }
  0xef   : > { %v1514_v42 = vadd.s32 %v1513_v33, %v1503_v18 }
  0xf0   : > { %vm1535_vm3 = vc.u32 %v1527_v23, %v1531_v34  ;;  %v1537_v49 = vadd.s32 %v1531_v34, %v1527_v23  ;;  %v3054_v54 = vsub.s32 %v2997_v13, %v1488_v48  ;;  %v1698_v13 = vadd.s32 10, %v3026_v10 }
  0xf1   : > { %v700_v50 = vpop.f32.mrf.mxu2  ;;  %v528_v58 = vpop.f32.mrf.mxu0 }
  0xf2   : > { %v734_v51 = vpop.f32.mrf.mxu3  ;;  %v701_v57 = vadd.f32 %v700_v50, %v561_v32  ;;  %v562_v59 = vpop.f32.mrf.mxu1  ;;  %v3035_v32 = vadd.s32 48, %v2968_v56  ;;  %v1515_v50 = vadd.s32 %v1514_v42, %v1505_v28  ;;  %vm1539_vm5 = vc.u32 %v1537_v49, %v1533_v43 }
  0xf3   : > { %v563_v63 = vadd.f32 %v562_v59, %v528_v58  ;;  %v1706_v58 = vsel %vm3046_vm2, %v1696_v8, %v3007_v39  ;;  %v1540_v61 = vsel %vm1539_vm5, 1, %v2604_v11  ;;  %vm1669_vm9 = vcmp.ne.s32.totalorder %v3054_v54, 0 }
  0xf4   : > { %v3018_v3 = vadd.f32 %v734_v51, %v701_v57  ;;  %v1536_v51 = vsel %vm1535_vm3, 1, %v2604_v11  ;;  %v1553_v53 = vand.u32 65535, %v3035_v32  ;;  %v1554_v57 = vshrl.u32 %v3035_v32, 16 }
  0xf5   : > { %v1538_v55 = vadd.s32 %v1536_v51, %v1530_v30  ;;  %v1516_v39 = vshrl.u32 %v1515_v50, 3  ;;  %vm3081_vm8 = vcmp.lt.s32.totalorder %v1706_v58, 8  ;;  %vm1679_vm10 = vcmp.lt.s32.totalorder %v3054_v54, 0 }
  0xf6   : > { %v3077_v6 = vmul.u32 52428, %v1553_v53  ;;  %v3079_v8 = vmul.u32 52429, %v1554_v57  ;;  %v1556_v17 = vmul.u32 52429, %v1553_v53  ;;  %v1708_v20 = vsel %vm3073_vm7, %v1698_v13, %v3026_v10  ;;  %vm3097_vm11 = vmand %vm1679_vm10, %vm1669_vm9 }
  0xf7   : > { %v1542_v0 = vadd.s32 %v1540_v61, %v1538_v55  ;;  %v1699_v22 = vadd.s32 10, %v3054_v54  ;;  %v1517_v23 = vmul.u32 10, %v1516_v39  ;;  %v1559_v33 = vmul.u32 52428, %v1554_v57 }
  0xf8   : > { %v1560_v21 = vshll.u32 %v3077_v6, 16  ;;  %v1562_v47 = vshll.u32 %v3079_v8, 16  ;;  %v2605_v10 = vmov 0.0   ;;  %vm3113_vm14 = vcmp.lt.s32.totalorder %v1708_v20, 8 }
  0xf9   : > { %v702_v26 = vpop.f32.mrf.mxu2  ;;  %v966_v37 = vpop.f32.mrf.mxu0  ;;  %v1709_v34 = vsel %vm3097_vm11, %v1699_v22, %v3054_v54  ;;  %v3121_v42 = vsub.s32 %v3002_v24, %v1517_v23  ;;  %v3127_v57 = vsel %vm1717_vm13, 1.0, %v2605_v10  ;;  %v3135_v60 = vsel %vm3113_vm14, 1.0, %v2605_v10 }
  0xfa   : > { %v736_v27 = vpop.f32.mrf.mxu3  ;;  %v703_v35 = vadd.f32 %v702_v26, %v563_v63  ;;  %v1000_v38 = vpop.f32.mrf.mxu1  ;;  %v1532_v63 = vshrl.u32 %v1528_v25, 16  ;;  %v1534_v25 = vshrl.u32 %v3032_v29, 16  ;;  %vm1564_vm12 = vc.u32 %v1556_v17, %v1560_v21 }
  0xfb   : > { %v1001_v1 = vadd.f32 %v1000_v38, %v966_v37  ;;  %v3108_v37 = vsel %vm3081_vm8, 1.0, %v2605_v10  ;;  %v1566_v40 = vadd.s32 %v1560_v21, %v1556_v17  ;;  %vm3137_vm0 = vcmp.lt.s32.totalorder %v1709_v34, 8 }
  0xfc   : > { %v3040_v44 = vadd.f32 %v736_v27, %v703_v35  ;;  %v1543_v26 = vadd.s32 %v1542_v0, %v1532_v63  ;;  %v3103_v35 = vadd.s32 56, %v2968_v56  ;;  %vm1670_vm1 = vcmp.ne.s32.totalorder %v3121_v42, 0 }
  0xfd   : > { %v1025_v27 = vadd.f32 %v1001_v1, %v2958_v31  ;;  %v1565_v31 = vsel %vm1564_vm12, 1, %v2604_v11  ;;  %vm1568_vm15 = vc.u32 %v1566_v40, %v1562_v47  ;;  %v1561_v63 = vshrl.u32 %v3077_v6, 16 }
  0xfe   : > { %v1544_v43 = vadd.s32 %v1543_v26, %v1534_v25  ;;  %v1567_v49 = vadd.s32 %v1565_v31, %v1559_v33  ;;  %v1582_v50 = vand.u32 65535, %v3103_v35  ;;  %v1583_v51 = vshrl.u32 %v3103_v35, 16 }
  0xff   : > { %v1569_v24 = vsel %vm1568_vm15, 1, %v2604_v11  ;;  %vm1680_vm2 = vcmp.lt.s32.totalorder %v3121_v42, 0  ;;  %v1563_v17 = vshrl.u32 %v3079_v8, 16  ;;  %v1700_v30 = vadd.s32 10, %v3121_v42 }
 0x100   : > { %v1545_v14 = vshrl.u32 %v1544_v43, 3  ;;  %v1585_v39 = vmul.u32 52429, %v1582_v50  ;;  %v1571_v0 = vadd.s32 %v1569_v24, %v1567_v49  ;;  %v3147_v1 = vmul.u32 52429, %v1583_v51  ;;  %vm3174_vm5 = vmand %vm1680_vm2, %vm1670_vm1 }
 0x101   : > { %v1296_v2 = vpop.f32.mrf.mxu2  ;;  %v968_v12 = vpop.f32.mrf.mxu0 }
 0x102   : > { %v1330_v4 = vpop.f32.mrf.mxu3  ;;  %v1002_v15 = vpop.f32.mrf.mxu1  ;;  %v1591_v6 = vshll.u32 %v3147_v1, 16  ;;  %v1546_v21 = vmul.u32 10, %v1545_v14  ;;  %v1572_v25 = vadd.s32 %v1571_v0, %v1561_v63 }
 0x103   : > { %v1331_v18 = vadd.f32 %v1330_v4, %v1296_v2  ;;  %v1003_v29 = vadd.f32 %v1002_v15, %v968_v12  ;;  %v3150_v2 = vadd.s32 64, %v2968_v56 }
 0x105   : > { %v3110_v38 = vadd.f32 %v1331_v18, %v1025_v27  ;;  %v1026_v53 = vadd.f32 %v1003_v29, %v2964_v45  ;;  %v3141_v45 = vmul.u32 52428, %v1582_v50  ;;  %v1588_v18 = vmul.u32 52428, %v1583_v51 }
 0x106   : > { %v1611_v28 = vand.u32 65535, %v3150_v2  ;;  %v1612_v40 = vshrl.u32 %v3150_v2, 16  ;;  %v3179_v51 = vsub.s32 %v3021_v7, %v1546_v21  ;;  %v1592_v21 = vshrl.u32 %v3147_v1, 16 }
 0x107   : > { %v1746_v59 = vmul.f32 %v3108_v37, %v3110_v38  ;;  %v1589_v12 = vshll.u32 %v3141_v45, 16 }
 0x108   : > { %v1614_v43 = vmul.u32 52429, %v1611_v28  ;;  %v3166_v49 = vmul.u32 52428, %v1611_v28  ;;  %v3168_v50 = vmul.u32 52429, %v1612_v40  ;;  %vm1671_vm7 = vcmp.ne.s32.totalorder %v3179_v51, 0 }
 0x109   : > { %v1298_v46 = vpop.f32.mrf.mxu2  ;;  %v971_v58 = vpop.f32.mrf.mxu0  ;;  %v1771_v15 = vmul.f32 %v1746_v59, %v1746_v59  ;;  %vm1593_vm3 = vc.u32 %v1585_v39, %v1589_v12  ;;  %v1595_v27 = vadd.s32 %v1589_v12, %v1585_v39  ;;  %v1617_v39 = vmul.u32 52428, %v1612_v40 }
 0x10a   : > { %v1332_v48 = vpop.f32.mrf.mxu3  ;;  %v1005_v54 = vpop.f32.mrf.mxu1  ;;  %v1594_v26 = vsel %vm1593_vm3, 1, %v2604_v11  ;;  %v1618_v24 = vshll.u32 %v3166_v49, 16  ;;  %v1620_v63 = vshll.u32 %v3168_v50, 16  ;;  %vm1681_vm8 = vcmp.lt.s32.totalorder %v3179_v51, 0 }
 0x10b   : > { %v1333_v55 = vadd.f32 %v1332_v48, %v1298_v46  ;;  %v1006_v9 = vadd.f32 %v1005_v54, %v971_v58  ;;  %v1596_v34 = vadd.s32 %v1594_v26, %v1588_v18  ;;  %vm1597_vm4 = vc.u32 %v1595_v27, %v1591_v6  ;;  %vm3210_vm11 = vmand %vm1681_vm8, %vm1671_vm7 }
 0x10c   : > { %v1598_v48 = vsel %vm1597_vm4, 1, %v2604_v11  ;;  %v3186_v54 = vsel %vm3137_vm0, 1.0, %v2605_v10  ;;  %vm1622_vm6 = vc.u32 %v1614_v43, %v1618_v24  ;;  %v3203_v26 = vadd.s32 72, %v2968_v56 }
 0x10d   : > { %v3143_v61 = vadd.f32 %v1333_v55, %v1026_v53  ;;  %v1027_v47 = vadd.f32 %v1006_v9, %v2966_v52  ;;  %v1573_v53 = vadd.s32 %v1572_v25, %v1563_v17  ;;  %v1600_v14 = vadd.s32 %v1598_v48, %v1596_v34 }
 0x10e   : > { %v1624_v17 = vadd.s32 %v1618_v24, %v1614_v43 }
 0x10f   : > { %v1747_v4 = vmul.f32 %v3127_v57, %v3143_v61  ;;  %v1574_v13 = vshrl.u32 %v1573_v53, 3 }
 0x110   : > { %vm1626_vm9 = vc.u32 %v1624_v17, %v1620_v63 }
 0x111   : > { %v1756_v19 = vadd.f32 %v1747_v4, %v1746_v59  ;;  %v1772_v20 = vmul.f32 %v1747_v4, %v1747_v4  ;;  %v1301_v22 = vpop.f32.mrf.mxu2  ;;  %v973_v8 = vpop.f32.mrf.mxu0  ;;  %v1590_v59 = vshrl.u32 %v3141_v45, 16  ;;  %v1710_v4 = vsel %vm3174_vm5, %v1700_v30, %v3121_v42 }
 0x112   : > { %v1335_v23 = vpop.f32.mrf.mxu3  ;;  %v1007_v31 = vpop.f32.mrf.mxu1  ;;  %v1627_v25 = vsel %vm1626_vm9, 1, %v2604_v11  ;;  %v1575_v28 = vmul.u32 10, %v1574_v13  ;;  %vm1720_vm10 = vcmp.lt.s32.totalorder %v1710_v4, 8 }
 0x113   : > { %v1781_v33 = vadd.f32 %v1772_v20, %v1771_v15  ;;  %v1336_v29 = vadd.f32 %v1335_v23, %v1301_v22  ;;  %v1008_v58 = vadd.f32 %v1007_v31, %v973_v8  ;;  %v1623_v15 = vsel %vm1622_vm6, 1, %v2604_v11 }
 0x114   : > { %v1601_v42 = vadd.s32 %v1600_v14, %v1590_v59  ;;  %v1625_v22 = vadd.s32 %v1623_v15, %v1617_v39  ;;  %v1619_v8 = vshrl.u32 %v3166_v49, 16  ;;  %v3219_v53 = vsel %vm1720_vm10, 1.0, %v2605_v10 }
 0x115   : > { %v3163_v46 = vadd.f32 %v1336_v29, %v1027_v47  ;;  %v1028_v18 = vadd.f32 %v1008_v58, %v2971_v62  ;;  %v1701_v62 = vadd.s32 10, %v3179_v51  ;;  %v1640_v47 = vand.u32 65535, %v3203_v26 }
 0x116   : > { %v1641_v29 = vshrl.u32 %v3203_v26, 16  ;;  %v1602_v56 = vadd.s32 %v1601_v42, %v1592_v21  ;;  %v1629_v31 = vadd.s32 %v1627_v25, %v1625_v22  ;;  %v1576_v58 = vsub.s32 %v3035_v32, %v1575_v28 }
 0x117   : > { %v1748_v55 = vmul.f32 %v3135_v60, %v3163_v46  ;;  %v1644_v34 = vmul.u32 52428, %v1640_v47  ;;  %v1643_v39 = vmul.u32 52429, %v1640_v47 }
 0x118   : > { %v1645_v63 = vmul.u32 52429, %v1641_v29  ;;  %vm1672_vm13 = vcmp.ne.s32.totalorder %v1576_v58, 0  ;;  %vm1682_vm14 = vcmp.lt.s32.totalorder %v1576_v58, 0  ;;  %v1702_v25 = vadd.s32 10, %v1576_v58 }
 0x119   : > { %v1757_v7 = vadd.f32 %v1756_v19, %v1748_v55  ;;  %v1773_v0 = vmul.f32 %v1748_v55, %v1748_v55  ;;  %v1303_v9 = vpop.f32.mrf.mxu2  ;;  %v976_v20 = vpop.f32.mrf.mxu0  ;;  %v1711_v55 = vsel %vm3210_vm11, %v1701_v62, %v3179_v51  ;;  %v1647_v4 = vshll.u32 %v1644_v34, 16  ;;  %vm3239_vm1 = vmand %vm1682_vm14, %vm1672_vm13 }
 0x11a   : > { %v1337_v12 = vpop.f32.mrf.mxu3  ;;  %v1010_v19 = vpop.f32.mrf.mxu1  ;;  %v1649_v13 = vshll.u32 %v1645_v63, 16  ;;  %vm3228_vm12 = vcmp.lt.s32.totalorder %v1711_v55, 8 }
 0x11b   : > { %v1782_v45 = vadd.f32 %v1781_v33, %v1773_v0  ;;  %v1338_v6 = vadd.f32 %v1337_v12, %v1303_v9  ;;  %v1011_v27 = vadd.f32 %v1010_v19, %v976_v20  ;;  %v1630_v0 = vadd.s32 %v1629_v31, %v1619_v8 }
 0x11c   : > { %v1646_v12 = vmul.u32 52428, %v1641_v29  ;;  %vm1651_vm15 = vc.u32 %v1643_v39, %v1647_v4  ;;  %v1653_v17 = vadd.s32 %v1647_v4, %v1643_v39  ;;  %v3246_v8 = vsel %vm3228_vm12, 1.0, %v2605_v10 }
 0x11d   : > { %v3199_v23 = vadd.f32 %v1338_v6, %v1028_v18  ;;  %v1029_v43 = vadd.f32 %v1011_v27, %v2978_v16  ;;  %v1621_v16 = vshrl.u32 %v3168_v50, 16  ;;  %v1648_v18 = vshrl.u32 %v1644_v34, 16 }
 0x11e   : > { %v1652_v6 = vsel %vm1651_vm15, 1, %v2604_v11  ;;  %vm1655_vm0 = vc.u32 %v1653_v17, %v1649_v13  ;;  %v1712_v34 = vsel %vm3239_vm1, %v1702_v25, %v1576_v58 }
 0x11f   : > { %v1749_v33 = vmul.f32 %v3186_v54, %v3199_v23  ;;  %v1631_v50 = vadd.s32 %v1630_v0, %v1621_v16  ;;  %v1654_v21 = vadd.s32 %v1652_v6, %v1646_v12  ;;  %v1656_v27 = vsel %vm1655_vm0, 1, %v2604_v11 }
 0x120   : > { %vm1722_vm4 = vcmp.lt.s32.totalorder %v1712_v34, 8 }
 0x121   : > { %v1758_v40 = vadd.f32 %v1757_v7, %v1749_v33  ;;  %v1774_v30 = vmul.f32 %v1749_v33, %v1749_v33  ;;  %v1306_v48 = vpop.f32.mrf.mxu2  ;;  %v978_v49 = vpop.f32.mrf.mxu0  ;;  %v1603_v7 = vshrl.u32 %v1602_v56, 3  ;;  %v1658_v56 = vadd.s32 %v1656_v27, %v1654_v21 }
 0x122   : > { %v1340_v52 = vpop.f32.mrf.mxu3  ;;  %v1012_v14 = vpop.f32.mrf.mxu1  ;;  %v1632_v31 = vshrl.u32 %v1631_v50, 3  ;;  %v3258_v0 = vsel %vm1722_vm4, 1.0, %v2605_v10 }
 0x123   : > { %v1783_v24 = vadd.f32 %v1782_v45, %v1774_v30  ;;  %v1341_v59 = vadd.f32 %v1340_v52, %v1306_v48  ;;  %v1013_v51 = vadd.f32 %v1012_v14, %v978_v49  ;;  %v1604_v45 = vmul.u32 10, %v1603_v7 }
 0x124   : > { %v1659_v30 = vadd.s32 %v1658_v56, %v1648_v18  ;;  %v1633_v52 = vmul.u32 10, %v1632_v31 }
 0x125   : > { %v3226_v9 = vadd.f32 %v1341_v59, %v1029_v43  ;;  %v1030_v28 = vadd.f32 %v1013_v51, %v2988_v41  ;;  %v1605_v11 = vsub.s32 %v3103_v35, %v1604_v45 }
 0x126   : > { %v1634_v4 = vsub.s32 %v3150_v2, %v1633_v52 }
 0x127   : > { %v1750_v32 = vmul.f32 %v3219_v53, %v3226_v9  ;;  %vm1673_vm2 = vcmp.ne.s32.totalorder %v1605_v11, 0  ;;  %vm1683_vm3 = vcmp.lt.s32.totalorder %v1605_v11, 0  ;;  %v1703_v14 = vadd.s32 10, %v1605_v11 }
 0x128   : > { %vm1693_vm5 = vmand %vm1683_vm3, %vm1673_vm2  ;;  %vm1674_vm6 = vcmp.ne.s32.totalorder %v1634_v4, 0  ;;  %vm1684_vm7 = vcmp.lt.s32.totalorder %v1634_v4, 0  ;;  %v1704_v6 = vadd.s32 10, %v1634_v4 }
 0x129   : > { %v1759_v20 = vadd.f32 %v1758_v40, %v1750_v32  ;;  %v1775_v19 = vmul.f32 %v1750_v32, %v1750_v32  ;;  %v1308_v42 = vpop.f32.mrf.mxu2  ;;  %v981_v1 = vpop.f32.mrf.mxu0  ;;  %v1650_v40 = vshrl.u32 %v1645_v63, 16  ;;  %v1713_v15 = vsel %vm1693_vm5, %v1703_v14, %v1605_v11  ;;  %vm1694_vm9 = vmand %vm1684_vm7, %vm1674_vm6 }
 0x12a   : > { %v1342_v22 = vpop.f32.mrf.mxu3  ;;  %v1015_v47 = vpop.f32.mrf.mxu1  ;;  %vm1723_vm8 = vcmp.lt.s32.totalorder %v1713_v15, 8 }
 0x12b   : > { %v1784_v62 = vadd.f32 %v1783_v24, %v1775_v19  ;;  %v1343_v33 = vadd.f32 %v1342_v22, %v1308_v42  ;;  %v1016_v48 = vadd.f32 %v1015_v47, %v981_v1  ;;  %v1660_v55 = vadd.s32 %v1659_v30, %v1650_v40 }
 0x12c   : > { %v3267_v22 = vsel %vm1723_vm8, 1.0, %v2605_v10 }
 0x12d   : > { %v3249_v41 = vadd.f32 %v1343_v33, %v1030_v28  ;;  %v1031_v63 = vadd.f32 %v1016_v48, %v2993_v5  ;;  %v1661_v12 = vshrl.u32 %v1660_v55, 3 }
 0x12f   : > { %v1751_v43 = vmul.f32 %v3246_v8, %v3249_v41  ;;  %v1662_v5 = vmul.u32 10, %v1661_v12 }
 0x131   : > { %v1760_v24 = vadd.f32 %v1759_v20, %v1751_v43  ;;  %v1776_v59 = vmul.f32 %v1751_v43, %v1751_v43  ;;  %v1311_v35 = vpop.f32.mrf.mxu2  ;;  %v983_v16 = vpop.f32.mrf.mxu0  ;;  %v1663_v25 = vsub.s32 %v3203_v26, %v1662_v5 }
 0x132   : > { %v1345_v49 = vpop.f32.mrf.mxu3  ;;  %v1017_v58 = vpop.f32.mrf.mxu1 }
 0x133   : > { %v1785_v39 = vadd.f32 %v1784_v62, %v1776_v59  ;;  %v1346_v7 = vadd.f32 %v1345_v49, %v1311_v35  ;;  %v1018_v51 = vadd.f32 %v1017_v58, %v983_v16  ;;  %v1714_v62 = vsel %vm1694_vm9, %v1704_v6, %v1634_v4 }
 0x134   : > { %vm1675_vm10 = vcmp.ne.s32.totalorder %v1663_v25, 0  ;;  %vm1685_vm11 = vcmp.lt.s32.totalorder %v1663_v25, 0  ;;  %vm1724_vm12 = vcmp.lt.s32.totalorder %v1714_v62, 8  ;;  %v1705_v56 = vadd.s32 10, %v1663_v25 }
 0x135   : > { %v3261_v13 = vadd.f32 %v1346_v7, %v1031_v63  ;;  %v1032_v2 = vadd.f32 %v1018_v51, %v3004_v36  ;;  %vm1695_vm13 = vmand %vm1685_vm11, %vm1675_vm10  ;;  %v3276_v26 = vsel %vm1724_vm12, 1.0, %v2605_v10 }
 0x136   : > { %v1715_v48 = vsel %vm1695_vm13, %v1705_v56, %v1663_v25 }
 0x137   : > { %v1752_v32 = vmul.f32 %v3258_v0, %v3261_v13  ;;  %vm1725_vm14 = vcmp.lt.s32.totalorder %v1715_v48, 8 }
 0x138   : > { %v3284_v63 = vsel %vm1725_vm14, 1.0, %v2605_v10 }
 0x139   : > { %v1761_v17 = vadd.f32 %v1760_v24, %v1752_v32  ;;  %v1777_v45 = vmul.f32 %v1752_v32, %v1752_v32  ;;  %v1313_v50 = vpop.f32.mrf.mxu2  ;;  %v986_v21 = vpop.f32.mrf.mxu0 }
 0x13a   : > { %v1347_v18 = vpop.f32.mrf.mxu3  ;;  %v1020_v42 = vpop.f32.mrf.mxu1 }
 0x13b   : > { %v1786_v20 = vadd.f32 %v1785_v39, %v1777_v45  ;;  %v1348_v19 = vadd.f32 %v1347_v18, %v1313_v50  ;;  %v1021_v33 = vadd.f32 %v1020_v42, %v986_v21 }
 0x13d   : > { %v3270_v27 = vadd.f32 %v1348_v19, %v1032_v2  ;;  %v1033_v31 = vadd.f32 %v1021_v33, %v3018_v3 }
 0x13f   : > { %v1753_v28 = vmul.f32 %v3267_v22, %v3270_v27 }
 0x141   : > { %v1762_v1 = vadd.f32 %v1761_v17, %v1753_v28  ;;  %v1778_v36 = vmul.f32 %v1753_v28, %v1753_v28  ;;  %v1316_v47 = vpop.f32.mrf.mxu2  ;;  %v988_v30 = vpop.f32.mrf.mxu0 }
 0x142   : > { %v1350_v29 = vpop.f32.mrf.mxu3  ;;  %v1022_v34 = vpop.f32.mrf.mxu1 }
 0x143   : > { %v1787_v11 = vadd.f32 %v1786_v20, %v1778_v36  ;;  %v1351_v40 = vadd.f32 %v1350_v29, %v1316_v47  ;;  %v1023_v55 = vadd.f32 %v1022_v34, %v988_v30 }
 0x145   : > { %v3278_v43 = vadd.f32 %v1351_v40, %v1033_v31  ;;  %v1034_v14 = vadd.f32 %v1023_v55, %v3040_v44 }
 0x147   : > { %v1754_v52 = vmul.f32 %v3276_v26, %v3278_v43 }
 0x149   : > { %v1763_v24 = vadd.f32 %v1762_v1, %v1754_v52  ;;  %v1779_v59 = vmul.f32 %v1754_v52, %v1754_v52  ;;  %v1318_v35 = vpop.f32.mrf.mxu2 }
 0x14a   : > { %v1352_v49 = vpop.f32.mrf.mxu3 }
 0x14b   : > { %v1788_v3 = vadd.f32 %v1787_v11, %v1779_v59  ;;  %v1353_v39 = vadd.f32 %v1352_v49, %v1318_v35 }
 0x14d   : > { %v1364_v7 = vadd.f32 %v1353_v39, %v1034_v14 }
 0x14f   : > { %v1755_v16 = vmul.f32 %v3284_v63, %v1364_v7 }
 0x151   : > { %v1764_v58 = vadd.f32 %v1763_v24, %v1755_v16  ;;  %v1780_v4 = vmul.f32 %v1755_v16, %v1755_v16 }
 0x153   : > { %v1765_v12 = vrot.slane %v1764_v58, 4  ;;  %v1789_v15 = vadd.f32 %v1788_v3, %v1780_v4 }
 0x155   : > { %v1766_v32 = vadd.f32 %v1765_v12, %v1764_v58  ;;  %v1790_v51 = vrot.slane %v1789_v15, 4 }
 0x157   : > { %v1767_v5 = vrot.slane %v1766_v32, 2  ;;  %v1791_v17 = vadd.f32 %v1790_v51, %v1789_v15 }
 0x159   : > { %v1768_v45 = vadd.f32 %v1767_v5, %v1766_v32  ;;  %v1792_v50 = vrot.slane %v1791_v17, 2 }
 0x15b   : > { %v1769_v18 = vrot.slane %v1768_v45, 1  ;;  %v1793_v6 = vadd.f32 %v1792_v50, %v1791_v17 }
 0x15d   : > { %v1770_v44 = vadd.f32 %v1769_v18, %v1768_v45  ;;  %v1794_v20 = vrot.slane %v1793_v6, 1 }
 0x15f   : > { %v1795_v2 = vadd.f32 %v1794_v20, %v1793_v6  ;;  %v1796_v10 = vmul.f32 0.015625, %v1770_v44 }
 0x161   : > { %v1797_v19 = vmul.f32 0.015625, %v1795_v2  ;;  %v1798_v21 = vmul.f32 %v1796_v10, %v1796_v10  ;;  %v1801_v42 = vsub.f32 %v3110_v38, %v1796_v10  ;;  %v1802_v25 = vsub.f32 %v3143_v61, %v1796_v10 }
 0x162   : > { %v1803_v62 = vsub.f32 %v3163_v46, %v1796_v10  ;;  %v1804_v28 = vsub.f32 %v3199_v23, %v1796_v10  ;;  %v1805_v33 = vsub.f32 %v3226_v9, %v1796_v10  ;;  %v1806_v1 = vsub.f32 %v3249_v41, %v1796_v10 }
 0x163   : > { %v1799_v36 = vsub.f32 %v1797_v19, %v1798_v21  ;;  %v1807_v47 = vsub.f32 %v3261_v13, %v1796_v10  ;;  %v1808_v29 = vsub.f32 %v3270_v27, %v1796_v10  ;;  %v1809_v56 = vsub.f32 %v3278_v43, %v1796_v10 }
 0x164   : > { %v1810_v11 = vsub.f32 %v1364_v7, %v1796_v10 }
 0x165   : > { %v1800_v31 = vmax.f32 %v1799_v36, 0.0 }
 0x167   : > { %v1811_v38 = vadd.f32 1e-05, %v1800_v31 }
 0x169   : > { %2578 = vrsqrt.f32 %v1811_v38  ;;  %vm1818_vm0 = vweird.f32 %v1811_v38 }
 0x16f   : > { %v2579_v61 = vpop.eup %2578 }
 0x170   : > { %v1813_v40 = vmul.f32 %v2579_v61, %v1811_v38  ;;  %vm1819_vm15 = vweird.f32 %v2579_v61 }
 0x171   : > { %vm1820_vm1 = vmor %vm1818_vm0, %vm1819_vm15 }
 0x172   : > { %v1814_v46 = vmul.f32 %v2579_v61, %v1813_v40 }
 0x174   : > { %v1815_v30 = vmul.f32 0.5, %v1814_v46 }
 0x176   : > { %v1816_v23 = vsub.f32 1.5, %v1815_v30 }
 0x178   : > { %v1817_v9 = vmul.f32 %v2579_v61, %v1816_v23 }
 0x17a   : > { %v1821_v41 = vsel %vm1820_vm1, %v2579_v61, %v1817_v9 }
 0x17b   : > { %v1822_v34 = vmul.f32 %v1821_v41, %v1801_v42  ;;  %v1823_v13 = vmul.f32 %v1821_v41, %v1802_v25  ;;  %v1824_v48 = vmul.f32 %v1821_v41, %v1803_v62  ;;  %v1825_v27 = vmul.f32 %v1821_v41, %v1804_v28 }
 0x17c   : > { %v1826_v52 = vmul.f32 %v1821_v41, %v1805_v33  ;;  %v1827_v43 = vmul.f32 %v1821_v41, %v1806_v1  ;;  %v1828_v55 = vmul.f32 %v1821_v41, %v1807_v47  ;;  %v1829_v24 = vmul.f32 %v1821_v41, %v1808_v29 }
 0x17d   : > { %v1830_v59 = vmul.f32 %v1821_v41, %v1809_v56  ;;  %v1831_v35 = vmul.f32 %v1821_v41, %v1810_v11  ;;  %vm1832_vm2 = vcmp.gt.f32.partialorder %v1822_v34, 0.0  ;;  %vm1833_vm3 = vcmp.gt.f32.partialorder %v1823_v13, 0.0 }
 0x17e   : > { %vm1834_vm4 = vcmp.gt.f32.partialorder %v1824_v48, 0.0  ;;  %vm1835_vm5 = vcmp.gt.f32.partialorder %v1825_v27, 0.0  ;;  %vm1836_vm6 = vcmp.gt.f32.partialorder %v1826_v52, 0.0  ;;  %vm1837_vm7 = vcmp.gt.f32.partialorder %v1827_v43, 0.0 }
 0x17f   : > { %vm1838_vm8 = vcmp.gt.f32.partialorder %v1828_v55, 0.0  ;;  %vm1839_vm9 = vcmp.gt.f32.partialorder %v1829_v24, 0.0  ;;  %vm1840_vm10 = vcmp.gt.f32.partialorder %v1830_v59, 0.0  ;;  %vm1841_vm11 = vcmp.gt.f32.partialorder %v1831_v35, 0.0 }
 0x180   : > { %v1842_v49 = vmul.f32 0.2, %v1822_v34  ;;  %v1843_v3 = vmul.f32 0.2, %v1823_v13  ;;  %v1844_v14 = vmul.f32 0.2, %v1824_v48 }
 0x181   : > { %v1845_v39 = vmul.f32 0.2, %v1825_v27  ;;  %v1846_v7 = vmul.f32 0.2, %v1826_v52  ;;  %v1847_v16 = vmul.f32 0.2, %v1827_v43 }
 0x182   : > { %v1848_v58 = vmul.f32 0.2, %v1828_v55  ;;  %v1849_v4 = vmul.f32 0.2, %v1829_v24  ;;  %v1850_v12 = vmul.f32 0.2, %v1830_v59  ;;  %v1852_v15 = vsel %vm1832_vm2, %v1822_v34, %v1842_v49 }
 0x183   : > { %v1851_v32 = vmul.f32 0.2, %v1831_v35  ;;  %v1853_v51 = vsel %vm1833_vm3, %v1823_v13, %v1843_v3  ;;  %v1854_v5 = vsel %vm1834_vm4, %v1824_v48, %v1844_v14  ;;  %v1855_v17 = vsel %vm1835_vm5, %v1825_v27, %v1845_v39 }
 0x184   : > { %v1856_v45 = vsel %vm1836_vm6, %v1826_v52, %v1846_v7  ;;  %v1857_v50 = vsel %vm1837_vm7, %v1827_v43, %v1847_v16  ;;  %v1858_v18 = vsel %vm1838_vm8, %v1828_v55, %v1848_v58  ;;  %v1859_v6 = vsel %vm1839_vm9, %v1829_v24, %v1849_v4 }
 0x185   : > { %v1860_v44 = vsel %vm1840_vm10, %v1830_v59, %v1850_v12  ;;  %v1861_v20 = vsel %vm1841_vm11, %v1831_v35, %v1851_v32  ;;  %v1862_v2 = vmul.f32 %v3108_v37, %v1852_v15  ;;  %v1863_v10 = vmul.f32 %v3127_v57, %v1853_v51 }
 0x186   : > { %v1864_v19 = vmul.f32 %v3135_v60, %v1854_v5  ;;  %v1865_v21 = vmul.f32 %v3186_v54, %v1855_v17  ;;  %v1866_v42 = vmul.f32 %v3219_v53, %v1856_v45  ;;  %v1867_v25 = vmul.f32 %v3246_v8, %v1857_v50 }
 0x187   : > { %v1868_v62 = vmul.f32 %v3258_v0, %v1858_v18  ;;  %v1869_v28 = vmul.f32 %v3267_v22, %v1859_v6  ;;  %v1870_v37 = vmul.f32 %v3276_v26, %v1860_v44  ;;  %v1871_v57 = vmul.f32 %v3284_v63, %v1861_v20 }
 0x188   : > { %v2524_v33 = vpack.c.bf16 %v1863_v10, %v1862_v2  ;;  %v2529_v60 = vpack.c.bf16 %v1865_v21, %v1864_v19  ;;  %v2534_v1 = vpack.c.bf16 %v1867_v25, %v1866_v42 }
 0x189   : > { %v2539_v54 = vpack.c.bf16 %v1869_v28, %v1868_v62  ;;  %v2544_v36 = vpack.c.bf16 %v1871_v57, %v1870_v37 }
 0x18a   : > { %2525 = vst [vmem:[%s180_s30] sm:$0xff] %v2524_v33  }
 0x18b   : > { %2546 = vst [vmem:[%s180_s30 + $0x8] sm:$0xff] %v2529_v60  }
 0x18c   : > { %2547 = vst [vmem:[%s180_s30 + $0x10] sm:$0xff] %v2534_v1  }
 0x18d   : > { %2548 = vst [vmem:[%s180_s30 + $0x18] sm:$0xff] %v2539_v54  }
 0x18e   : > { %2549 = vst [vmem:[%s180_s30 + $0x20] sm:$0xff] %v2544_v36  }
 0x18f PF: > { %s12_s11 = sadd.s32 1, %s2602_s11   ;;  %s3354_s9 = smov %s2598_s10 }
 0x190   : > { %p9_p5 = scmp.ge.s32.totalorder %s12_s11, 4   ;;  %s3355_s10 = smov %s3357_s12 }
 0x192   :  { %11 = sbr.rel (!%p9_p5) target bundleno = 2 (0x2), region = 64 }

// kernel: a_call__.6
= control target key start
LH: loop header
LB: loop body
LE: loop exit
PB: predicated region body
PF: predicated region fallthrough
CT: control target
= control target key end

     0   :  { %s5208_s9 = smov 0   ;;  %s5210_s10 = smov 0   ;;  %s6193_s0 = inlined_call_operand.vmem [shape: bf16[2,36,512], index: 0, kind: input, shape index: {}]   ;;  %s6194_s1 = inlined_call_operand.vmem [shape: bf16[4,512,256], index: 1, kind: input, shape index: {}]   ;;  %s6195_s2 = inlined_call_operand.vmem [shape: bf16[2,24,256], index: 2, kind: output, shape index: {}]  }
   0x1   :  { %s5212_s11 = smov 0   ;;  %s5214_s12 = smov 0  }
   0x2   :  { %s5216_s13 = smov 0   ;;  %s5218_s14 = smov 0  }
   0x3   :  { %s5220_s15 = smov 0   ;;  %s5222_s16 = smov 0  }
   0x4   :  { %s5224_s17 = smov 0  }
   0x5 LB: > { %s4188_s18 = sadd.s32 4294967295, %s5189_s17   ;;  %s21_s19 = sadd.s32 1, %s5181_s15  ;;  %s5189_s17 = sphi %s5224_s17, %s12_s17   ;;  %s5185_s16 = sphi %s5222_s16, %s6206_s16   ;;  %s5181_s15 = sphi %s5220_s15, %s6205_s15   ;;  %s5177_s14 = sphi %s5218_s14, %s6204_s14   ;;  %s5173_s13 = sphi %s5216_s13, %s6203_s13   ;;  %s5169_s12 = sphi %s5214_s12, %s6202_s12   ;;  %s5165_s11 = sphi %s5212_s11, %s6201_s11   ;;  %s5161_s10 = sphi %s5210_s10, %s6200_s10   ;;  %s5157_s9 = sphi %s5208_s9, %s6199_s9  }
   0x6   : > { %p22_p0 = scmp.ge.s32.totalorder %s21_s19, 2  ;;  %s24_s20 = sadd.s32 1, %s5185_s16 }
   0x7   : > { %s57_s21 = sadd.s32 1, %s5169_s12  ;;  %p64_p1 = scmp.ne.s32.totalorder %s5169_s12, %s5165_s11 }
   0x8   : > { %s6208_s19 = smov (%p22_p0, %s21_s19), 0  ;;  %s6210_s20 = smov (!%p22_p0, %s24_s20), %s5185_s16 }
   0x9   : > { %s54_s22 = ssub.s32 %s5181_s15, %s6208_s19  ;;  %p65_p2 = scmp.eq.s32.totalorder %s5189_s17, 0 }
   0xa   : > { %p26_p3 = scmp.ge.s32.totalorder %s6210_s20, 2  ;;  %p55_p4 = scmp.eq.s32.totalorder %s54_s22, 0 }
   0xb   : > { %p66_p5 = por %p65_p2, %p64_p1  ;;  %s85_s23 = sadd.s32 1, %s5161_s10 }
   0xc   : > { %s6212_s20 = smov (%p26_p3, %s6210_s20), 0  ;;  %p95_p6 = scmp.ne.s32.totalorder %s5161_s10, %s5157_s9 }
   0xd   : > { %s5269_s24 = scalar_select %p55_p4, %s5169_s12, %s57_s21  }
   0xe   : > { %s80_s25 = ssub.s32 %s5185_s16, %s6212_s20  ;;  %p96_p7 = scmp.eq.s32.totalorder %s4188_s18, 3 }
   0xf   : > { %s82_s26 = sor.u32 %s80_s25, %s54_s22  ;;  %p4191_p10 = scmp.ge.s32.totalorder %s5189_s17, 4 }
  0x10   : > { %p83_p8 = scmp.eq.s32.totalorder %s82_s26, 0  ;;  %p5275_p9 = por %p96_p7, %p95_p6 }
  0x11   : > { %118 = sbr.rel (%p4191_p10) target bundleno = 282 (0x11a), region = 16 }
  0x12   : > { %s5280_s28 = scalar_select %p83_p8, %s5161_s10, %s85_s23  }
  0x16   : > { %129 = sbr.rel (!%p66_p5) target bundleno = 282 (0x11a), region = 24  ;;  %s131_s29 = sand.u32 (%p66_p5), 1, %s5169_s12  }
  0x17   : > { %s4193_s30 = sshll.u32 (%p66_p5), %s5181_s15, 2  ;;  %s4192_s3 = sshll.u32 (%p66_p5), %s131_s29, 10 }
  0x18   : > { %s5288_s6 = scalar_lea.vmem (%p66_p5), %s6194_s1, %s4193_s30  ;;  %s5292_s7 = scalar_lea.vmem (%p66_p5), [#allocation2], %s4192_s3 }
  0x19   : > { %v152_v0 = vld [vmem:[%s5288_s6] sm:$0xf] (%p66_p5)  ;;  %v154_v1 = vld [vmem:[%s5288_s6 + $0x8] sm:$0xf] (%p66_p5)  ;;  %v156_v2 = vld [vmem:[%s5288_s6 + $0x10] sm:$0xf] (%p66_p5) }
  0x1a   : > { %153 = vst [vmem:[%s5292_s7] sm:$0xf] (%p66_p5), %v152_v0  ;;  %v158_v3 = vld [vmem:[%s5288_s6 + $0x18] sm:$0xf] (%p66_p5)  ;;  %v160_v4 = vld [vmem:[%s5288_s6 + $0x20] sm:$0xf] (%p66_p5) }
  0x1b   : > { %155 = vst [vmem:[%s5292_s7 + $0x4] sm:$0xf] %v154_v1  ;;  %v162_v5 = vld [vmem:[%s5288_s6 + $0x28] sm:$0xf]  ;;  %v164_v6 = vld [vmem:[%s5288_s6 + $0x30] sm:$0xf] }
  0x1c   : > { %157 = vst [vmem:[%s5292_s7 + $0x8] sm:$0xf] %v156_v2  ;;  %v166_v7 = vld [vmem:[%s5288_s6 + $0x38] sm:$0xf]  ;;  %v168_v8 = vld [vmem:[%s5288_s6 + $0x40] sm:$0xf] }
  0x1d   : > { %159 = vst [vmem:[%s5292_s7 + $0xc] sm:$0xf] %v158_v3  ;;  %v170_v9 = vld [vmem:[%s5288_s6 + $0x48] sm:$0xf]  ;;  %v172_v10 = vld [vmem:[%s5288_s6 + $0x50] sm:$0xf] }
  0x1e   : > { %161 = vst [vmem:[%s5292_s7 + $0x10] sm:$0xf] %v160_v4  ;;  %v174_v11 = vld [vmem:[%s5288_s6 + $0x58] sm:$0xf]  ;;  %v176_v12 = vld [vmem:[%s5288_s6 + $0x60] sm:$0xf] }
  0x1f   : > { %163 = vst [vmem:[%s5292_s7 + $0x14] sm:$0xf] %v162_v5  ;;  %v178_v13 = vld [vmem:[%s5288_s6 + $0x68] sm:$0xf]  ;;  %v180_v14 = vld [vmem:[%s5288_s6 + $0x70] sm:$0xf] }
  0x20   : > { %165 = vst [vmem:[%s5292_s7 + $0x18] sm:$0xf] %v164_v6  ;;  %v182_v15 = vld [vmem:[%s5288_s6 + $0x78] sm:$0xf]  ;;  %v184_v16 = vld [vmem:[%s5288_s6 + $0x80] sm:$0xf] }
  0x21   : > { %167 = vst [vmem:[%s5292_s7 + $0x1c] sm:$0xf] %v166_v7  ;;  %v186_v17 = vld [vmem:[%s5288_s6 + $0x88] sm:$0xf]  ;;  %v188_v18 = vld [vmem:[%s5288_s6 + $0x90] sm:$0xf] }
  0x22   : > { %169 = vst [vmem:[%s5292_s7 + $0x20] sm:$0xf] %v168_v8  ;;  %v190_v19 = vld [vmem:[%s5288_s6 + $0x98] sm:$0xf]  ;;  %v192_v20 = vld [vmem:[%s5288_s6 + $0xa0] sm:$0xf] }
  0x23   : > { %171 = vst [vmem:[%s5292_s7 + $0x24] sm:$0xf] %v170_v9  ;;  %v194_v21 = vld [vmem:[%s5288_s6 + $0xa8] sm:$0xf]  ;;  %v196_v22 = vld [vmem:[%s5288_s6 + $0xb0] sm:$0xf] }
  0x24   : > { %173 = vst [vmem:[%s5292_s7 + $0x28] sm:$0xf] %v172_v10  ;;  %v198_v23 = vld [vmem:[%s5288_s6 + $0xb8] sm:$0xf]  ;;  %v200_v24 = vld [vmem:[%s5288_s6 + $0xc0] sm:$0xf] }
  0x25   : > { %175 = vst [vmem:[%s5292_s7 + $0x2c] sm:$0xf] %v174_v11  ;;  %v202_v25 = vld [vmem:[%s5288_s6 + $0xc8] sm:$0xf]  ;;  %v204_v26 = vld [vmem:[%s5288_s6 + $0xd0] sm:$0xf] }
  0x26   : > { %177 = vst [vmem:[%s5292_s7 + $0x30] sm:$0xf] %v176_v12  ;;  %v206_v27 = vld [vmem:[%s5288_s6 + $0xd8] sm:$0xf]  ;;  %v208_v28 = vld [vmem:[%s5288_s6 + $0xe0] sm:$0xf] }
  0x27   : > { %179 = vst [vmem:[%s5292_s7 + $0x34] sm:$0xf] %v178_v13  ;;  %v210_v29 = vld [vmem:[%s5288_s6 + $0xe8] sm:$0xf]  ;;  %v212_v30 = vld [vmem:[%s5288_s6 + $0xf0] sm:$0xf] }
  0x28   : > { %181 = vst [vmem:[%s5292_s7 + $0x38] sm:$0xf] %v180_v14  ;;  %v214_v31 = vld [vmem:[%s5288_s6 + $0xf8] sm:$0xf]  ;;  %v216_v32 = vld [vmem:[%s5288_s6 + $0x100] sm:$0xf] }
  0x29   : > { %183 = vst [vmem:[%s5292_s7 + $0x3c] sm:$0xf] %v182_v15  ;;  %v218_v33 = vld [vmem:[%s5288_s6 + $0x108] sm:$0xf]  ;;  %v220_v34 = vld [vmem:[%s5288_s6 + $0x110] sm:$0xf] }
  0x2a   : > { %185 = vst [vmem:[%s5292_s7 + $0x40] sm:$0xf] %v184_v16  ;;  %v222_v35 = vld [vmem:[%s5288_s6 + $0x118] sm:$0xf]  ;;  %v224_v36 = vld [vmem:[%s5288_s6 + $0x120] sm:$0xf] }
  0x2b   : > { %187 = vst [vmem:[%s5292_s7 + $0x44] sm:$0xf] %v186_v17  ;;  %v226_v37 = vld [vmem:[%s5288_s6 + $0x128] sm:$0xf]  ;;  %v228_v38 = vld [vmem:[%s5288_s6 + $0x130] sm:$0xf] }
  0x2c   : > { %189 = vst [vmem:[%s5292_s7 + $0x48] sm:$0xf] %v188_v18  ;;  %v230_v39 = vld [vmem:[%s5288_s6 + $0x138] sm:$0xf]  ;;  %v232_v40 = vld [vmem:[%s5288_s6 + $0x140] sm:$0xf] }
  0x2d   : > { %191 = vst [vmem:[%s5292_s7 + $0x4c] sm:$0xf] %v190_v19  ;;  %v234_v41 = vld [vmem:[%s5288_s6 + $0x148] sm:$0xf]  ;;  %v236_v42 = vld [vmem:[%s5288_s6 + $0x150] sm:$0xf] }
  0x2e   : > { %193 = vst [vmem:[%s5292_s7 + $0x50] sm:$0xf] %v192_v20  ;;  %v238_v43 = vld [vmem:[%s5288_s6 + $0x158] sm:$0xf]  ;;  %v240_v44 = vld [vmem:[%s5288_s6 + $0x160] sm:$0xf] }
  0x2f   : > { %195 = vst [vmem:[%s5292_s7 + $0x54] sm:$0xf] %v194_v21  ;;  %v242_v45 = vld [vmem:[%s5288_s6 + $0x168] sm:$0xf]  ;;  %v244_v46 = vld [vmem:[%s5288_s6 + $0x170] sm:$0xf] }
  0x30   : > { %197 = vst [vmem:[%s5292_s7 + $0x58] sm:$0xf] %v196_v22  ;;  %v246_v47 = vld [vmem:[%s5288_s6 + $0x178] sm:$0xf]  ;;  %v248_v48 = vld [vmem:[%s5288_s6 + $0x180] sm:$0xf] }
  0x31   : > { %199 = vst [vmem:[%s5292_s7 + $0x5c] sm:$0xf] %v198_v23  ;;  %v250_v49 = vld [vmem:[%s5288_s6 + $0x188] sm:$0xf]  ;;  %v252_v50 = vld [vmem:[%s5288_s6 + $0x190] sm:$0xf] }
  0x32   : > { %201 = vst [vmem:[%s5292_s7 + $0x60] sm:$0xf] %v200_v24  ;;  %v254_v51 = vld [vmem:[%s5288_s6 + $0x198] sm:$0xf]  ;;  %v256_v52 = vld [vmem:[%s5288_s6 + $0x1a0] sm:$0xf] }
  0x33   : > { %203 = vst [vmem:[%s5292_s7 + $0x64] sm:$0xf] %v202_v25  ;;  %v258_v53 = vld [vmem:[%s5288_s6 + $0x1a8] sm:$0xf]  ;;  %v260_v54 = vld [vmem:[%s5288_s6 + $0x1b0] sm:$0xf] }
  0x34   : > { %205 = vst [vmem:[%s5292_s7 + $0x68] sm:$0xf] %v204_v26  ;;  %v262_v55 = vld [vmem:[%s5288_s6 + $0x1b8] sm:$0xf]  ;;  %v264_v56 = vld [vmem:[%s5288_s6 + $0x1c0] sm:$0xf] }
  0x35   : > { %207 = vst [vmem:[%s5292_s7 + $0x6c] sm:$0xf] %v206_v27  ;;  %v266_v57 = vld [vmem:[%s5288_s6 + $0x1c8] sm:$0xf]  ;;  %v268_v58 = vld [vmem:[%s5288_s6 + $0x1d0] sm:$0xf] }
  0x36   : > { %209 = vst [vmem:[%s5292_s7 + $0x70] sm:$0xf] %v208_v28  ;;  %v270_v59 = vld [vmem:[%s5288_s6 + $0x1d8] sm:$0xf]  ;;  %v272_v60 = vld [vmem:[%s5288_s6 + $0x1e0] sm:$0xf] }
  0x37   : > { %211 = vst [vmem:[%s5292_s7 + $0x74] sm:$0xf] %v210_v29  ;;  %v274_v61 = vld [vmem:[%s5288_s6 + $0x1e8] sm:$0xf]  ;;  %v276_v62 = vld [vmem:[%s5288_s6 + $0x1f0] sm:$0xf] }
  0x38   : > { %213 = vst [vmem:[%s5292_s7 + $0x78] sm:$0xf] %v212_v30  ;;  %v278_v63 = vld [vmem:[%s5288_s6 + $0x1f8] sm:$0xf]  ;;  %v280_v0 = vld [vmem:[%s5288_s6 + $0x200] sm:$0xf] }
  0x39   : > { %215 = vst [vmem:[%s5292_s7 + $0x7c] sm:$0xf] %v214_v31  ;;  %v282_v1 = vld [vmem:[%s5288_s6 + $0x208] sm:$0xf]  ;;  %v284_v2 = vld [vmem:[%s5288_s6 + $0x210] sm:$0xf] }
  0x3a   : > { %217 = vst [vmem:[%s5292_s7 + $0x80] sm:$0xf] %v216_v32  ;;  %v286_v3 = vld [vmem:[%s5288_s6 + $0x218] sm:$0xf]  ;;  %v288_v4 = vld [vmem:[%s5288_s6 + $0x220] sm:$0xf] }
  0x3b   : > { %219 = vst [vmem:[%s5292_s7 + $0x84] sm:$0xf] %v218_v33  ;;  %v290_v5 = vld [vmem:[%s5288_s6 + $0x228] sm:$0xf]  ;;  %v292_v6 = vld [vmem:[%s5288_s6 + $0x230] sm:$0xf] }
  0x3c   : > { %221 = vst [vmem:[%s5292_s7 + $0x88] sm:$0xf] %v220_v34  ;;  %v294_v7 = vld [vmem:[%s5288_s6 + $0x238] sm:$0xf]  ;;  %v296_v8 = vld [vmem:[%s5288_s6 + $0x240] sm:$0xf] }
  0x3d   : > { %223 = vst [vmem:[%s5292_s7 + $0x8c] sm:$0xf] %v222_v35  ;;  %v298_v9 = vld [vmem:[%s5288_s6 + $0x248] sm:$0xf]  ;;  %v300_v10 = vld [vmem:[%s5288_s6 + $0x250] sm:$0xf] }
  0x3e   : > { %225 = vst [vmem:[%s5292_s7 + $0x90] sm:$0xf] %v224_v36  ;;  %v302_v11 = vld [vmem:[%s5288_s6 + $0x258] sm:$0xf]  ;;  %v304_v12 = vld [vmem:[%s5288_s6 + $0x260] sm:$0xf] }
  0x3f   : > { %227 = vst [vmem:[%s5292_s7 + $0x94] sm:$0xf] %v226_v37  ;;  %v306_v13 = vld [vmem:[%s5288_s6 + $0x268] sm:$0xf]  ;;  %v308_v14 = vld [vmem:[%s5288_s6 + $0x270] sm:$0xf] }
  0x40   : > { %229 = vst [vmem:[%s5292_s7 + $0x98] sm:$0xf] %v228_v38  ;;  %v310_v15 = vld [vmem:[%s5288_s6 + $0x278] sm:$0xf]  ;;  %v312_v16 = vld [vmem:[%s5288_s6 + $0x280] sm:$0xf] }
  0x41   : > { %231 = vst [vmem:[%s5292_s7 + $0x9c] sm:$0xf] %v230_v39  ;;  %v314_v17 = vld [vmem:[%s5288_s6 + $0x288] sm:$0xf]  ;;  %v316_v18 = vld [vmem:[%s5288_s6 + $0x290] sm:$0xf] }
  0x42   : > { %233 = vst [vmem:[%s5292_s7 + $0xa0] sm:$0xf] %v232_v40  ;;  %v318_v19 = vld [vmem:[%s5288_s6 + $0x298] sm:$0xf]  ;;  %v320_v20 = vld [vmem:[%s5288_s6 + $0x2a0] sm:$0xf] }
  0x43   : > { %235 = vst [vmem:[%s5292_s7 + $0xa4] sm:$0xf] %v234_v41  ;;  %v322_v21 = vld [vmem:[%s5288_s6 + $0x2a8] sm:$0xf]  ;;  %v324_v22 = vld [vmem:[%s5288_s6 + $0x2b0] sm:$0xf] }
  0x44   : > { %237 = vst [vmem:[%s5292_s7 + $0xa8] sm:$0xf] %v236_v42  ;;  %v326_v23 = vld [vmem:[%s5288_s6 + $0x2b8] sm:$0xf]  ;;  %v328_v24 = vld [vmem:[%s5288_s6 + $0x2c0] sm:$0xf] }
  0x45   : > { %239 = vst [vmem:[%s5292_s7 + $0xac] sm:$0xf] %v238_v43  ;;  %v330_v25 = vld [vmem:[%s5288_s6 + $0x2c8] sm:$0xf]  ;;  %v332_v26 = vld [vmem:[%s5288_s6 + $0x2d0] sm:$0xf] }
  0x46   : > { %241 = vst [vmem:[%s5292_s7 + $0xb0] sm:$0xf] %v240_v44  ;;  %v334_v27 = vld [vmem:[%s5288_s6 + $0x2d8] sm:$0xf]  ;;  %v336_v28 = vld [vmem:[%s5288_s6 + $0x2e0] sm:$0xf] }
  0x47   : > { %243 = vst [vmem:[%s5292_s7 + $0xb4] sm:$0xf] %v242_v45  ;;  %v338_v29 = vld [vmem:[%s5288_s6 + $0x2e8] sm:$0xf]  ;;  %v340_v30 = vld [vmem:[%s5288_s6 + $0x2f0] sm:$0xf] }
  0x48   : > { %245 = vst [vmem:[%s5292_s7 + $0xb8] sm:$0xf] %v244_v46  ;;  %v342_v31 = vld [vmem:[%s5288_s6 + $0x2f8] sm:$0xf]  ;;  %v344_v32 = vld [vmem:[%s5288_s6 + $0x300] sm:$0xf] }
  0x49   : > { %247 = vst [vmem:[%s5292_s7 + $0xbc] sm:$0xf] %v246_v47  ;;  %v346_v33 = vld [vmem:[%s5288_s6 + $0x308] sm:$0xf]  ;;  %v348_v34 = vld [vmem:[%s5288_s6 + $0x310] sm:$0xf] }
  0x4a   : > { %249 = vst [vmem:[%s5292_s7 + $0xc0] sm:$0xf] %v248_v48  ;;  %v350_v35 = vld [vmem:[%s5288_s6 + $0x318] sm:$0xf]  ;;  %v352_v36 = vld [vmem:[%s5288_s6 + $0x320] sm:$0xf] }
  0x4b   : > { %251 = vst [vmem:[%s5292_s7 + $0xc4] sm:$0xf] %v250_v49  ;;  %v354_v37 = vld [vmem:[%s5288_s6 + $0x328] sm:$0xf]  ;;  %v356_v38 = vld [vmem:[%s5288_s6 + $0x330] sm:$0xf] }
  0x4c   : > { %253 = vst [vmem:[%s5292_s7 + $0xc8] sm:$0xf] %v252_v50  ;;  %v358_v39 = vld [vmem:[%s5288_s6 + $0x338] sm:$0xf]  ;;  %v360_v40 = vld [vmem:[%s5288_s6 + $0x340] sm:$0xf] }
  0x4d   : > { %255 = vst [vmem:[%s5292_s7 + $0xcc] sm:$0xf] %v254_v51  ;;  %v362_v41 = vld [vmem:[%s5288_s6 + $0x348] sm:$0xf]  ;;  %v364_v42 = vld [vmem:[%s5288_s6 + $0x350] sm:$0xf] }
  0x4e   : > { %257 = vst [vmem:[%s5292_s7 + $0xd0] sm:$0xf] %v256_v52  ;;  %v366_v43 = vld [vmem:[%s5288_s6 + $0x358] sm:$0xf]  ;;  %v368_v44 = vld [vmem:[%s5288_s6 + $0x360] sm:$0xf] }
  0x4f   : > { %259 = vst [vmem:[%s5292_s7 + $0xd4] sm:$0xf] %v258_v53  ;;  %v370_v45 = vld [vmem:[%s5288_s6 + $0x368] sm:$0xf]  ;;  %v372_v46 = vld [vmem:[%s5288_s6 + $0x370] sm:$0xf] }
  0x50   : > { %261 = vst [vmem:[%s5292_s7 + $0xd8] sm:$0xf] %v260_v54  ;;  %v374_v47 = vld [vmem:[%s5288_s6 + $0x378] sm:$0xf]  ;;  %v376_v48 = vld [vmem:[%s5288_s6 + $0x380] sm:$0xf] }
  0x51   : > { %263 = vst [vmem:[%s5292_s7 + $0xdc] sm:$0xf] %v262_v55  ;;  %v378_v49 = vld [vmem:[%s5288_s6 + $0x388] sm:$0xf]  ;;  %v380_v50 = vld [vmem:[%s5288_s6 + $0x390] sm:$0xf] }
  0x52   : > { %265 = vst [vmem:[%s5292_s7 + $0xe0] sm:$0xf] %v264_v56  ;;  %v382_v51 = vld [vmem:[%s5288_s6 + $0x398] sm:$0xf]  ;;  %v384_v52 = vld [vmem:[%s5288_s6 + $0x3a0] sm:$0xf] }
  0x53   : > { %267 = vst [vmem:[%s5292_s7 + $0xe4] sm:$0xf] %v266_v57  ;;  %v386_v53 = vld [vmem:[%s5288_s6 + $0x3a8] sm:$0xf]  ;;  %v388_v54 = vld [vmem:[%s5288_s6 + $0x3b0] sm:$0xf] }
  0x54   : > { %269 = vst [vmem:[%s5292_s7 + $0xe8] sm:$0xf] %v268_v58  ;;  %v390_v55 = vld [vmem:[%s5288_s6 + $0x3b8] sm:$0xf]  ;;  %v392_v56 = vld [vmem:[%s5288_s6 + $0x3c0] sm:$0xf] }
  0x55   : > { %271 = vst [vmem:[%s5292_s7 + $0xec] sm:$0xf] %v270_v59  ;;  %v394_v57 = vld [vmem:[%s5288_s6 + $0x3c8] sm:$0xf]  ;;  %v396_v58 = vld [vmem:[%s5288_s6 + $0x3d0] sm:$0xf] }
  0x56   : > { %273 = vst [vmem:[%s5292_s7 + $0xf0] sm:$0xf] %v272_v60  ;;  %v398_v59 = vld [vmem:[%s5288_s6 + $0x3d8] sm:$0xf]  ;;  %v400_v60 = vld [vmem:[%s5288_s6 + $0x3e0] sm:$0xf] }
  0x57   : > { %275 = vst [vmem:[%s5292_s7 + $0xf4] sm:$0xf] %v274_v61  ;;  %v402_v61 = vld [vmem:[%s5288_s6 + $0x3e8] sm:$0xf] }
  0x58   : > { %277 = vst [vmem:[%s5292_s7 + $0xf8] sm:$0xf] %v276_v62  ;;  %v404_v62 = vld [vmem:[%s5288_s6 + $0x3f0] sm:$0xf] }
  0x59   : > { %279 = vst [vmem:[%s5292_s7 + $0xfc] sm:$0xf] %v278_v63  ;;  %v406_v63 = vld [vmem:[%s5288_s6 + $0x3f8] sm:$0xf] }
  0x5a   : > { %281 = vst [vmem:[%s5292_s7 + $0x100] sm:$0xf] %v280_v0  ;;  %v408_v0 = vld [vmem:[%s5288_s6 + $0x400] sm:$0xf] }
  0x5b   : > { %283 = vst [vmem:[%s5292_s7 + $0x104] sm:$0xf] %v282_v1  ;;  %v410_v1 = vld [vmem:[%s5288_s6 + $0x408] sm:$0xf] }
  0x5c   : > { %285 = vst [vmem:[%s5292_s7 + $0x108] sm:$0xf] %v284_v2  ;;  %v412_v2 = vld [vmem:[%s5288_s6 + $0x410] sm:$0xf] }
  0x5d   : > { %287 = vst [vmem:[%s5292_s7 + $0x10c] sm:$0xf] %v286_v3  ;;  %v414_v3 = vld [vmem:[%s5288_s6 + $0x418] sm:$0xf] }
  0x5e   : > { %289 = vst [vmem:[%s5292_s7 + $0x110] sm:$0xf] %v288_v4  ;;  %v416_v4 = vld [vmem:[%s5288_s6 + $0x420] sm:$0xf] }
  0x5f   : > { %291 = vst [vmem:[%s5292_s7 + $0x114] sm:$0xf] %v290_v5  ;;  %v418_v5 = vld [vmem:[%s5288_s6 + $0x428] sm:$0xf] }
  0x60   : > { %293 = vst [vmem:[%s5292_s7 + $0x118] sm:$0xf] %v292_v6  ;;  %v420_v6 = vld [vmem:[%s5288_s6 + $0x430] sm:$0xf] }
  0x61   : > { %295 = vst [vmem:[%s5292_s7 + $0x11c] sm:$0xf] %v294_v7  ;;  %v422_v7 = vld [vmem:[%s5288_s6 + $0x438] sm:$0xf] }
  0x62   : > { %297 = vst [vmem:[%s5292_s7 + $0x120] sm:$0xf] %v296_v8  ;;  %v424_v8 = vld [vmem:[%s5288_s6 + $0x440] sm:$0xf] }
  0x63   : > { %299 = vst [vmem:[%s5292_s7 + $0x124] sm:$0xf] %v298_v9  ;;  %v426_v9 = vld [vmem:[%s5288_s6 + $0x448] sm:$0xf] }
  0x64   : > { %301 = vst [vmem:[%s5292_s7 + $0x128] sm:$0xf] %v300_v10  ;;  %v428_v10 = vld [vmem:[%s5288_s6 + $0x450] sm:$0xf] }
  0x65   : > { %303 = vst [vmem:[%s5292_s7 + $0x12c] sm:$0xf] %v302_v11  ;;  %v430_v11 = vld [vmem:[%s5288_s6 + $0x458] sm:$0xf] }
  0x66   : > { %305 = vst [vmem:[%s5292_s7 + $0x130] sm:$0xf] %v304_v12  ;;  %v432_v12 = vld [vmem:[%s5288_s6 + $0x460] sm:$0xf] }
  0x67   : > { %307 = vst [vmem:[%s5292_s7 + $0x134] sm:$0xf] %v306_v13  ;;  %v434_v13 = vld [vmem:[%s5288_s6 + $0x468] sm:$0xf] }
  0x68   : > { %309 = vst [vmem:[%s5292_s7 + $0x138] sm:$0xf] %v308_v14  ;;  %v436_v14 = vld [vmem:[%s5288_s6 + $0x470] sm:$0xf] }
  0x69   : > { %311 = vst [vmem:[%s5292_s7 + $0x13c] sm:$0xf] %v310_v15  ;;  %v438_v15 = vld [vmem:[%s5288_s6 + $0x478] sm:$0xf] }
  0x6a   : > { %313 = vst [vmem:[%s5292_s7 + $0x140] sm:$0xf] %v312_v16  ;;  %v440_v16 = vld [vmem:[%s5288_s6 + $0x480] sm:$0xf] }
  0x6b   : > { %315 = vst [vmem:[%s5292_s7 + $0x144] sm:$0xf] %v314_v17  ;;  %v442_v17 = vld [vmem:[%s5288_s6 + $0x488] sm:$0xf] }
  0x6c   : > { %317 = vst [vmem:[%s5292_s7 + $0x148] sm:$0xf] %v316_v18  ;;  %v444_v18 = vld [vmem:[%s5288_s6 + $0x490] sm:$0xf] }
  0x6d   : > { %319 = vst [vmem:[%s5292_s7 + $0x14c] sm:$0xf] %v318_v19  ;;  %v446_v19 = vld [vmem:[%s5288_s6 + $0x498] sm:$0xf] }
  0x6e   : > { %321 = vst [vmem:[%s5292_s7 + $0x150] sm:$0xf] %v320_v20  ;;  %v448_v20 = vld [vmem:[%s5288_s6 + $0x4a0] sm:$0xf] }
  0x6f   : > { %323 = vst [vmem:[%s5292_s7 + $0x154] sm:$0xf] %v322_v21  ;;  %v450_v21 = vld [vmem:[%s5288_s6 + $0x4a8] sm:$0xf] }
  0x70   : > { %325 = vst [vmem:[%s5292_s7 + $0x158] sm:$0xf] %v324_v22  ;;  %v452_v22 = vld [vmem:[%s5288_s6 + $0x4b0] sm:$0xf] }
  0x71   : > { %327 = vst [vmem:[%s5292_s7 + $0x15c] sm:$0xf] %v326_v23  ;;  %v454_v23 = vld [vmem:[%s5288_s6 + $0x4b8] sm:$0xf] }
  0x72   : > { %329 = vst [vmem:[%s5292_s7 + $0x160] sm:$0xf] %v328_v24  ;;  %v456_v24 = vld [vmem:[%s5288_s6 + $0x4c0] sm:$0xf] }
  0x73   : > { %331 = vst [vmem:[%s5292_s7 + $0x164] sm:$0xf] %v330_v25  ;;  %v458_v25 = vld [vmem:[%s5288_s6 + $0x4c8] sm:$0xf] }
  0x74   : > { %333 = vst [vmem:[%s5292_s7 + $0x168] sm:$0xf] %v332_v26  ;;  %v460_v26 = vld [vmem:[%s5288_s6 + $0x4d0] sm:$0xf] }
  0x75   : > { %335 = vst [vmem:[%s5292_s7 + $0x16c] sm:$0xf] %v334_v27  ;;  %v462_v27 = vld [vmem:[%s5288_s6 + $0x4d8] sm:$0xf] }
  0x76   : > { %337 = vst [vmem:[%s5292_s7 + $0x170] sm:$0xf] %v336_v28  ;;  %v464_v28 = vld [vmem:[%s5288_s6 + $0x4e0] sm:$0xf] }
  0x77   : > { %339 = vst [vmem:[%s5292_s7 + $0x174] sm:$0xf] %v338_v29  ;;  %v466_v29 = vld [vmem:[%s5288_s6 + $0x4e8] sm:$0xf] }
  0x78   : > { %341 = vst [vmem:[%s5292_s7 + $0x178] sm:$0xf] %v340_v30  ;;  %v468_v30 = vld [vmem:[%s5288_s6 + $0x4f0] sm:$0xf] }
  0x79   : > { %343 = vst [vmem:[%s5292_s7 + $0x17c] sm:$0xf] %v342_v31  ;;  %v470_v31 = vld [vmem:[%s5288_s6 + $0x4f8] sm:$0xf] }
  0x7a   : > { %345 = vst [vmem:[%s5292_s7 + $0x180] sm:$0xf] %v344_v32  ;;  %v472_v32 = vld [vmem:[%s5288_s6 + $0x500] sm:$0xf] }
  0x7b   : > { %347 = vst [vmem:[%s5292_s7 + $0x184] sm:$0xf] %v346_v33  ;;  %v474_v33 = vld [vmem:[%s5288_s6 + $0x508] sm:$0xf] }
  0x7c   : > { %349 = vst [vmem:[%s5292_s7 + $0x188] sm:$0xf] %v348_v34  ;;  %v476_v34 = vld [vmem:[%s5288_s6 + $0x510] sm:$0xf] }
  0x7d   : > { %351 = vst [vmem:[%s5292_s7 + $0x18c] sm:$0xf] %v350_v35  ;;  %v478_v35 = vld [vmem:[%s5288_s6 + $0x518] sm:$0xf] }
  0x7e   : > { %353 = vst [vmem:[%s5292_s7 + $0x190] sm:$0xf] %v352_v36  ;;  %v480_v36 = vld [vmem:[%s5288_s6 + $0x520] sm:$0xf] }
  0x7f   : > { %355 = vst [vmem:[%s5292_s7 + $0x194] sm:$0xf] %v354_v37  ;;  %v482_v37 = vld [vmem:[%s5288_s6 + $0x528] sm:$0xf] }
  0x80   : > { %357 = vst [vmem:[%s5292_s7 + $0x198] sm:$0xf] %v356_v38  ;;  %v484_v38 = vld [vmem:[%s5288_s6 + $0x530] sm:$0xf] }
  0x81   : > { %359 = vst [vmem:[%s5292_s7 + $0x19c] sm:$0xf] %v358_v39  ;;  %v486_v39 = vld [vmem:[%s5288_s6 + $0x538] sm:$0xf] }
  0x82   : > { %361 = vst [vmem:[%s5292_s7 + $0x1a0] sm:$0xf] %v360_v40  ;;  %v488_v40 = vld [vmem:[%s5288_s6 + $0x540] sm:$0xf] }
  0x83   : > { %363 = vst [vmem:[%s5292_s7 + $0x1a4] sm:$0xf] %v362_v41  ;;  %v490_v41 = vld [vmem:[%s5288_s6 + $0x548] sm:$0xf] }
  0x84   : > { %365 = vst [vmem:[%s5292_s7 + $0x1a8] sm:$0xf] %v364_v42  ;;  %v492_v42 = vld [vmem:[%s5288_s6 + $0x550] sm:$0xf] }
  0x85   : > { %367 = vst [vmem:[%s5292_s7 + $0x1ac] sm:$0xf] %v366_v43  ;;  %v494_v43 = vld [vmem:[%s5288_s6 + $0x558] sm:$0xf] }
  0x86   : > { %369 = vst [vmem:[%s5292_s7 + $0x1b0] sm:$0xf] %v368_v44  ;;  %v496_v44 = vld [vmem:[%s5288_s6 + $0x560] sm:$0xf] }
  0x87   : > { %371 = vst [vmem:[%s5292_s7 + $0x1b4] sm:$0xf] %v370_v45  ;;  %v498_v45 = vld [vmem:[%s5288_s6 + $0x568] sm:$0xf] }
  0x88   : > { %373 = vst [vmem:[%s5292_s7 + $0x1b8] sm:$0xf] %v372_v46  ;;  %v500_v46 = vld [vmem:[%s5288_s6 + $0x570] sm:$0xf] }
  0x89   : > { %375 = vst [vmem:[%s5292_s7 + $0x1bc] sm:$0xf] %v374_v47  ;;  %v502_v47 = vld [vmem:[%s5288_s6 + $0x578] sm:$0xf] }
  0x8a   : > { %377 = vst [vmem:[%s5292_s7 + $0x1c0] sm:$0xf] %v376_v48  ;;  %v504_v48 = vld [vmem:[%s5288_s6 + $0x580] sm:$0xf] }
  0x8b   : > { %379 = vst [vmem:[%s5292_s7 + $0x1c4] sm:$0xf] %v378_v49  ;;  %v506_v49 = vld [vmem:[%s5288_s6 + $0x588] sm:$0xf] }
  0x8c   : > { %381 = vst [vmem:[%s5292_s7 + $0x1c8] sm:$0xf] %v380_v50  ;;  %v508_v50 = vld [vmem:[%s5288_s6 + $0x590] sm:$0xf] }
  0x8d   : > { %383 = vst [vmem:[%s5292_s7 + $0x1cc] sm:$0xf] %v382_v51  ;;  %v510_v51 = vld [vmem:[%s5288_s6 + $0x598] sm:$0xf] }
  0x8e   : > { %385 = vst [vmem:[%s5292_s7 + $0x1d0] sm:$0xf] %v384_v52  ;;  %v512_v52 = vld [vmem:[%s5288_s6 + $0x5a0] sm:$0xf] }
  0x8f   : > { %387 = vst [vmem:[%s5292_s7 + $0x1d4] sm:$0xf] %v386_v53  ;;  %v514_v53 = vld [vmem:[%s5288_s6 + $0x5a8] sm:$0xf] }
  0x90   : > { %389 = vst [vmem:[%s5292_s7 + $0x1d8] sm:$0xf] %v388_v54  ;;  %v516_v54 = vld [vmem:[%s5288_s6 + $0x5b0] sm:$0xf] }
  0x91   : > { %391 = vst [vmem:[%s5292_s7 + $0x1dc] sm:$0xf] %v390_v55  ;;  %v518_v55 = vld [vmem:[%s5288_s6 + $0x5b8] sm:$0xf] }
  0x92   : > { %393 = vst [vmem:[%s5292_s7 + $0x1e0] sm:$0xf] %v392_v56  ;;  %v520_v56 = vld [vmem:[%s5288_s6 + $0x5c0] sm:$0xf] }
  0x93   : > { %395 = vst [vmem:[%s5292_s7 + $0x1e4] sm:$0xf] %v394_v57  ;;  %v522_v57 = vld [vmem:[%s5288_s6 + $0x5c8] sm:$0xf] }
  0x94   : > { %397 = vst [vmem:[%s5292_s7 + $0x1e8] sm:$0xf] %v396_v58  ;;  %v524_v58 = vld [vmem:[%s5288_s6 + $0x5d0] sm:$0xf] }
  0x95   : > { %399 = vst [vmem:[%s5292_s7 + $0x1ec] sm:$0xf] %v398_v59  ;;  %v526_v59 = vld [vmem:[%s5288_s6 + $0x5d8] sm:$0xf] }
  0x96   : > { %401 = vst [vmem:[%s5292_s7 + $0x1f0] sm:$0xf] %v400_v60  ;;  %v528_v60 = vld [vmem:[%s5288_s6 + $0x5e0] sm:$0xf] }
  0x97   : > { %403 = vst [vmem:[%s5292_s7 + $0x1f4] sm:$0xf] %v402_v61  ;;  %v530_v61 = vld [vmem:[%s5288_s6 + $0x5e8] sm:$0xf] }
  0x98   : > { %405 = vst [vmem:[%s5292_s7 + $0x1f8] sm:$0xf] %v404_v62  ;;  %v532_v62 = vld [vmem:[%s5288_s6 + $0x5f0] sm:$0xf] }
  0x99   : > { %407 = vst [vmem:[%s5292_s7 + $0x1fc] sm:$0xf] %v406_v63  ;;  %v534_v63 = vld [vmem:[%s5288_s6 + $0x5f8] sm:$0xf] }
  0x9a   : > { %409 = vst [vmem:[%s5292_s7 + $0x200] sm:$0xf] %v408_v0  ;;  %v536_v0 = vld [vmem:[%s5288_s6 + $0x600] sm:$0xf] }
  0x9b   : > { %411 = vst [vmem:[%s5292_s7 + $0x204] sm:$0xf] %v410_v1  ;;  %v538_v1 = vld [vmem:[%s5288_s6 + $0x608] sm:$0xf] }
  0x9c   : > { %413 = vst [vmem:[%s5292_s7 + $0x208] sm:$0xf] %v412_v2  ;;  %v540_v2 = vld [vmem:[%s5288_s6 + $0x610] sm:$0xf] }
  0x9d   : > { %415 = vst [vmem:[%s5292_s7 + $0x20c] sm:$0xf] %v414_v3  ;;  %v542_v3 = vld [vmem:[%s5288_s6 + $0x618] sm:$0xf] }
  0x9e   : > { %417 = vst [vmem:[%s5292_s7 + $0x210] sm:$0xf] %v416_v4  ;;  %v544_v4 = vld [vmem:[%s5288_s6 + $0x620] sm:$0xf] }
  0x9f   : > { %419 = vst [vmem:[%s5292_s7 + $0x214] sm:$0xf] %v418_v5  ;;  %v546_v5 = vld [vmem:[%s5288_s6 + $0x628] sm:$0xf] }
  0xa0   : > { %421 = vst [vmem:[%s5292_s7 + $0x218] sm:$0xf] %v420_v6  ;;  %v548_v6 = vld [vmem:[%s5288_s6 + $0x630] sm:$0xf] }
  0xa1   : > { %423 = vst [vmem:[%s5292_s7 + $0x21c] sm:$0xf] %v422_v7  ;;  %v550_v7 = vld [vmem:[%s5288_s6 + $0x638] sm:$0xf] }
  0xa2   : > { %425 = vst [vmem:[%s5292_s7 + $0x220] sm:$0xf] %v424_v8  ;;  %v552_v8 = vld [vmem:[%s5288_s6 + $0x640] sm:$0xf] }
  0xa3   : > { %427 = vst [vmem:[%s5292_s7 + $0x224] sm:$0xf] %v426_v9  ;;  %v554_v9 = vld [vmem:[%s5288_s6 + $0x648] sm:$0xf] }
  0xa4   : > { %429 = vst [vmem:[%s5292_s7 + $0x228] sm:$0xf] %v428_v10  ;;  %v556_v10 = vld [vmem:[%s5288_s6 + $0x650] sm:$0xf] }
  0xa5   : > { %431 = vst [vmem:[%s5292_s7 + $0x22c] sm:$0xf] %v430_v11  ;;  %v558_v11 = vld [vmem:[%s5288_s6 + $0x658] sm:$0xf] }
  0xa6   : > { %433 = vst [vmem:[%s5292_s7 + $0x230] sm:$0xf] %v432_v12  ;;  %v560_v12 = vld [vmem:[%s5288_s6 + $0x660] sm:$0xf] }
  0xa7   : > { %435 = vst [vmem:[%s5292_s7 + $0x234] sm:$0xf] %v434_v13  ;;  %v562_v13 = vld [vmem:[%s5288_s6 + $0x668] sm:$0xf] }
  0xa8   : > { %437 = vst [vmem:[%s5292_s7 + $0x238] sm:$0xf] %v436_v14  ;;  %v564_v14 = vld [vmem:[%s5288_s6 + $0x670] sm:$0xf] }
  0xa9   : > { %439 = vst [vmem:[%s5292_s7 + $0x23c] sm:$0xf] %v438_v15  ;;  %v566_v15 = vld [vmem:[%s5288_s6 + $0x678] sm:$0xf] }
  0xaa   : > { %441 = vst [vmem:[%s5292_s7 + $0x240] sm:$0xf] %v440_v16  ;;  %v568_v16 = vld [vmem:[%s5288_s6 + $0x680] sm:$0xf] }
  0xab   : > { %443 = vst [vmem:[%s5292_s7 + $0x244] sm:$0xf] %v442_v17  ;;  %v570_v17 = vld [vmem:[%s5288_s6 + $0x688] sm:$0xf] }
  0xac   : > { %445 = vst [vmem:[%s5292_s7 + $0x248] sm:$0xf] %v444_v18  ;;  %v572_v18 = vld [vmem:[%s5288_s6 + $0x690] sm:$0xf] }
  0xad   : > { %447 = vst [vmem:[%s5292_s7 + $0x24c] sm:$0xf] %v446_v19  ;;  %v574_v19 = vld [vmem:[%s5288_s6 + $0x698] sm:$0xf] }
  0xae   : > { %449 = vst [vmem:[%s5292_s7 + $0x250] sm:$0xf] %v448_v20  ;;  %v576_v20 = vld [vmem:[%s5288_s6 + $0x6a0] sm:$0xf] }
  0xaf   : > { %451 = vst [vmem:[%s5292_s7 + $0x254] sm:$0xf] %v450_v21  ;;  %v578_v21 = vld [vmem:[%s5288_s6 + $0x6a8] sm:$0xf] }
  0xb0   : > { %453 = vst [vmem:[%s5292_s7 + $0x258] sm:$0xf] %v452_v22  ;;  %v580_v22 = vld [vmem:[%s5288_s6 + $0x6b0] sm:$0xf] }
  0xb1   : > { %455 = vst [vmem:[%s5292_s7 + $0x25c] sm:$0xf] %v454_v23  ;;  %v582_v23 = vld [vmem:[%s5288_s6 + $0x6b8] sm:$0xf] }
  0xb2   : > { %457 = vst [vmem:[%s5292_s7 + $0x260] sm:$0xf] %v456_v24  ;;  %v584_v24 = vld [vmem:[%s5288_s6 + $0x6c0] sm:$0xf] }
  0xb3   : > { %459 = vst [vmem:[%s5292_s7 + $0x264] sm:$0xf] %v458_v25  ;;  %v586_v25 = vld [vmem:[%s5288_s6 + $0x6c8] sm:$0xf] }
  0xb4   : > { %461 = vst [vmem:[%s5292_s7 + $0x268] sm:$0xf] %v460_v26  ;;  %v588_v26 = vld [vmem:[%s5288_s6 + $0x6d0] sm:$0xf] }
  0xb5   : > { %463 = vst [vmem:[%s5292_s7 + $0x26c] sm:$0xf] %v462_v27  ;;  %v590_v27 = vld [vmem:[%s5288_s6 + $0x6d8] sm:$0xf] }
  0xb6   : > { %465 = vst [vmem:[%s5292_s7 + $0x270] sm:$0xf] %v464_v28  ;;  %v592_v28 = vld [vmem:[%s5288_s6 + $0x6e0] sm:$0xf] }
  0xb7   : > { %467 = vst [vmem:[%s5292_s7 + $0x274] sm:$0xf] %v466_v29  ;;  %v594_v29 = vld [vmem:[%s5288_s6 + $0x6e8] sm:$0xf] }
  0xb8   : > { %469 = vst [vmem:[%s5292_s7 + $0x278] sm:$0xf] %v468_v30  ;;  %v596_v30 = vld [vmem:[%s5288_s6 + $0x6f0] sm:$0xf] }
  0xb9   : > { %471 = vst [vmem:[%s5292_s7 + $0x27c] sm:$0xf] %v470_v31  ;;  %v598_v31 = vld [vmem:[%s5288_s6 + $0x6f8] sm:$0xf] }
  0xba   : > { %473 = vst [vmem:[%s5292_s7 + $0x280] sm:$0xf] %v472_v32  ;;  %v600_v32 = vld [vmem:[%s5288_s6 + $0x700] sm:$0xf] }
  0xbb   : > { %475 = vst [vmem:[%s5292_s7 + $0x284] sm:$0xf] %v474_v33  ;;  %v602_v33 = vld [vmem:[%s5288_s6 + $0x708] sm:$0xf] }
  0xbc   : > { %477 = vst [vmem:[%s5292_s7 + $0x288] sm:$0xf] %v476_v34  ;;  %v604_v34 = vld [vmem:[%s5288_s6 + $0x710] sm:$0xf] }
  0xbd   : > { %479 = vst [vmem:[%s5292_s7 + $0x28c] sm:$0xf] %v478_v35  ;;  %v606_v35 = vld [vmem:[%s5288_s6 + $0x718] sm:$0xf] }
  0xbe   : > { %481 = vst [vmem:[%s5292_s7 + $0x290] sm:$0xf] %v480_v36  ;;  %v608_v36 = vld [vmem:[%s5288_s6 + $0x720] sm:$0xf] }
  0xbf   : > { %483 = vst [vmem:[%s5292_s7 + $0x294] sm:$0xf] %v482_v37  ;;  %v610_v37 = vld [vmem:[%s5288_s6 + $0x728] sm:$0xf] }
  0xc0   : > { %485 = vst [vmem:[%s5292_s7 + $0x298] sm:$0xf] %v484_v38  ;;  %v612_v38 = vld [vmem:[%s5288_s6 + $0x730] sm:$0xf] }
  0xc1   : > { %487 = vst [vmem:[%s5292_s7 + $0x29c] sm:$0xf] %v486_v39  ;;  %v614_v39 = vld [vmem:[%s5288_s6 + $0x738] sm:$0xf] }
  0xc2   : > { %489 = vst [vmem:[%s5292_s7 + $0x2a0] sm:$0xf] %v488_v40  ;;  %v616_v40 = vld [vmem:[%s5288_s6 + $0x740] sm:$0xf] }
  0xc3   : > { %491 = vst [vmem:[%s5292_s7 + $0x2a4] sm:$0xf] %v490_v41  ;;  %v618_v41 = vld [vmem:[%s5288_s6 + $0x748] sm:$0xf] }
  0xc4   : > { %493 = vst [vmem:[%s5292_s7 + $0x2a8] sm:$0xf] %v492_v42  ;;  %v620_v42 = vld [vmem:[%s5288_s6 + $0x750] sm:$0xf] }
  0xc5   : > { %495 = vst [vmem:[%s5292_s7 + $0x2ac] sm:$0xf] %v494_v43  ;;  %v622_v43 = vld [vmem:[%s5288_s6 + $0x758] sm:$0xf] }
  0xc6   : > { %497 = vst [vmem:[%s5292_s7 + $0x2b0] sm:$0xf] %v496_v44  ;;  %v624_v44 = vld [vmem:[%s5288_s6 + $0x760] sm:$0xf] }
  0xc7   : > { %499 = vst [vmem:[%s5292_s7 + $0x2b4] sm:$0xf] %v498_v45  ;;  %v626_v45 = vld [vmem:[%s5288_s6 + $0x768] sm:$0xf] }
  0xc8   : > { %501 = vst [vmem:[%s5292_s7 + $0x2b8] sm:$0xf] %v500_v46  ;;  %v628_v46 = vld [vmem:[%s5288_s6 + $0x770] sm:$0xf] }
  0xc9   : > { %503 = vst [vmem:[%s5292_s7 + $0x2bc] sm:$0xf] %v502_v47  ;;  %v630_v47 = vld [vmem:[%s5288_s6 + $0x778] sm:$0xf] }
  0xca   : > { %505 = vst [vmem:[%s5292_s7 + $0x2c0] sm:$0xf] %v504_v48  ;;  %v632_v48 = vld [vmem:[%s5288_s6 + $0x780] sm:$0xf] }
  0xcb   : > { %507 = vst [vmem:[%s5292_s7 + $0x2c4] sm:$0xf] %v506_v49  ;;  %v634_v49 = vld [vmem:[%s5288_s6 + $0x788] sm:$0xf] }
  0xcc   : > { %509 = vst [vmem:[%s5292_s7 + $0x2c8] sm:$0xf] %v508_v50  ;;  %v636_v50 = vld [vmem:[%s5288_s6 + $0x790] sm:$0xf] }
  0xcd   : > { %511 = vst [vmem:[%s5292_s7 + $0x2cc] sm:$0xf] %v510_v51  ;;  %v638_v51 = vld [vmem:[%s5288_s6 + $0x798] sm:$0xf] }
  0xce   : > { %513 = vst [vmem:[%s5292_s7 + $0x2d0] sm:$0xf] %v512_v52  ;;  %v640_v52 = vld [vmem:[%s5288_s6 + $0x7a0] sm:$0xf] }
  0xcf   : > { %515 = vst [vmem:[%s5292_s7 + $0x2d4] sm:$0xf] %v514_v53  ;;  %v642_v53 = vld [vmem:[%s5288_s6 + $0x7a8] sm:$0xf] }
  0xd0   : > { %517 = vst [vmem:[%s5292_s7 + $0x2d8] sm:$0xf] %v516_v54  ;;  %v644_v54 = vld [vmem:[%s5288_s6 + $0x7b0] sm:$0xf] }
  0xd1   : > { %519 = vst [vmem:[%s5292_s7 + $0x2dc] sm:$0xf] %v518_v55  ;;  %v646_v55 = vld [vmem:[%s5288_s6 + $0x7b8] sm:$0xf] }
  0xd2   : > { %521 = vst [vmem:[%s5292_s7 + $0x2e0] sm:$0xf] %v520_v56  ;;  %v648_v56 = vld [vmem:[%s5288_s6 + $0x7c0] sm:$0xf] }
  0xd3   : > { %523 = vst [vmem:[%s5292_s7 + $0x2e4] sm:$0xf] %v522_v57  ;;  %v650_v57 = vld [vmem:[%s5288_s6 + $0x7c8] sm:$0xf] }
  0xd4   : > { %525 = vst [vmem:[%s5292_s7 + $0x2e8] sm:$0xf] %v524_v58  ;;  %v652_v58 = vld [vmem:[%s5288_s6 + $0x7d0] sm:$0xf] }
  0xd5   : > { %527 = vst [vmem:[%s5292_s7 + $0x2ec] sm:$0xf] %v526_v59  ;;  %v654_v59 = vld [vmem:[%s5288_s6 + $0x7d8] sm:$0xf] }
  0xd6   : > { %529 = vst [vmem:[%s5292_s7 + $0x2f0] sm:$0xf] %v528_v60  ;;  %v656_v60 = vld [vmem:[%s5288_s6 + $0x7e0] sm:$0xf] }
  0xd7   : > { %531 = vst [vmem:[%s5292_s7 + $0x2f4] sm:$0xf] %v530_v61  ;;  %v658_v61 = vld [vmem:[%s5288_s6 + $0x7e8] sm:$0xf] }
  0xd8   : > { %533 = vst [vmem:[%s5292_s7 + $0x2f8] sm:$0xf] %v532_v62  ;;  %v660_v62 = vld [vmem:[%s5288_s6 + $0x7f0] sm:$0xf] }
  0xd9   : > { %535 = vst [vmem:[%s5292_s7 + $0x2fc] sm:$0xf] %v534_v63  ;;  %v662_v63 = vld [vmem:[%s5288_s6 + $0x7f8] sm:$0xf] }
  0xda   : > { %537 = vst [vmem:[%s5292_s7 + $0x300] sm:$0xf] %v536_v0 }
  0xdb   : > { %539 = vst [vmem:[%s5292_s7 + $0x304] sm:$0xf] %v538_v1 }
  0xdc   : > { %541 = vst [vmem:[%s5292_s7 + $0x308] sm:$0xf] %v540_v2 }
  0xdd   : > { %543 = vst [vmem:[%s5292_s7 + $0x30c] sm:$0xf] %v542_v3 }
  0xde   : > { %545 = vst [vmem:[%s5292_s7 + $0x310] sm:$0xf] %v544_v4 }
  0xdf   : > { %547 = vst [vmem:[%s5292_s7 + $0x314] sm:$0xf] %v546_v5 }
  0xe0   : > { %549 = vst [vmem:[%s5292_s7 + $0x318] sm:$0xf] %v548_v6 }
  0xe1   : > { %551 = vst [vmem:[%s5292_s7 + $0x31c] sm:$0xf] %v550_v7 }
  0xe2   : > { %553 = vst [vmem:[%s5292_s7 + $0x320] sm:$0xf] %v552_v8 }
  0xe3   : > { %555 = vst [vmem:[%s5292_s7 + $0x324] sm:$0xf] %v554_v9 }
  0xe4   : > { %557 = vst [vmem:[%s5292_s7 + $0x328] sm:$0xf] %v556_v10 }
  0xe5   : > { %559 = vst [vmem:[%s5292_s7 + $0x32c] sm:$0xf] %v558_v11 }
  0xe6   : > { %561 = vst [vmem:[%s5292_s7 + $0x330] sm:$0xf] %v560_v12 }
  0xe7   : > { %563 = vst [vmem:[%s5292_s7 + $0x334] sm:$0xf] %v562_v13 }
  0xe8   : > { %565 = vst [vmem:[%s5292_s7 + $0x338] sm:$0xf] %v564_v14 }
  0xe9   : > { %567 = vst [vmem:[%s5292_s7 + $0x33c] sm:$0xf] %v566_v15 }
  0xea   : > { %569 = vst [vmem:[%s5292_s7 + $0x340] sm:$0xf] %v568_v16 }
  0xeb   : > { %571 = vst [vmem:[%s5292_s7 + $0x344] sm:$0xf] %v570_v17 }
  0xec   : > { %573 = vst [vmem:[%s5292_s7 + $0x348] sm:$0xf] %v572_v18 }
  0xed   : > { %575 = vst [vmem:[%s5292_s7 + $0x34c] sm:$0xf] %v574_v19 }
  0xee   : > { %577 = vst [vmem:[%s5292_s7 + $0x350] sm:$0xf] %v576_v20 }
  0xef   : > { %579 = vst [vmem:[%s5292_s7 + $0x354] sm:$0xf] %v578_v21 }
  0xf0   : > { %581 = vst [vmem:[%s5292_s7 + $0x358] sm:$0xf] %v580_v22 }
  0xf1   : > { %583 = vst [vmem:[%s5292_s7 + $0x35c] sm:$0xf] %v582_v23 }
  0xf2   : > { %585 = vst [vmem:[%s5292_s7 + $0x360] sm:$0xf] %v584_v24 }
  0xf3   : > { %587 = vst [vmem:[%s5292_s7 + $0x364] sm:$0xf] %v586_v25 }
  0xf4   : > { %589 = vst [vmem:[%s5292_s7 + $0x368] sm:$0xf] %v588_v26 }
  0xf5   : > { %591 = vst [vmem:[%s5292_s7 + $0x36c] sm:$0xf] %v590_v27 }
  0xf6   : > { %593 = vst [vmem:[%s5292_s7 + $0x370] sm:$0xf] %v592_v28 }
  0xf7   : > { %595 = vst [vmem:[%s5292_s7 + $0x374] sm:$0xf] %v594_v29 }
  0xf8   : > { %597 = vst [vmem:[%s5292_s7 + $0x378] sm:$0xf] %v596_v30 }
  0xf9   : > { %599 = vst [vmem:[%s5292_s7 + $0x37c] sm:$0xf] %v598_v31 }
  0xfa   : > { %601 = vst [vmem:[%s5292_s7 + $0x380] sm:$0xf] %v600_v32 }
  0xfb   : > { %603 = vst [vmem:[%s5292_s7 + $0x384] sm:$0xf] %v602_v33 }
  0xfc   : > { %605 = vst [vmem:[%s5292_s7 + $0x388] sm:$0xf] %v604_v34 }
  0xfd   : > { %607 = vst [vmem:[%s5292_s7 + $0x38c] sm:$0xf] %v606_v35 }
  0xfe   : > { %609 = vst [vmem:[%s5292_s7 + $0x390] sm:$0xf] %v608_v36 }
  0xff   : > { %611 = vst [vmem:[%s5292_s7 + $0x394] sm:$0xf] %v610_v37 }
 0x100   : > { %613 = vst [vmem:[%s5292_s7 + $0x398] sm:$0xf] %v612_v38 }
 0x101   : > { %615 = vst [vmem:[%s5292_s7 + $0x39c] sm:$0xf] %v614_v39 }
 0x102   : > { %617 = vst [vmem:[%s5292_s7 + $0x3a0] sm:$0xf] %v616_v40 }
 0x103   : > { %619 = vst [vmem:[%s5292_s7 + $0x3a4] sm:$0xf] %v618_v41 }
 0x104   : > { %621 = vst [vmem:[%s5292_s7 + $0x3a8] sm:$0xf] %v620_v42 }
 0x105   : > { %623 = vst [vmem:[%s5292_s7 + $0x3ac] sm:$0xf] %v622_v43 }
 0x106   : > { %625 = vst [vmem:[%s5292_s7 + $0x3b0] sm:$0xf] %v624_v44 }
 0x107   : > { %627 = vst [vmem:[%s5292_s7 + $0x3b4] sm:$0xf] %v626_v45 }
 0x108   : > { %629 = vst [vmem:[%s5292_s7 + $0x3b8] sm:$0xf] %v628_v46 }
 0x109   : > { %631 = vst [vmem:[%s5292_s7 + $0x3bc] sm:$0xf] %v630_v47 }
 0x10a   : > { %633 = vst [vmem:[%s5292_s7 + $0x3c0] sm:$0xf] %v632_v48 }
 0x10b   : > { %635 = vst [vmem:[%s5292_s7 + $0x3c4] sm:$0xf] %v634_v49 }
 0x10c   : > { %637 = vst [vmem:[%s5292_s7 + $0x3c8] sm:$0xf] %v636_v50 }
 0x10d   : > { %639 = vst [vmem:[%s5292_s7 + $0x3cc] sm:$0xf] %v638_v51 }
 0x10e   : > { %641 = vst [vmem:[%s5292_s7 + $0x3d0] sm:$0xf] %v640_v52 }
 0x10f   : > { %643 = vst [vmem:[%s5292_s7 + $0x3d4] sm:$0xf] %v642_v53 }
 0x110   : > { %645 = vst [vmem:[%s5292_s7 + $0x3d8] sm:$0xf] %v644_v54 }
 0x111   : > { %647 = vst [vmem:[%s5292_s7 + $0x3dc] sm:$0xf] %v646_v55 }
 0x112   : > { %649 = vst [vmem:[%s5292_s7 + $0x3e0] sm:$0xf] %v648_v56 }
 0x113   : > { %651 = vst [vmem:[%s5292_s7 + $0x3e4] sm:$0xf] %v650_v57 }
 0x114   : > { %653 = vst [vmem:[%s5292_s7 + $0x3e8] sm:$0xf] %v652_v58 }
 0x115   : > { %655 = vst [vmem:[%s5292_s7 + $0x3ec] sm:$0xf] %v654_v59 }
 0x116   : > { %657 = vst [vmem:[%s5292_s7 + $0x3f0] sm:$0xf] %v656_v60 }
 0x117   : > { %659 = vst [vmem:[%s5292_s7 + $0x3f4] sm:$0xf] %v658_v61 }
 0x118   : > { %661 = vst [vmem:[%s5292_s7 + $0x3f8] sm:$0xf] %v660_v62 }
 0x119   : > { %663 = vst [vmem:[%s5292_s7 + $0x3fc] sm:$0xf] %v662_v63 }
 0x11a PF: > { %p4194_p11 = scmp.ge.s32.totalorder %s5189_s17, 1  ;;  %p2248_p12 = scmp.lt.s32.totalorder %s5189_s17, 5 }
 0x11c   : > { %p2249_p13 = pnand %p4194_p11, %p2248_p12 }
 0x11d   : > { %s2255_s8 = sand.u32 (!%p2249_p13), 1, %s5165_s11   ;;  %p2280_p0 = scmp.lt.s32.totalorder (!%p2249_p13), %s5177_s14, 1 }
 0x11e   : > { %2252 = sbr.rel (%p2249_p13) target bundleno = 640 (0x280), region = 76  ;;  %s4195_s18 = sshll.u32 (!%p2249_p13), %s2255_s8, 10 }
 0x11f   : > { %s5808_s21 = scalar_lea.vmem (!%p2249_p13), [#allocation2], %s4195_s18  ;;  %s2277_s29 = sand.u32 (!%p2249_p13), 1, %s5157_s9  }
 0x120   : > { %s5040_s30 = smul.u32 (!%p2249_p13), 12, %s2277_s29 }
 0x122   : > { %s2279_s9 = scalar_lea.vmem (!%p2249_p13), [#allocation3], %s5040_s30 }
 0x123   : > { %v4946_v0 = vld [vmem:[%s5808_s21 + $0x138] sm:$0xff]  ;;  %s2281_s22 = scalar_select %p2280_p0, %s5177_s14, 1  ;;  %v4945_v4 = vld [vmem:[%s5808_s21 + $0x130] sm:$0xff]  ;;  %v4944_v8 = vld [vmem:[%s5808_s21 + $0x128] sm:$0xff]  ;;  %vm2454_vm0 = vsmask.f32 7424 }
 0x124   : > { %v4954_v1 = vld [vmem:[%s5808_s21 + $0x178] sm:$0xff]  ;;  %2715 = vmatpush.bf16.msra.mxu0 %v4946_v0  ;;  %v4953_v5 = vld [vmem:[%s5808_s21 + $0x170] sm:$0xff]  ;;  %v4952_v9 = vld [vmem:[%s5808_s21 + $0x168] sm:$0xff]  ;;  %vm3152_vm1 = vcmask 1044480   ;;  %vm3517_vm2 = vsmask.f32 4352 }
 0x125   : > { %v4962_v2 = vld [vmem:[%s5808_s21 + $0x1b8] sm:$0xff]  ;;  %2733 = vmatpush.bf16.msra.mxu1 %v4954_v1  ;;  %v4961_v6 = vld [vmem:[%s5808_s21 + $0x1b0] sm:$0xff]  ;;  %s5041_s11 = smul.u32 80, %s2281_s22  ;;  %v4960_v10 = vld [vmem:[%s5808_s21 + $0x1a8] sm:$0xff] }
 0x126   : > { %v4970_v3 = vld [vmem:[%s5808_s21 + $0x1f8] sm:$0xff]  ;;  %2751 = vmatpush.bf16.msra.mxu2 %v4962_v2  ;;  %v4969_v7 = vld [vmem:[%s5808_s21 + $0x1f0] sm:$0xff]  ;;  %v4968_v11 = vld [vmem:[%s5808_s21 + $0x1e8] sm:$0xff]  ;;  %s5042_s3 = smul.u32 (%p5275_p9), 6, %s5177_s14 }
 0x127   : > { %2769 = vmatpush.bf16.msra.mxu3 %v4970_v3  ;;  %s5826_s26 = scalar_lea.vmem %s6193_s0, %s5041_s11  ;;  %v4943_v12 = vld [vmem:[%s5808_s21 + $0x120] sm:$0xff]  ;;  %v4942_v34 = vld [vmem:[%s5808_s21 + $0x118] sm:$0xff]  ;;  %v4941_v46 = vld [vmem:[%s5808_s21 + $0x110] sm:$0xff] }
 0x128   : > { %2716 = vmatpush.bf16.msra.mxu0 %v4945_v4  ;;  %v4951_v13 = vld [vmem:[%s5808_s21 + $0x160] sm:$0xff]  ;;  %v5834_v17 = vld [vmem:[%s5826_s26 + $0x10] sm:$0xff]  ;;  %v2286_v26 = vld [vmem:[%s5826_s26 + $0x8] sm:$0xff]  ;;  %s4046_s4 = sadd.s32 (%p5275_p9), %s5173_s13, %s5042_s3 }
 0x129   : > { %2734 = vmatpush.bf16.msra.mxu1 %v4953_v5  ;;  %v4959_v14 = vld [vmem:[%s5808_s21 + $0x1a0] sm:$0xff]  ;;  %v2355_v19 = vld [vmem:[%s5826_s26 + $0x30] sm:$0x11]  ;;  %v2434_v22 = vunpack.c.l.b16 %v5834_v17  ;;  %v2435_v25 = vunpack.c.h.b16 %v5834_v17  ;;  %v5844_v27 = vld [vmem:[%s5826_s26 + $0x18] sm:$0xff]  ;;  %v2432_v32 = vunpack.c.l.b16 %v2286_v26  ;;  %v2433_v43 = vunpack.c.h.b16 %v2286_v26  ;;  %s4904_s5 = sshll.u32 (%p5275_p9), %s4046_s4, 2 }
 0x12a   : > { %2752 = vmatpush.bf16.msra.mxu2 %v4961_v6  ;;  %v4967_v15 = vld [vmem:[%s5808_s21 + $0x1e0] sm:$0xff]  ;;  %v2442_v24 = vunpack.c.l.b16 %v2355_v19  ;;  %v2290_v28 = vld [vmem:[%s5826_s26 + $0x28] sm:$0xff]  ;;  %v2443_v30 = vunpack.c.h.b16 %v2355_v19  ;;  %v2356_v31 = vld [vmem:[%s5826_s26 + $0x38] sm:$0x11]  ;;  %v2436_v33 = vunpack.c.l.b16 %v5844_v27  ;;  %v2437_v50 = vunpack.c.h.b16 %v5844_v27  ;;  %s4048_s8 = scalar_lea.vmem (%p5275_p9), %s6195_s2, %s4904_s5 }
 0x12b   : > { %2770 = vmatpush.bf16.msra.mxu3 %v4969_v7  ;;  %v2285_v16 = vld [vmem:[%s5826_s26] sm:$0xff]  ;;  %v4950_v35 = vld [vmem:[%s5808_s21 + $0x158] sm:$0xff]  ;;  %v5863_v40 = vunpack.c.l.b16 %v2290_v28  ;;  %v2444_v41 = vunpack.c.l.b16 %v2356_v31  ;;  %v4949_v47 = vld [vmem:[%s5808_s21 + $0x150] sm:$0xff]  ;;  %v5886_v55 = vunpack.c.h.b16 %v2290_v28  ;;  %v2445_v56 = vunpack.c.h.b16 %v2356_v31 }
 0x12c   : > { %2717 = vmatpush.bf16.msra.mxu0 %v4944_v8  ;;  %v2289_v18 = vld [vmem:[%s5826_s26 + $0x20] sm:$0xff]  ;;  %v2430_v20 = vunpack.c.l.b16 %v2285_v16  ;;  %v2431_v21 = vunpack.c.h.b16 %v2285_v16  ;;  %v4958_v38 = vld [vmem:[%s5808_s21 + $0x198] sm:$0xff]  ;;  %v5867_v42 = vpack.c.b16 %v2436_v33, %v2432_v32  ;;  %v4957_v51 = vld [vmem:[%s5808_s21 + $0x190] sm:$0xff]  ;;  %v5890_v57 = vpack.c.b16 %v2437_v50, %v2433_v43 }
 0x12d   : > { %2735 = vmatpush.bf16.msra.mxu1 %v4952_v9  ;;  %v5839_v23 = vunpack.c.l.b16 %v2289_v18  ;;  %v5847_v29 = vunpack.c.h.b16 %v2289_v18  ;;  %v4966_v39 = vld [vmem:[%s5808_s21 + $0x1d8] sm:$0xff]  ;;  %v4965_v52 = vld [vmem:[%s5808_s21 + $0x1d0] sm:$0xff]  ;;  %v5883_v53 = vpack.c.b16 %v2444_v41, %v5863_v40  ;;  %v4940_v62 = vld [vmem:[%s5808_s21 + $0x108] sm:$0xff]  ;;  %v5900_v3 = vpack.c.b16 %v2445_v56, %v5886_v55 }
 0x12e   : > { %2753 = vmatpush.bf16.msra.mxu2 %v4960_v10  ;;  %v5855_v36 = vpack.c.b16 %v2434_v22, %v2430_v20  ;;  %v5859_v37 = vpack.c.b16 %v2435_v25, %v2431_v21  ;;  %v2482_v54 = vshll.u32 %v5867_v42, 16  ;;  %v4948_v63 = vld [vmem:[%s5808_s21 + $0x148] sm:$0xff]  ;;  %v2480_v2 = vshrl.u32 %v5867_v42, 16  ;;  %v4955_v19 = vld [vmem:[%s5808_s21 + $0x180] sm:$0xff]  ;;  %v4914_v31 = vld [vmem:[%s5808_s21 + $0x38] sm:$0xff] }
 0x12f   : > { %2771 = vmatpush.bf16.msra.mxu3 %v4968_v11  ;;  %v5870_v44 = vpack.c.b16 %v2442_v24, %v5839_v23  ;;  %v5873_v45 = vpack.c.b16 %v2443_v30, %v5847_v29  ;;  %v4956_v4 = vld [vmem:[%s5808_s21 + $0x188] sm:$0xff]  ;;  %v2487_v7 = vshll.u32 %v5883_v53, 16  ;;  %v2492_v8 = vshrl.u32 %v5890_v57, 16  ;;  %v4963_v20 = vld [vmem:[%s5808_s21 + $0x1c0] sm:$0xff]  ;;  %v4930_v30 = vld [vmem:[%s5808_s21 + $0xb8] sm:$0xff] }
 0x130   : > { %2718 = vmatpush.bf16.msra.mxu0 %v4943_v12  ;;  %v2458_v48 = vshll.u32 %v5855_v36, 16  ;;  %v2470_v49 = vshll.u32 %v5859_v37, 16  ;;  %v2456_v58 = vshrl.u32 %v5855_v36, 16  ;;  %v2468_v60 = vshrl.u32 %v5859_v37, 16  ;;  %v4964_v5 = vld [vmem:[%s5808_s21 + $0x1c8] sm:$0xff]  ;;  %v4939_v12 = vld [vmem:[%s5808_s21 + $0x100] sm:$0xff] }
 0x131   : > { %2736 = vmatpush.bf16.msra.mxu1 %v4951_v13  ;;  %v2463_v59 = vshll.u32 %v5870_v44, 16  ;;  %v2475_v61 = vshll.u32 %v5873_v45, 16  ;;  %v2484_v6 = vrot.slane %v2482_v54, 1  ;;  %v2494_v9 = vshll.u32 %v5890_v57, 16  ;;  %v4947_v13 = vld [vmem:[%s5808_s21 + $0x140] sm:$0xff]  ;;  %v4938_v41 = vld [vmem:[%s5808_s21 + $0xf8] sm:$0xff] }
 0x132   : > { %2754 = vmatpush.bf16.msra.mxu2 %v4959_v14  ;;  %v2460_v0 = vrot.slane %v2458_v48, 1  ;;  %v2472_v1 = vrot.slane %v2470_v49, 1  ;;  %v2499_v10 = vshll.u32 %v5900_v3, 16  ;;  %v2489_v24 = vrot.slane %v2487_v7, 1  ;;  %v4929_v43 = vld [vmem:[%s5808_s21 + $0xb0] sm:$0xff]  ;;  %v4928_v49 = vld [vmem:[%s5808_s21 + $0xa8] sm:$0xff] }
 0x133   : > { %2772 = vmatpush.bf16.msra.mxu3 %v4967_v15  ;;  %v2496_v11 = vrot.slane %v2494_v9, 1  ;;  %v2465_v15 = vrot.slane %v2463_v59, 1  ;;  %v2477_v18 = vrot.slane %v2475_v61, 1  ;;  %v2485_v21 = vor.u32 %v2484_v6, %v2480_v2  ;;  %v4937_v48 = vld [vmem:[%s5808_s21 + $0xf0] sm:$0xff]  ;;  %v4936_v54 = vld [vmem:[%s5808_s21 + $0xe8] sm:$0xff]  ;;  %v4927_v56 = vld [vmem:[%s5808_s21 + $0xa0] sm:$0xff] }
 0x134   : > { %2719 = vmatpush.bf16.msra.mxu0 %v4942_v34  ;;  %v2461_v14 = vor.u32 %v2460_v0, %v2456_v58  ;;  %v2473_v16 = vor.u32 %v2472_v1, %v2468_v60  ;;  %v2501_v28 = vrot.slane %v2499_v10, 1  ;;  %v4911_v58 = vld [vmem:[%s5808_s21 + $0x20] sm:$0xff]  ;;  %v2503_v59 = vshrl.u32 %v5870_v44, 16  ;;  %v4926_v1 = vld [vmem:[%s5808_s21 + $0x98] sm:$0xff]  ;;  %v4925_v6 = vld [vmem:[%s5808_s21 + $0x90] sm:$0xff] }
 0x135   : > { %2737 = vmatpush.bf16.msra.mxu1 %v4950_v35  ;;  %v2497_v26 = vor.u32 %v2496_v11, %v2492_v8  ;;  %v2490_v35 = vsel %vm2454_vm0, %v2485_v21, %v2489_v24  ;;  %v2506_v60 = vshrl.u32 %v5873_v45, 16  ;;  %v2509_v61 = vshrl.u32 %v5883_v53, 16  ;;  %v4935_v0 = vld [vmem:[%s5808_s21 + $0xe0] sm:$0xff]  ;;  %v4910_v2 = vld [vmem:[%s5808_s21 + $0x18] sm:$0xff]  ;;  %v4909_v7 = vld [vmem:[%s5808_s21 + $0x10] sm:$0xff] }
 0x136   : > { %2755 = vmatpush.bf16.msra.mxu2 %v4958_v38  ;;  %v2466_v32 = vsel %vm2454_vm0, %v2461_v14, %v2465_v15  ;;  %v2478_v34 = vsel %vm2454_vm0, %v2473_v16, %v2477_v18  ;;  %v4918_v53 = vld [vmem:[%s5808_s21 + $0x58] sm:$0xff]  ;;  %v4917_v8 = vld [vmem:[%s5808_s21 + $0x50] sm:$0xff]  ;;  %v4924_v10 = vld [vmem:[%s5808_s21 + $0x88] sm:$0xff] }
 0x137   : > { %2773 = vmatpush.bf16.msra.mxu3 %v4966_v39  ;;  %v2502_v38 = vsel %vm2454_vm0, %v2497_v26, %v2501_v28  ;;  %v4922_v39 = vld [vmem:[%s5808_s21 + $0x78] sm:$0xff]  ;;  %v2508_v44 = vor.u32 %v2506_v60, %v2477_v18  ;;  %v4933_v9 = vld [vmem:[%s5808_s21 + $0xd0] sm:$0xff]  ;;  %v4908_v11 = vld [vmem:[%s5808_s21 + $0x8] sm:$0xff] }
 0x138   : > { %2720 = vmatpush.bf16.msra.mxu0 %v4941_v46  ;;  %v4913_v46 = vld [vmem:[%s5808_s21 + $0x30] sm:$0xff]  ;;  %v4923_v14 = vld [vmem:[%s5808_s21 + $0x80] sm:$0xff]  ;;  %v4994_v16 = vld [vmem:[%s5808_s21 + $0x2b8] sm:$0xff] }
 0x139   : > { %2738 = vmatpush.bf16.msra.mxu1 %v4949_v47  ;;  %v4921_v47 = vld [vmem:[%s5808_s21 + $0x70] sm:$0xff]  ;;  %v4978_v18 = vld [vmem:[%s5808_s21 + $0x238] sm:$0xff] }
 0x13a   : > { %2756 = vmatpush.bf16.msra.mxu2 %v4957_v51  ;;  %v4912_v51 = vld [vmem:[%s5808_s21 + $0x28] sm:$0xff]  ;;  %v4986_v21 = vld [vmem:[%s5808_s21 + $0x278] sm:$0xff]  ;;  %v4993_v26 = vld [vmem:[%s5808_s21 + $0x2b0] sm:$0xff] }
 0x13b   : > { %2774 = vmatpush.bf16.msra.mxu3 %v4965_v52  ;;  %v4920_v52 = vld [vmem:[%s5808_s21 + $0x68] sm:$0xff]  ;;  %v4997_v60 = vld [vmem:[%s5808_s21 + $0x2d0] sm:$0xff] }
 0x13c   : > { %2721 = vmatpush.bf16.msra.mxu0 %v4940_v62  ;;  %v2512_v62 = vshrl.u32 %v5900_v3, 16  ;;  %v4934_v3 = vld [vmem:[%s5808_s21 + $0xd8] sm:$0xff] }
 0x13d   : > { %2739 = vmatpush.bf16.msra.mxu1 %v4948_v63  ;;  %v4919_v63 = vld [vmem:[%s5808_s21 + $0x60] sm:$0xff] }
 0x13e   : > { %2757 = vmatpush.bf16.msra.mxu2 %v4956_v4  ;;  %v2505_v4 = vor.u32 %v2503_v59, %v2465_v15  ;;  %v2514_v45 = vor.u32 %v2512_v62, %v2501_v28  ;;  %v4907_v15 = vld [vmem:[%s5808_s21] sm:$0xff]  ;;  %v4977_v28 = vld [vmem:[%s5808_s21 + $0x230] sm:$0xff]  ;;  %v3066_v62 = vld [vmem:[%s5826_s26 + $0x38] sm:$0x77] }
 0x13f   : > { %2775 = vmatpush.bf16.msra.mxu3 %v4964_v5  ;;  %v2511_v5 = vor.u32 %v2509_v61, %v2489_v24  ;;  %v5002_v24 = vld [vmem:[%s5808_s21 + $0x2f8] sm:$0xff]  ;;  %v3065_v59 = vld [vmem:[%s5826_s26 + $0x30] sm:$0x77]  ;;  %v3064_v61 = vld [vmem:[%s5826_s26 + $0x8] sm:$0x88] }
 0x140   : > { %2722 = vmatpush.bf16.msra.mxu0 %v4939_v12  ;;  %v4916_v12 = vld [vmem:[%s5808_s21 + $0x48] sm:$0xff] }
 0x141   : > { %2740 = vmatpush.bf16.msra.mxu1 %v4947_v13  ;;  %v4932_v13 = vld [vmem:[%s5808_s21 + $0xc8] sm:$0xff] }
 0x142   : > { %2758 = vmatpush.bf16.msra.mxu2 %v4955_v19  ;;  %v4915_v19 = vld [vmem:[%s5808_s21 + $0x40] sm:$0xff] }
 0x143   : > { %2776 = vmatpush.bf16.msra.mxu3 %v4963_v20  ;;  %2723 = vmatmul.bf16.vlgmr.msra.gmra.mxu0 %v2466_v32  ;;  %v4931_v20 = vld [vmem:[%s5808_s21 + $0xc0] sm:$0xff]  ;;  %v4992_v32 = vld [vmem:[%s5808_s21 + $0x2a8] sm:$0xff] }
 0x144   : > { %2991 = vmatpush.bf16.msrb.mxu0 %v4914_v31  ;;  %2741 = vmatmul.bf16.vlgmr.msra.gmra.mxu1 %v2478_v34  ;;  %v5001_v31 = vld [vmem:[%s5808_s21 + $0x2f0] sm:$0xff]  ;;  %v4976_v34 = vld [vmem:[%s5808_s21 + $0x228] sm:$0xff] }
 0x145   : > { %2759 = vmatmul.bf16.vlgmr.msra.gmra.mxu2 %v2490_v35  ;;  %3009 = vmatpush.bf16.msrb.mxu1 %v4922_v39  ;;  %v4984_v35 = vld [vmem:[%s5808_s21 + $0x268] sm:$0xff]  ;;  %v4990_v39 = vld [vmem:[%s5808_s21 + $0x298] sm:$0xff] }
 0x146   : > { %3027 = vmatpush.bf16.msrb.mxu2 %v4930_v30  ;;  %2777 = vmatmul.bf16.vlgmr.msra.gmra.mxu3 %v2502_v38  ;;  %v4985_v30 = vld [vmem:[%s5808_s21 + $0x270] sm:$0xff]  ;;  %v5000_v38 = vld [vmem:[%s5808_s21 + $0x2e8] sm:$0xff] }
 0x147   : > { %3045 = vmatpush.bf16.msrb.mxu3 %v4938_v41  ;;  %v4974_v41 = vld [vmem:[%s5808_s21 + $0x218] sm:$0xff] }
 0x148   : > { %2992 = vmatpush.bf16.msrb.mxu0 %v4913_v46  ;;  %v4998_v46 = vld [vmem:[%s5808_s21 + $0x2d8] sm:$0xff] }
 0x149   : > { %3010 = vmatpush.bf16.msrb.mxu1 %v4921_v47  ;;  %v2787_v47 = vpack.c.b16 %v5839_v23, %v5839_v23 }
 0x14a   : > { %3028 = vmatpush.bf16.msrb.mxu2 %v4929_v43  ;;  %v4982_v43 = vld [vmem:[%s5808_s21 + $0x258] sm:$0xff] }
 0x14b   : > { %3046 = vmatpush.bf16.msrb.mxu3 %v4937_v48  ;;  %v4989_v48 = vld [vmem:[%s5808_s21 + $0x290] sm:$0xff] }
 0x14c   : > { %2993 = vmatpush.bf16.msrb.mxu0 %v4912_v51  ;;  %v2789_v51 = vpack.c.b16 %v5863_v40, %v5863_v40 }
 0x14d   : > { %3011 = vmatpush.bf16.msrb.mxu1 %v4920_v52  ;;  %v4973_v52 = vld [vmem:[%s5808_s21 + $0x210] sm:$0xff] }
 0x14e   : > { %3029 = vmatpush.bf16.msrb.mxu2 %v4928_v49  ;;  %v2788_v49 = vpack.c.b16 %v5847_v29, %v5847_v29 }
 0x14f   : > { %3047 = vmatpush.bf16.msrb.mxu3 %v4936_v54  ;;  %v2790_v54 = vpack.c.b16 %v5886_v55, %v5886_v55 }
 0x150   : > { %2994 = vmatpush.bf16.msrb.mxu0 %v4911_v58  ;;  %v3063_v58 = vld [vmem:[%s5826_s26] sm:$0x88] }
 0x151   : > { %3012 = vmatpush.bf16.msrb.mxu1 %v4919_v63  ;;  %v4988_v63 = vld [vmem:[%s5808_s21 + $0x288] sm:$0xff] }
 0x152   : > { %3030 = vmatpush.bf16.msrb.mxu2 %v4927_v56  ;;  %v4981_v56 = vld [vmem:[%s5808_s21 + $0x250] sm:$0xff] }
 0x153   : > { %3048 = vmatpush.bf16.msrb.mxu3 %v4935_v0  ;;  %2728 = vmatmul.bf16.gmra.mxu0 %v2505_v4  ;;  %v3136_v0 = vunpack.c.l.b16 %v3063_v58  ;;  %v3137_v4 = vunpack.c.h.b16 %v3063_v58  ;;  %v5014_v58 = vld [vmem:[%s5808_s21 + $0x358] sm:$0xff] }
 0x154   : > { %2995 = vmatpush.bf16.msrb.mxu0 %v4910_v2  ;;  %2746 = vmatmul.bf16.gmra.mxu1 %v2508_v44  ;;  %v4972_v2 = vld [vmem:[%s5808_s21 + $0x208] sm:$0xff]  ;;  %v3141_v44 = vunpack.c.h.b16 %v3065_v59 }
 0x155   : > { %2764 = vmatmul.bf16.gmra.mxu2 %v2511_v5  ;;  %3013 = vmatpush.bf16.msrb.mxu1 %v4918_v53  ;;  %v3138_v5 = vunpack.c.l.b16 %v3064_v61  ;;  %v4980_v53 = vld [vmem:[%s5808_s21 + $0x248] sm:$0xff] }
 0x156   : > { %3031 = vmatpush.bf16.msrb.mxu2 %v4926_v1  ;;  %2782 = vmatmul.bf16.gmra.mxu3 %v2514_v45  ;;  %v3140_v1 = vunpack.c.l.b16 %v3065_v59  ;;  %v3142_v45 = vunpack.c.l.b16 %v3066_v62 }
 0x157   : > { %3049 = vmatpush.bf16.msrb.mxu3 %v4934_v3  ;;  %v4996_v3 = vld [vmem:[%s5808_s21 + $0x2c8] sm:$0xff] }
 0x158   : > { %2996 = vmatpush.bf16.msrb.mxu0 %v4909_v7  ;;  %v3143_v7 = vunpack.c.h.b16 %v3066_v62 }
 0x159   : > { %3014 = vmatpush.bf16.msrb.mxu1 %v4917_v8  ;;  %v4987_v8 = vld [vmem:[%s5808_s21 + $0x280] sm:$0xff] }
 0x15a   : > { %3032 = vmatpush.bf16.msrb.mxu2 %v4925_v6  ;;  %v3139_v6 = vunpack.c.h.b16 %v3064_v61  ;;  %v5006_v61 = vld [vmem:[%s5808_s21 + $0x318] sm:$0xff] }
 0x15b   : > { %3050 = vmatpush.bf16.msrb.mxu3 %v4933_v9  ;;  %v5999_v9 = vpack.c.b16 %v2434_v22, %v3136_v0  ;;  %v6015_v22 = vpack.c.b16 %v2436_v33, %v3138_v5  ;;  %v5021_v0 = vld [vmem:[%s5808_s21 + $0x390] sm:$0xff] }
 0x15c   : > { %2997 = vmatpush.bf16.msrb.mxu0 %v4908_v11  ;;  %v5026_v11 = vld [vmem:[%s5808_s21 + $0x3b8] sm:$0xff]  ;;  %v6024_v17 = vpack.c.b16 %v2437_v50, %v3139_v6  ;;  %v5005_v5 = vld [vmem:[%s5808_s21 + $0x310] sm:$0xff] }
 0x15d   : > { %3015 = vmatpush.bf16.msrb.mxu1 %v4916_v12  ;;  %v4971_v12 = vld [vmem:[%s5808_s21 + $0x200] sm:$0xff]  ;;  %v3153_v33 = vrot.slane %v5999_v9, 3 }
 0x15e   : > { %3033 = vmatpush.bf16.msrb.mxu2 %v4924_v10  ;;  %v6002_v10 = vpack.c.b16 %v3140_v1, %v5839_v23 }
 0x15f   : > { %3051 = vmatpush.bf16.msrb.mxu3 %v4932_v13  ;;  %v6008_v13 = vpack.c.b16 %v2435_v25, %v3137_v4  ;;  %v6027_v25 = vpack.c.b16 %v3143_v7, %v5886_v55  ;;  %v5012_v7 = vld [vmem:[%s5808_s21 + $0x348] sm:$0xff] }
 0x160   : > { %2998 = vmatpush.bf16.msrb.mxu0 %v4907_v15  ;;  %v6018_v15 = vpack.c.b16 %v3142_v45, %v5863_v40 }
 0x161   : > { %3016 = vmatpush.bf16.msrb.mxu1 %v4915_v19  ;;  %v5010_v19 = vld [vmem:[%s5808_s21 + $0x338] sm:$0xff]  ;;  %v3156_v27 = vrot.slane %v6008_v13, 3 }
 0x162   : > { %3034 = vmatpush.bf16.msrb.mxu2 %v4923_v14  ;;  %v6011_v14 = vpack.c.b16 %v3141_v44, %v5847_v29 }
 0x163   : > { %3052 = vmatpush.bf16.msrb.mxu3 %v4931_v20  ;;  %2999 = vmatmul.bf16.vlgmr.msrb.gmra.mxu0 %v5855_v36  ;;  %v4991_v36 = vld [vmem:[%s5808_s21 + $0x2a0] sm:$0xff]  ;;  %v5018_v20 = vld [vmem:[%s5808_s21 + $0x378] sm:$0xff] }
 0x164   : > { %3365 = vmatpush.bf16.msra.mxu0 %v4978_v18  ;;  %3017 = vmatmul.bf16.vlgmr.msrb.gmra.mxu1 %v5859_v37  ;;  %v4975_v37 = vld [vmem:[%s5808_s21 + $0x220] sm:$0xff]  ;;  %v3157_v50 = vrot.slane %v6011_v14, 3  ;;  %v3553_v14 = vshrl.u32 %v6015_v22, 16 }
 0x165   : > { %3383 = vmatpush.bf16.msra.mxu1 %v4986_v21  ;;  %3035 = vmatmul.bf16.vlgmr.msrb.gmra.mxu2 %v5867_v42  ;;  %v4983_v42 = vld [vmem:[%s5808_s21 + $0x260] sm:$0xff]  ;;  %v3154_v21 = vrot.slane %v6002_v10, 3 }
 0x166   : > { %3401 = vmatpush.bf16.msra.mxu2 %v4994_v16  ;;  %3053 = vmatmul.bf16.vlgmr.msrb.gmra.mxu3 %v5890_v57  ;;  %v4999_v57 = vld [vmem:[%s5808_s21 + $0x2e0] sm:$0xff] }
 0x167   : > { %3419 = vmatpush.bf16.msra.mxu3 %v5002_v24  ;;  %v4979_v16 = vld [vmem:[%s5808_s21 + $0x240] sm:$0xff]  ;;  %v5034_v24 = vld [vmem:[%s5808_s21 + $0x3f8] sm:$0xff] }
 0x168   : > { %3366 = vmatpush.bf16.msra.mxu0 %v4977_v28  ;;  %v4995_v18 = vld [vmem:[%s5808_s21 + $0x2c0] sm:$0xff]  ;;  %v3159_v28 = vrot.slane %v6015_v22, 3 }
 0x169   : > { %3384 = vmatpush.bf16.msra.mxu1 %v4985_v30  ;;  %v3160_v30 = vrot.slane %v6018_v15, 3 }
 0x16a   : > { %3402 = vmatpush.bf16.msra.mxu2 %v4993_v26  ;;  %v5025_v26 = vld [vmem:[%s5808_s21 + $0x3b0] sm:$0xff] }
 0x16b   : > { %3420 = vmatpush.bf16.msra.mxu3 %v5001_v31  ;;  %v3162_v31 = vrot.slane %v6024_v17, 3 }
 0x16c   : > { %3367 = vmatpush.bf16.msra.mxu0 %v4976_v34  ;;  %v5017_v34 = vld [vmem:[%s5808_s21 + $0x370] sm:$0xff] }
 0x16d   : > { %3385 = vmatpush.bf16.msra.mxu1 %v4984_v35  ;;  %v3155_v35 = vsel %vm3152_vm1, %v3153_v33, %v3154_v21  ;;  %v3573_v33 = vshll.u32 %v6024_v17, 16 }
 0x16e   : > { %3403 = vmatpush.bf16.msra.mxu2 %v4992_v32  ;;  %v3163_v32 = vrot.slane %v6027_v25, 3 }
 0x16f   : > { %3421 = vmatpush.bf16.msra.mxu3 %v5000_v38  ;;  %v3158_v38 = vsel %vm3152_vm1, %v3156_v27, %v3157_v50 }
 0x170   : > { %3368 = vmatpush.bf16.msra.mxu0 %v4975_v37  ;;  %v5009_v37 = vld [vmem:[%s5808_s21 + $0x330] sm:$0xff] }
 0x171   : > { %3386 = vmatpush.bf16.msra.mxu1 %v4983_v42  ;;  %v3164_v42 = vsel %vm3152_vm1, %v3162_v31, %v3163_v32 }
 0x172   : > { %3404 = vmatpush.bf16.msra.mxu2 %v4991_v36  ;;  %v3161_v36 = vsel %vm3152_vm1, %v3159_v28, %v3160_v30 }
 0x173   : > { %3422 = vmatpush.bf16.msra.mxu3 %v4999_v57  ;;  %3004 = vmatmul.bf16.gmra.mxu0 %v2787_v47  ;;  %v5033_v57 = vld [vmem:[%s5808_s21 + $0x3f0] sm:$0xff]  ;;  %v5023_v47 = vld [vmem:[%s5808_s21 + $0x3a0] sm:$0xff] }
 0x174   : > { %3369 = vmatpush.bf16.msra.mxu0 %v4974_v41  ;;  %3022 = vmatmul.bf16.gmra.mxu1 %v2788_v49  ;;  %v5016_v41 = vld [vmem:[%s5808_s21 + $0x368] sm:$0xff]  ;;  %v3440_v49 = vld [vmem:[%s5826_s26 + $0x30] sm:$0xff] }
 0x175   : > { %3387 = vmatpush.bf16.msra.mxu1 %v4982_v43  ;;  %3040 = vmatmul.bf16.gmra.mxu2 %v2789_v51  ;;  %v5008_v43 = vld [vmem:[%s5808_s21 + $0x328] sm:$0xff]  ;;  %v5007_v51 = vld [vmem:[%s5808_s21 + $0x320] sm:$0xff]  ;;  %v3509_v59 = vunpack.c.l.b16 %v3440_v49 }
 0x176   : > { %3405 = vmatpush.bf16.msra.mxu2 %v4990_v39  ;;  %3058 = vmatmul.bf16.gmra.mxu3 %v2790_v54  ;;  %v5024_v39 = vld [vmem:[%s5808_s21 + $0x3a8] sm:$0xff]  ;;  %v5022_v54 = vld [vmem:[%s5808_s21 + $0x398] sm:$0xff] }
 0x177   : > { %3423 = vmatpush.bf16.msra.mxu3 %v4998_v46  ;;  %v5032_v46 = vld [vmem:[%s5808_s21 + $0x3e8] sm:$0xff]  ;;  %v3513_v4 = vpack.c.b16 %v3509_v59, %v5839_v23  ;;  %v3519_v23 = vshrl.u32 %v5999_v9, 16 }
 0x178   : > { %3370 = vmatpush.bf16.msra.mxu0 %v4973_v52  ;;  %v5031_v52 = vld [vmem:[%s5808_s21 + $0x3e0] sm:$0xff] }
 0x179   : > { %3388 = vmatpush.bf16.msra.mxu1 %v4981_v56  ;;  %v3441_v56 = vld [vmem:[%s5826_s26 + $0x38] sm:$0xff] }
 0x17a   : > { %3406 = vmatpush.bf16.msra.mxu2 %v4989_v48  ;;  %v5015_v48 = vld [vmem:[%s5808_s21 + $0x360] sm:$0xff]  ;;  %v3511_v62 = vunpack.c.l.b16 %v3441_v56  ;;  %v3512_v1 = vunpack.c.h.b16 %v3441_v56 }
 0x17b   : > { %3424 = vmatpush.bf16.msra.mxu3 %v4997_v60  ;;  %v3510_v60 = vunpack.c.h.b16 %v3440_v49 }
 0x17c   : > { %3371 = vmatpush.bf16.msra.mxu0 %v4972_v2  ;;  %v5013_v2 = vld [vmem:[%s5808_s21 + $0x350] sm:$0xff]  ;;  %v3515_v45 = vpack.c.b16 %v3511_v62, %v5863_v40  ;;  %v3516_v6 = vpack.c.b16 %v3512_v1, %v5886_v55  ;;  %v3536_v40 = vshrl.u32 %v6008_v13, 16  ;;  %v3539_v55 = vshll.u32 %v6008_v13, 16 }
 0x17d   : > { %3389 = vmatpush.bf16.msra.mxu1 %v4980_v53  ;;  %v3514_v44 = vpack.c.b16 %v3510_v60, %v5847_v29  ;;  %v5029_v53 = vld [vmem:[%s5808_s21 + $0x3d0] sm:$0xff]  ;;  %v3522_v29 = vshll.u32 %v5999_v9, 16  ;;  %v5004_v9 = vld [vmem:[%s5808_s21 + $0x308] sm:$0xff]  ;;  %v3570_v13 = vshrl.u32 %v6024_v17, 16  ;;  %v5027_v17 = vld [vmem:[%s5808_s21 + $0x3c0] sm:$0xff] }
 0x17e   : > { %3407 = vmatpush.bf16.msra.mxu2 %v4988_v63  ;;  %v5030_v63 = vld [vmem:[%s5808_s21 + $0x3d8] sm:$0xff]  ;;  %v3564_v15 = vshll.u32 %v3515_v45, 16  ;;  %v3578_v25 = vshrl.u32 %v3516_v6, 16  ;;  %v3538_v28 = vrot.slane %v3536_v40, 3 }
 0x17f   : > { %3425 = vmatpush.bf16.msra.mxu3 %v4996_v3  ;;  %v5020_v3 = vld [vmem:[%s5808_s21 + $0x388] sm:$0xff]  ;;  %v3544_v10 = vshrl.u32 %v3514_v44, 16  ;;  %v3524_v27 = vrot.slane %v3522_v29, 4 }
 0x180   : > { %3372 = vmatpush.bf16.msra.mxu0 %v4971_v12  ;;  %v3547_v12 = vshll.u32 %v3514_v44, 16 }
 0x181   : > { %3390 = vmatpush.bf16.msra.mxu1 %v4979_v16  ;;  %v3556_v16 = vshll.u32 %v6015_v22, 16  ;;  %v3546_v31 = vrot.slane %v3544_v10, 3 }
 0x182   : > { %3408 = vmatpush.bf16.msra.mxu2 %v4987_v8  ;;  %v3527_v8 = vshrl.u32 %v3513_v4, 16 }
 0x183   : > { %3426 = vmatpush.bf16.msra.mxu3 %v4995_v18  ;;  %3373 = vmatmul.bf16.vlgmr.msra.gmra.mxu0 %v3155_v35  ;;  %v3561_v18 = vshrl.u32 %v3515_v45, 16  ;;  %v3555_v35 = vrot.slane %v3553_v14, 3 }
 0x184   : > { %3786 = vmatpush.bf16.msrb.mxu0 %v5010_v19  ;;  %3391 = vmatmul.bf16.vlgmr.msra.gmra.mxu1 %v3158_v38  ;;  %v5028_v19 = vld [vmem:[%s5808_s21 + $0x3c8] sm:$0xff]  ;;  %v3558_v38 = vrot.slane %v3556_v16, 4 }
 0x185   : > { %3804 = vmatpush.bf16.msrb.mxu1 %v5018_v20  ;;  %3409 = vmatmul.bf16.vlgmr.msra.gmra.mxu2 %v3161_v36  ;;  %v5019_v20 = vld [vmem:[%s5808_s21 + $0x380] sm:$0xff]  ;;  %v3563_v36 = vrot.slane %v3561_v18, 3 }
 0x186   : > { %3822 = vmatpush.bf16.msrb.mxu2 %v5026_v11  ;;  %3427 = vmatmul.bf16.vlgmr.msra.gmra.mxu3 %v3164_v42  ;;  %v3530_v11 = vshll.u32 %v3513_v4, 16  ;;  %v3572_v42 = vrot.slane %v3570_v13, 3  ;;  %v3559_v49 = vor.u32 %v3558_v38, %v3555_v35 }
 0x187   : > { %3840 = vmatpush.bf16.msrb.mxu3 %v5034_v24  ;;  %v5011_v24 = vld [vmem:[%s5808_s21 + $0x340] sm:$0xff] }
 0x188   : > { %3787 = vmatpush.bf16.msrb.mxu0 %v5009_v37  ;;  %v3532_v22 = vrot.slane %v3530_v11, 4  ;;  %v3566_v37 = vrot.slane %v3564_v15, 4 }
 0x189   : > { %3805 = vmatpush.bf16.msrb.mxu1 %v5017_v34  ;;  %v5003_v34 = vld [vmem:[%s5808_s21 + $0x300] sm:$0xff] }
 0x18a   : > { %3823 = vmatpush.bf16.msrb.mxu2 %v5025_v26  ;;  %v3521_v26 = vrot.slane %v3519_v23, 3 }
 0x18b   : > { %3841 = vmatpush.bf16.msrb.mxu3 %v5033_v57  ;;  %v3575_v57 = vrot.slane %v3573_v33, 4 }
 0x18c   : > { %3788 = vmatpush.bf16.msrb.mxu0 %v5008_v43  ;;  %v3525_v43 = vor.u32 %v3524_v27, %v3521_v26 }
 0x18d   : > { %3806 = vmatpush.bf16.msrb.mxu1 %v5016_v41 }
 0x18e   : > { %3824 = vmatpush.bf16.msrb.mxu2 %v5024_v39  ;;  %v3580_v39 = vrot.slane %v3578_v25, 3 }
 0x18f   : > { %3842 = vmatpush.bf16.msrb.mxu3 %v5032_v46 }
 0x190   : > { %3789 = vmatpush.bf16.msrb.mxu0 %v5007_v51  ;;  %v3567_v51 = vor.u32 %v3566_v37, %v3563_v36 }
 0x191   : > { %3807 = vmatpush.bf16.msrb.mxu1 %v5015_v48 }
 0x192   : > { %3825 = vmatpush.bf16.msrb.mxu2 %v5023_v47  ;;  %v3568_v59 = vsel %vm3517_vm2, %v3559_v49, %v3567_v51 }
 0x193   : > { %3843 = vmatpush.bf16.msrb.mxu3 %v5031_v52  ;;  %3378 = vmatmul.bf16.gmra.mxu0 %v3154_v21  ;;  %v3581_v21 = vshll.u32 %v3516_v6, 16  ;;  %v3576_v52 = vor.u32 %v3575_v57, %v3572_v42 }
 0x194   : > { %3790 = vmatpush.bf16.msrb.mxu0 %v5006_v61  ;;  %3396 = vmatmul.bf16.gmra.mxu1 %v3157_v50  ;;  %v3529_v50 = vrot.slane %v3527_v8, 3 }
 0x195   : > { %3808 = vmatpush.bf16.msrb.mxu1 %v5014_v58  ;;  %3414 = vmatmul.bf16.gmra.mxu2 %v3160_v30  ;;  %v3541_v30 = vrot.slane %v3539_v55, 4  ;;  %v3583_v41 = vrot.slane %v3581_v21, 4 }
 0x196   : > { %3826 = vmatpush.bf16.msrb.mxu2 %v5022_v54  ;;  %3432 = vmatmul.bf16.gmra.mxu3 %v3163_v32  ;;  %v3549_v32 = vrot.slane %v3547_v12, 4  ;;  %v3533_v46 = vor.u32 %v3532_v22, %v3529_v50 }
 0x197   : > { %3844 = vmatpush.bf16.msrb.mxu3 %v5030_v63  ;;  %v3542_v47 = vor.u32 %v3541_v30, %v3538_v28  ;;  %v3584_v54 = vor.u32 %v3583_v41, %v3580_v39 }
 0x198   : > { %3791 = vmatpush.bf16.msrb.mxu0 %v5005_v5  ;;  %v3550_v48 = vor.u32 %v3549_v32, %v3546_v31  ;;  %v3534_v56 = vsel %vm3517_vm2, %v3525_v43, %v3533_v46  ;;  %v3861_v32 = vlaneseq }
 0x199   : > { %3809 = vmatpush.bf16.msrb.mxu1 %v5013_v2  ;;  %v3585_v60 = vsel %vm3517_vm2, %v3576_v52, %v3584_v54 }
 0x19a   : > { %3827 = vmatpush.bf16.msrb.mxu2 %v5021_v0  ;;  %v3551_v58 = vsel %vm3517_vm2, %v3542_v47, %v3550_v48  ;;  %v6106_v36 = vshrl.u32 %v3861_v32, 7 }
 0x19b   : > { %3845 = vmatpush.bf16.msrb.mxu3 %v5029_v53 }
 0x19c   : > { %3792 = vmatpush.bf16.msrb.mxu0 %v5004_v9  ;;  %v3869_v43 = vshrl.u32 %v6106_v36, 16  ;;  %v6113_v49 = vadd.s32 8, %v6106_v36 }
 0x19d   : > { %3810 = vmatpush.bf16.msrb.mxu1 %v5012_v7 }
 0x19e   : > { %3828 = vmatpush.bf16.msrb.mxu2 %v5020_v3  ;;  %v3873_v52 = vmul.u32 43691, %v3869_v43 }
 0x19f   : > { %3846 = vmatpush.bf16.msrb.mxu3 %v5028_v19 }
 0x1a0   : > { %3793 = vmatpush.bf16.msrb.mxu0 %v5003_v34 }
 0x1a1   : > { %3811 = vmatpush.bf16.msrb.mxu1 %v5011_v24 }
 0x1a2   : > { %3829 = vmatpush.bf16.msrb.mxu2 %v5019_v20 }
 0x1a3   : > { %3847 = vmatpush.bf16.msrb.mxu3 %v5027_v17  ;;  %3794 = vmatmul.bf16.vlgmr.msrb.gmra.mxu0 %v3534_v56  ;;  %v3868_v17 = vand.u32 65535, %v6106_v36  ;;  %v3897_v56 = vand.u32 65535, %v6113_v49 }
 0x1a4   : > { %3812 = vmatmul.bf16.vlgmr.msrb.gmra.mxu1 %v3551_v58  ;;  %v3898_v58 = vshrl.u32 %v6113_v49, 16 }
 0x1a5   : > { %3830 = vmatmul.bf16.vlgmr.msrb.gmra.mxu2 %v3568_v59 }
 0x1a6   : > { %3848 = vmatmul.bf16.vlgmr.msrb.gmra.mxu3 %v3585_v60  ;;  %v3901_v60 = vmul.u32 43690, %v3897_v56 }
 0x1b3   : > { %3799 = vmatmul.bf16.gmra.mxu0 %v3533_v46  ;;  %v3872_v46 = vmul.u32 43690, %v3868_v17 }
 0x1b4   : > { %3817 = vmatmul.bf16.gmra.mxu1 %v3550_v48 }
 0x1b5   : > { %3835 = vmatmul.bf16.gmra.mxu2 %v3567_v51  ;;  %v3871_v51 = vmul.u32 43691, %v3868_v17 }
 0x1b6   : > { %3853 = vmatmul.bf16.gmra.mxu3 %v3584_v54  ;;  %v3875_v54 = vshll.u32 %v3872_v46, 16 }
 0x1b8   : > { %vm3879_vm3 = vc.u32 %v3871_v51, %v3875_v54 }
 0x1c0   : > { %v2724_v61 = vpop.f32.mrf.mxu0 }
 0x1c1   : > { %v2742_v62 = vpop.f32.mrf.mxu1 }
 0x1c2   : > { %v2743_v63 = vadd.f32 %v2742_v62, %v2724_v61 }
 0x1c8   : > { %v2760_v0 = vpop.f32.mrf.mxu2  ;;  %v2726_v4 = vpop.f32.mrf.mxu0 }
 0x1c9   : > { %v2778_v1 = vpop.f32.mrf.mxu3  ;;  %v2761_v2 = vadd.f32 %v2760_v0, %v2743_v63  ;;  %v2744_v44 = vpop.f32.mrf.mxu1  ;;  %v3877_v63 = vshll.u32 %v3873_v52, 16 }
 0x1ca   : > { %v2745_v5 = vadd.f32 %v2744_v44, %v2726_v4  ;;  %v3902_v4 = vmul.u32 43691, %v3898_v58  ;;  %v3904_v44 = vshll.u32 %v3901_v60, 16 }
 0x1cb   : > { %v2779_v45 = vadd.f32 %v2778_v1, %v2761_v2  ;;  %v3881_v1 = vadd.s32 %v3875_v54, %v3871_v51  ;;  %v3900_v2 = vmul.u32 43691, %v3897_v56 }
 0x1cd   : > { %vm3883_vm4 = vc.u32 %v3881_v1, %v3877_v63  ;;  %vm3908_vm5 = vc.u32 %v3900_v2, %v3904_v44 }
 0x1d0   : > { %v2762_v53 = vpop.f32.mrf.mxu2  ;;  %v2729_v7 = vpop.f32.mrf.mxu0 }
 0x1d1   : > { %v2780_v3 = vpop.f32.mrf.mxu3  ;;  %v2763_v6 = vadd.f32 %v2762_v53, %v2745_v5  ;;  %v2747_v23 = vpop.f32.mrf.mxu1  ;;  %v6122_v5 = vadd.s32 16, %v6106_v36  ;;  %v5191_v53 = vmov 0  }
 0x1d2   : > { %v2748_v29 = vadd.f32 %v2747_v23, %v2729_v7  ;;  %v3906_v7 = vshll.u32 %v3902_v4, 16  ;;  %v3910_v23 = vadd.s32 %v3904_v44, %v3900_v2 }
 0x1d3   : > { %v2781_v8 = vadd.f32 %v2780_v3, %v2763_v6  ;;  %v3880_v3 = vsel %vm3879_vm3, 1, %v5191_v53  ;;  %v3926_v6 = vand.u32 65535, %v6122_v5 }
 0x1d4   : > { %vm3912_vm6 = vc.u32 %v3910_v23, %v3906_v7 }
 0x1d8   : > { %v2765_v11 = vpop.f32.mrf.mxu2  ;;  %v2731_v10 = vpop.f32.mrf.mxu0 }
 0x1d9   : > { %v2783_v40 = vpop.f32.mrf.mxu3  ;;  %v2766_v55 = vadd.f32 %v2765_v11, %v2748_v29  ;;  %v2749_v12 = vpop.f32.mrf.mxu1  ;;  %v3927_v29 = vshrl.u32 %v6122_v5, 16 }
 0x1db   : > { %v2784_v9 = vadd.f32 %v2783_v40, %v2766_v55  ;;  %v3903_v55 = vmul.u32 43690, %v3898_v58 }
 0x1e0   : > { %v2767_v14 = vpop.f32.mrf.mxu2  ;;  %v3000_v18 = vpop.f32.mrf.mxu0 }
 0x1e1   : > { %v2785_v16 = vpop.f32.mrf.mxu3  ;;  %v3001_v15 = vadd.f32 %v3000_v18, %v2779_v45  ;;  %v3018_v19 = vpop.f32.mrf.mxu1  ;;  %v3874_v45 = vmul.u32 43690, %v3869_v43  ;;  %v3909_v14 = vsel %vm3908_vm5, 1, %v5191_v53  ;;  %v3931_v18 = vmul.u32 43691, %v3927_v29 }
 0x1e2   : > { %v3929_v16 = vmul.u32 43691, %v3926_v6 }
 0x1e3   : > { %v3019_v20 = vadd.f32 %v3018_v19, %v3001_v15  ;;  %v3882_v40 = vadd.s32 %v3880_v3, %v3874_v45 }
 0x1e8   : > { %v3036_v13 = vpop.f32.mrf.mxu2  ;;  %v3002_v21 = vpop.f32.mrf.mxu0 }
 0x1e9   : > { %v3037_v33 = vadd.f32 %v3036_v13, %v3019_v20  ;;  %v3054_v25 = vpop.f32.mrf.mxu3  ;;  %v3003_v24 = vadd.f32 %v3002_v21, %v2781_v8  ;;  %v3020_v26 = vpop.f32.mrf.mxu1  ;;  %v3930_v8 = vmul.u32 43690, %v3926_v6  ;;  %v3876_v20 = vshrl.u32 %v3872_v46, 16 }
 0x1ea   : > { %v3935_v21 = vshll.u32 %v3931_v18, 16 }
 0x1eb   : > { %v6102_v27 = vadd.f32 %v3054_v25, %v3037_v33  ;;  %v3021_v50 = vadd.f32 %v3020_v26, %v3003_v24  ;;  %v3933_v19 = vshll.u32 %v3930_v8, 16  ;;  %v3911_v33 = vadd.s32 %v3909_v14, %v3903_v55 }
 0x1ec   : > { %v3913_v25 = vsel %vm3912_vm6, 1, %v5191_v53  ;;  %v3932_v26 = vmul.u32 43690, %v3927_v29  ;;  %v3934_v43 = vshrl.u32 %v3930_v8, 16 }
 0x1ed   : > { %vm3937_vm7 = vc.u32 %v3929_v16, %v3933_v19  ;;  %v3939_v24 = vadd.s32 %v3933_v19, %v3929_v16 }
 0x1ef   : > { %vm3941_vm8 = vc.u32 %v3939_v24, %v3935_v21 }
 0x1f0   : > { %v3038_v22 = vpop.f32.mrf.mxu2  ;;  %v3005_v31 = vpop.f32.mrf.mxu0 }
 0x1f1   : > { %v3039_v28 = vadd.f32 %v3038_v22, %v3021_v50  ;;  %v3056_v30 = vpop.f32.mrf.mxu3  ;;  %v3006_v34 = vadd.f32 %v3005_v31, %v2784_v9  ;;  %v3023_v35 = vpop.f32.mrf.mxu1  ;;  %v3884_v9 = vsel %vm3883_vm4, 1, %v5191_v53  ;;  %v3905_v22 = vshrl.u32 %v3901_v60, 16 }
 0x1f2   : > { %v3886_v13 = vadd.s32 %v3884_v9, %v3882_v40  ;;  %v3936_v60 = vshrl.u32 %v3931_v18, 16 }
 0x1f3   : > { %v6104_v38 = vadd.f32 %v3056_v30, %v3039_v28  ;;  %v3024_v37 = vadd.f32 %v3023_v35, %v3006_v34  ;;  %v3915_v28 = vadd.s32 %v3913_v25, %v3911_v33  ;;  %v3938_v30 = vsel %vm3937_vm7, 1, %v5191_v53 }
 0x1f4   : > { %v3878_v34 = vshrl.u32 %v3873_v52, 16  ;;  %v3887_v35 = vadd.s32 %v3886_v13, %v3876_v20  ;;  %v3940_v17 = vadd.s32 %v3938_v30, %v3932_v26 }
 0x1f8   : > { %v3041_v42 = vpop.f32.mrf.mxu2  ;;  %v3007_v41 = vpop.f32.mrf.mxu0 }
 0x1f9   : > { %v3042_v57 = vadd.f32 %v3041_v42, %v3024_v37  ;;  %v3059_v39 = vpop.f32.mrf.mxu3  ;;  %v3025_v47 = vpop.f32.mrf.mxu1  ;;  %v3907_v42 = vshrl.u32 %v3902_v4, 16  ;;  %v3888_v41 = vadd.s32 %v3887_v35, %v3878_v34  ;;  %v5192_v34 = vmov 0.0  }
 0x1fb   : > { %v6110_v48 = vadd.f32 %v3059_v39, %v3042_v57  ;;  %v3916_v57 = vadd.s32 %v3915_v28, %v3905_v22  ;;  %v3942_v39 = vsel %vm3941_vm8, 1, %v5191_v53  ;;  %v3889_v58 = vshrl.u32 %v3888_v41, 2 }
 0x1fc   : > { %v3944_v46 = vadd.s32 %v3942_v39, %v3940_v17 }
 0x1fd   : > { %v3917_v51 = vadd.s32 %v3916_v57, %v3907_v42  ;;  %v3890_v63 = vmul.u32 6, %v3889_v58 }
 0x1ff   : > { %v3918_v52 = vshrl.u32 %v3917_v51, 2  ;;  %v3891_v3 = vsub.s32 %v6106_v36, %v3890_v63 }
 0x200   : > { %v3043_v59 = vpop.f32.mrf.mxu2  ;;  %v6117_v62 = vpop.f32.mrf.mxu0 }
 0x201   : > { %v3061_v61 = vpop.f32.mrf.mxu3  ;;  %v6119_v0 = vpop.f32.mrf.mxu1  ;;  %v3919_v44 = vmul.u32 6, %v3918_v52  ;;  %vm3952_vm9 = vcmp.ne.s32.totalorder %v3891_v3, 0  ;;  %vm3955_vm10 = vcmp.lt.s32.totalorder %v3891_v3, 0  ;;  %v3961_v40 = vadd.s32 6, %v3891_v3 }
 0x202   : > { %v3945_v61 = vadd.s32 %v3944_v46, %v3934_v43  ;;  %v3393_v4 = vadd.f32 %v6119_v0, %v6117_v62  ;;  %vm6134_vm11 = vmand %vm3955_vm10, %vm3952_vm9 }
 0x203   : > { %v3920_v23 = vsub.s32 %v6113_v49, %v3919_v44  ;;  %v3964_v20 = vsel %vm6134_vm11, %v3961_v40, %v3891_v3 }
 0x204   : > { %v3946_v1 = vadd.s32 %v3945_v61, %v3936_v60  ;;  %vm3967_vm15 = vcmp.lt.s32.totalorder %v3964_v20, 4 }
 0x205   : > { %vm3953_vm12 = vcmp.ne.s32.totalorder %v3920_v23, 0  ;;  %vm3956_vm13 = vcmp.lt.s32.totalorder %v3920_v23, 0  ;;  %v3962_v19 = vadd.s32 6, %v3920_v23 }
 0x206   : > { %v3947_v7 = vshrl.u32 %v3946_v1, 2  ;;  %vm3959_vm14 = vmand %vm3956_vm13, %vm3953_vm12 }
 0x207   : > { %v3965_v25 = vsel %vm3959_vm14, %v3962_v19, %v3920_v23 }
 0x208   : > { %v3410_v11 = vpop.f32.mrf.mxu2  ;;  %v3376_v12 = vpop.f32.mrf.mxu0  ;;  %v3948_v55 = vmul.u32 6, %v3947_v7  ;;  %vm3968_vm2 = vcmp.lt.s32.totalorder %v3965_v25, 4 }
 0x209   : > { %v6126_v10 = vpop.f32.mrf.mxu3  ;;  %v3394_v15 = vpop.f32.mrf.mxu1  ;;  %v3411_v29 = vadd.f32 %v3410_v11, %v3393_v4 }
 0x20a   : > { %v3395_v9 = vadd.f32 %v3394_v15, %v3376_v12  ;;  %v3949_v12 = vsub.s32 %v6122_v5, %v3948_v55  ;;  %v6145_v5 = vsel %vm3967_vm15, 1.0, %v5192_v34 }
 0x20b   : > { %v3429_v36 = vadd.f32 %v6126_v10, %v3411_v29 }
 0x20c   : > { %vm3954_vm0 = vcmp.ne.s32.totalorder %v3949_v12, 0  ;;  %vm3957_vm1 = vcmp.lt.s32.totalorder %v3949_v12, 0  ;;  %v3963_v30 = vadd.s32 6, %v3949_v12 }
 0x20d   : > { %v3437_v15 = vadd.f32 %v3429_v36, %v6102_v27  ;;  %vm3960_vm3 = vmand %vm3957_vm1, %vm3954_vm0 }
 0x20e   : > { %v3966_v39 = vsel %vm3960_vm3, %v3963_v30, %v3949_v12 }
 0x20f   : > { %vm3969_vm4 = vcmp.lt.s32.totalorder %v3966_v39, 4 }
 0x210   : > { %v3412_v50 = vpop.f32.mrf.mxu2  ;;  %v3379_v32 = vpop.f32.mrf.mxu0  ;;  %v4903_v1 = vsel %vm3969_vm4, 1.0, %v5192_v34 }
 0x211   : > { %v3430_v31 = vpop.f32.mrf.mxu3  ;;  %v3397_v37 = vpop.f32.mrf.mxu1  ;;  %v3413_v49 = vadd.f32 %v3412_v50, %v3395_v9 }
 0x212   : > { %v3398_v21 = vadd.f32 %v3397_v37, %v3379_v32  ;;  %v6148_v37 = vsel %vm3968_vm2, 1.0, %v5192_v34 }
 0x213   : > { %v3431_v33 = vadd.f32 %v3430_v31, %v3413_v49 }
 0x215   : > { %v3438_v31 = vadd.f32 %v3431_v33, %v6104_v38 }
 0x218   : > { %v3415_v47 = vpop.f32.mrf.mxu2  ;;  %v3381_v56 = vpop.f32.mrf.mxu0 }
 0x219   : > { %v6128_v54 = vpop.f32.mrf.mxu3  ;;  %v3399_v59 = vpop.f32.mrf.mxu1  ;;  %v3416_v35 = vadd.f32 %v3415_v47, %v3398_v21 }
 0x21b   : > { %v3434_v41 = vadd.f32 %v6128_v54, %v3416_v35 }
 0x21d   : > { %v3439_v61 = vadd.f32 %v3434_v41, %v6110_v48 }
 0x220   : > { %v3417_v2 = vpop.f32.mrf.mxu2  ;;  %v3795_v53 = vpop.f32.mrf.mxu0 }
 0x221   : > { %v3435_v45 = vpop.f32.mrf.mxu3  ;;  %v3813_v6 = vpop.f32.mrf.mxu1 }
 0x222   : > { %v3814_v8 = vadd.f32 %v3813_v6, %v3795_v53 }
 0x228   : > { %v3831_v14 = vpop.f32.mrf.mxu2  ;;  %v3797_v18 = vpop.f32.mrf.mxu0 }
 0x229   : > { %v3832_v62 = vadd.f32 %v3831_v14, %v3814_v8  ;;  %v3849_v0 = vpop.f32.mrf.mxu3  ;;  %v3815_v11 = vpop.f32.mrf.mxu1 }
 0x22a   : > { %v3816_v10 = vadd.f32 %v3815_v11, %v3797_v18 }
 0x22b   : > { %v3850_v13 = vadd.f32 %v3849_v0, %v3832_v62 }
 0x22d   : > { %v6143_v26 = vadd.f32 %v3850_v13, %v3437_v15 }
 0x22f   : > { %v3976_v17 = vmul.f32 %v6145_v5, %v6143_v26 }
 0x230   : > { %v3833_v24 = vpop.f32.mrf.mxu2  ;;  %v3800_v28 = vpop.f32.mrf.mxu0 }
 0x231   : > { %v3834_v50 = vadd.f32 %v3833_v24, %v3816_v10  ;;  %v3851_v22 = vpop.f32.mrf.mxu3  ;;  %v3818_v27 = vpop.f32.mrf.mxu1  ;;  %v3987_v51 = vmul.f32 %v3976_v17, %v3976_v17 }
 0x232   : > { %v3819_v57 = vadd.f32 %v3818_v27, %v3800_v28 }
 0x233   : > { %v3852_v32 = vadd.f32 %v3851_v22, %v3834_v50 }
 0x235   : > { %v3859_v42 = vadd.f32 %v3852_v32, %v3438_v31 }
 0x237   : > { %v3977_v43 = vmul.f32 %v6148_v37, %v3859_v42 }
 0x238   : > { %v3836_v46 = vpop.f32.mrf.mxu2  ;;  %v3802_v59 = vpop.f32.mrf.mxu0 }
 0x239   : > { %v3979_v56 = vadd.f32 %v3977_v43, %v3976_v17  ;;  %v3988_v58 = vmul.f32 %v3977_v43, %v3977_v43  ;;  %v3837_v38 = vadd.f32 %v3836_v46, %v3819_v57  ;;  %v3854_v47 = vpop.f32.mrf.mxu3  ;;  %v3820_v60 = vpop.f32.mrf.mxu1 }
 0x23b   : > { %v3990_v52 = vadd.f32 %v3988_v58, %v3987_v51  ;;  %v3855_v63 = vadd.f32 %v3854_v47, %v3837_v38 }
 0x23d   : > { %v3860_v2 = vadd.f32 %v3855_v63, %v3439_v61 }
 0x23f   : > { %v3978_v44 = vmul.f32 %v4903_v1, %v3860_v2 }
 0x240   : > { %v3838_v4 = vpop.f32.mrf.mxu2 }
 0x241   : > { %v3980_v54 = vadd.f32 %v3979_v56, %v3978_v44  ;;  %v3989_v45 = vmul.f32 %v3978_v44, %v3978_v44  ;;  %v3856_v53 = vpop.f32.mrf.mxu3 }
 0x243   : > { %v3981_v3 = vrot.slane %v3980_v54, 4  ;;  %v3991_v6 = vadd.f32 %v3990_v52, %v3989_v45 }
 0x245   : > { %v3982_v7 = vadd.f32 %v3981_v3, %v3980_v54  ;;  %v3992_v23 = vrot.slane %v3991_v6, 4 }
 0x247   : > { %v3983_v29 = vrot.slane %v3982_v7, 2  ;;  %v3993_v8 = vadd.f32 %v3992_v23, %v3991_v6 }
 0x249   : > { %v3984_v40 = vadd.f32 %v3983_v29, %v3982_v7  ;;  %v3994_v55 = vrot.slane %v3993_v8, 2 }
 0x24b   : > { %v3985_v9 = vrot.slane %v3984_v40, 1  ;;  %v3995_v14 = vadd.f32 %v3994_v55, %v3993_v8 }
 0x24d   : > { %v3986_v48 = vadd.f32 %v3985_v9, %v3984_v40  ;;  %v3996_v16 = vrot.slane %v3995_v14, 1 }
 0x24f   : > { %v3997_v36 = vadd.f32 %v3996_v16, %v3995_v14  ;;  %v3998_v62 = vmul.f32 0.0625, %v3986_v48 }
 0x251   : > { %v3999_v0 = vmul.f32 0.0625, %v3997_v36  ;;  %v4000_v18 = vmul.f32 %v3998_v62, %v3998_v62  ;;  %v4003_v49 = vsub.f32 %v6143_v26, %v3998_v62  ;;  %v4004_v11 = vsub.f32 %v3859_v42, %v3998_v62 }
 0x252   : > { %v4005_v19 = vsub.f32 %v3860_v2, %v3998_v62 }
 0x253   : > { %v4001_v20 = vsub.f32 %v3999_v0, %v4000_v18 }
 0x255   : > { %v4002_v12 = vmax.f32 %v4001_v20, 0.0 }
 0x257   : > { %v4006_v15 = vadd.f32 1e-05, %v4002_v12 }
 0x259   : > { %5117 = vrsqrt.f32 %v4006_v15  ;;  %vm4013_vm6 = vweird.f32 %v4006_v15 }
 0x25f   : > { %v5118_v13 = vpop.eup %5117 }
 0x260   : > { %v4008_v33 = vmul.f32 %v5118_v13, %v4006_v15  ;;  %vm4014_vm5 = vweird.f32 %v5118_v13 }
 0x261   : > { %vm4015_vm7 = vmor %vm4013_vm6, %vm4014_vm5 }
 0x262   : > { %v4009_v25 = vmul.f32 %v5118_v13, %v4008_v33 }
 0x264   : > { %v4010_v21 = vmul.f32 0.5, %v4009_v25 }
 0x266   : > { %v4011_v10 = vsub.f32 1.5, %v4010_v21 }
 0x268   : > { %v4012_v24 = vmul.f32 %v5118_v13, %v4011_v10 }
 0x26a   : > { %v4016_v50 = vsel %vm4015_vm7, %v5118_v13, %v4012_v24 }
 0x26b   : > { %v4017_v22 = vmul.f32 %v4016_v50, %v4003_v49  ;;  %v4018_v26 = vmul.f32 %v4016_v50, %v4004_v11  ;;  %v4019_v28 = vmul.f32 %v4016_v50, %v4005_v19 }
 0x26d   : > { %vm4020_vm8 = vcmp.gt.f32.partialorder %v4017_v22, 0.0  ;;  %vm4021_vm9 = vcmp.gt.f32.partialorder %v4018_v26, 0.0  ;;  %vm4022_vm10 = vcmp.gt.f32.partialorder %v4019_v28, 0.0  ;;  %v4023_v30 = vmul.f32 0.2, %v4017_v22 }
 0x26e   : > { %v4024_v34 = vmul.f32 0.2, %v4018_v26  ;;  %v4025_v27 = vmul.f32 0.2, %v4019_v28 }
 0x26f   : > { %v4026_v31 = vsel %vm4020_vm8, %v4017_v22, %v4023_v30 }
 0x270   : > { %v4027_v35 = vsel %vm4021_vm9, %v4018_v26, %v4024_v34  ;;  %v4028_v32 = vsel %vm4022_vm10, %v4019_v28, %v4025_v27  ;;  %v4029_v17 = vmul.f32 %v6145_v5, %v4026_v31 }
 0x271   : > { %v4030_v42 = vmul.f32 %v6148_v37, %v4027_v35  ;;  %v4031_v57 = vmul.f32 %v4903_v1, %v4028_v32 }
 0x272   : > { %4044 = sbr.rel (!%p5275_p9) target bundleno = 640 (0x280), region = 84 }
 0x273   : > { %v4034_v39 = vpack.c.bf16 %v4031_v57, %v4031_v57  ;;  %v5038_v41 = vpack.c.bf16 %v4030_v42, %v4029_v17 }
 0x275   : > { %5039 = vst [vmem:[%s2279_s9] sm:$0xff] %v5038_v41  }
 0x276   : > { %4037 = vst [vmem:[%s2279_s9 + $0x8] sm:$0xf] %v4034_v39 }
 0x27c   : > { %v4065_v43 = vld [vmem:[%s2279_s9] sm:$0xf]  ;;  %v4067_v46 = vld [vmem:[%s2279_s9 + $0x4] sm:$0xf] }
 0x27d   : > { %v4069_v5 = vld [vmem:[%s2279_s9 + $0x8] sm:$0xf]  ;;  %4066 = vst [vmem:[%s4048_s8] sm:$0xf] %v4065_v43 }
 0x27e   : > { %4068 = vst [vmem:[%s4048_s8 + $0x8] sm:$0xf] %v4067_v46 }
 0x27f   : > { %4070 = vst [vmem:[%s4048_s8 + $0x10] sm:$0xf] %v4069_v5 }
 0x280 PF: > { %s12_s17 = sadd.s32 1, %s5189_s17   ;;  %s6199_s9 = smov %s5161_s10 }
 0x281   : > { %p9_p1 = scmp.ge.s32.totalorder %s12_s17, 6   ;;  %s6200_s10 = smov %s5280_s28 }
 0x282   : > { %s6201_s11 = smov %s5169_s12  ;;  %s6202_s12 = smov %s5269_s24 }
 0x283   : > { %s6203_s13 = smov %s5181_s15  ;;  %s6204_s14 = smov %s5185_s16 }
 0x284   : > { %s6205_s15 = smov %s6208_s19  ;;  %s6206_s16 = smov %s6212_s20 }
 0x285   :  { %11 = sbr.rel (!%p9_p1) target bundleno = 5 (0x5), region = 166 }

// kernel: a_call__.7
= control target key start
LH: loop header
LB: loop body
LE: loop exit
PB: predicated region body
PF: predicated region fallthrough
CT: control target
= control target key end

     0   :  { %s4744_s1 = inlined_call_operand.vmem [shape: bf16[4096,128], index: 1, kind: input, shape index: {}]   ;;  %s4745_s0 = inlined_call_operand.vmem [shape: bf16[8,4096], index: 0, kind: input, shape index: {}]   ;;  %s4746_s2 = inlined_call_operand.vmem [shape: f32[1,128], index: 2, kind: input, shape index: {}]   ;;  %s4747_s3 = inlined_call_operand.vmem [shape: f32[8,128], index: 3, kind: output, shape index: {}]  }
   0x1   :  { %v3646_v0 = vld [vmem:[%s4744_s1 + $0x38] sm:$0xff]  ;;  %v3645_v4 = vld [vmem:[%s4744_s1 + $0x30] sm:$0xff]  ;;  %v3644_v8 = vld [vmem:[%s4744_s1 + $0x28] sm:$0xff] }
   0x2   :  { %v3654_v1 = vld [vmem:[%s4744_s1 + $0x78] sm:$0xff]  ;;  %2194 = vmatpush.bf16.msra.mxu0 %v3646_v0  ;;  %v3653_v5 = vld [vmem:[%s4744_s1 + $0x70] sm:$0xff]  ;;  %v3652_v9 = vld [vmem:[%s4744_s1 + $0x68] sm:$0xff] }
   0x3   :  { %v3662_v2 = vld [vmem:[%s4744_s1 + $0xb8] sm:$0xff]  ;;  %2207 = vmatpush.bf16.msra.mxu1 %v3654_v1  ;;  %v3661_v6 = vld [vmem:[%s4744_s1 + $0xb0] sm:$0xff]  ;;  %v3660_v10 = vld [vmem:[%s4744_s1 + $0xa8] sm:$0xff] }
   0x4   :  { %v3670_v3 = vld [vmem:[%s4744_s1 + $0xf8] sm:$0xff]  ;;  %2220 = vmatpush.bf16.msra.mxu2 %v3662_v2  ;;  %v3669_v7 = vld [vmem:[%s4744_s1 + $0xf0] sm:$0xff]  ;;  %v3668_v11 = vld [vmem:[%s4744_s1 + $0xe8] sm:$0xff] }
   0x5   :  { %2233 = vmatpush.bf16.msra.mxu3 %v3670_v3  ;;  %v3643_v12 = vld [vmem:[%s4744_s1 + $0x20] sm:$0xff]  ;;  %v3642_v16 = vld [vmem:[%s4744_s1 + $0x18] sm:$0xff]  ;;  %v3641_v20 = vld [vmem:[%s4744_s1 + $0x10] sm:$0xff] }
   0x6   :  { %2195 = vmatpush.bf16.msra.mxu0 %v3645_v4  ;;  %v3651_v13 = vld [vmem:[%s4744_s1 + $0x60] sm:$0xff]  ;;  %v3650_v17 = vld [vmem:[%s4744_s1 + $0x58] sm:$0xff]  ;;  %v3649_v21 = vld [vmem:[%s4744_s1 + $0x50] sm:$0xff] }
   0x7   :  { %2208 = vmatpush.bf16.msra.mxu1 %v3653_v5  ;;  %v3659_v14 = vld [vmem:[%s4744_s1 + $0xa0] sm:$0xff]  ;;  %v3658_v18 = vld [vmem:[%s4744_s1 + $0x98] sm:$0xff]  ;;  %v3657_v22 = vld [vmem:[%s4744_s1 + $0x90] sm:$0xff] }
   0x8   :  { %2221 = vmatpush.bf16.msra.mxu2 %v3661_v6  ;;  %v3667_v15 = vld [vmem:[%s4744_s1 + $0xe0] sm:$0xff]  ;;  %v3666_v19 = vld [vmem:[%s4744_s1 + $0xd8] sm:$0xff]  ;;  %v3665_v23 = vld [vmem:[%s4744_s1 + $0xd0] sm:$0xff] }
   0x9   :  { %2234 = vmatpush.bf16.msra.mxu3 %v3669_v7  ;;  %v3640_v24 = vld [vmem:[%s4744_s1 + $0x8] sm:$0xff]  ;;  %v14_v29 = vld [vmem:[%s4745_s0] sm:$0xff]  ;;  %v3678_v38 = vld [vmem:[%s4744_s1 + $0x138] sm:$0xff] }
   0xa   :  { %2196 = vmatpush.bf16.msra.mxu0 %v3644_v8  ;;  %v3648_v25 = vld [vmem:[%s4744_s1 + $0x48] sm:$0xff]  ;;  %v3639_v30 = vld [vmem:[%s4744_s1] sm:$0xff]  ;;  %v562_v33 = vunpack.c.l.b16 %v14_v29  ;;  %v563_v37 = vunpack.c.h.b16 %v14_v29  ;;  %v3686_v39 = vld [vmem:[%s4744_s1 + $0x178] sm:$0xff] }
   0xb   :  { %2209 = vmatpush.bf16.msra.mxu1 %v3652_v9  ;;  %v3656_v26 = vld [vmem:[%s4744_s1 + $0x88] sm:$0xff]  ;;  %v3647_v31 = vld [vmem:[%s4744_s1 + $0x40] sm:$0xff]  ;;  %v3694_v40 = vld [vmem:[%s4744_s1 + $0x1b8] sm:$0xff] }
   0xc   :  { %2222 = vmatpush.bf16.msra.mxu2 %v3660_v10  ;;  %v3664_v27 = vld [vmem:[%s4744_s1 + $0xc8] sm:$0xff]  ;;  %v3655_v34 = vld [vmem:[%s4744_s1 + $0x80] sm:$0xff]  ;;  %v3702_v41 = vld [vmem:[%s4744_s1 + $0x1f8] sm:$0xff]  ;;  %v594_v43 = vpack.c.b16 %v562_v33, %v562_v33  ;;  %v595_v45 = vpack.c.b16 %v563_v37, %v563_v37 }
   0xd   :  { %2235 = vmatpush.bf16.msra.mxu3 %v3668_v11  ;;  %v15_v28 = vld [vmem:[%s4745_s0 + $0x8] sm:$0xff]  ;;  %v3663_v35 = vld [vmem:[%s4744_s1 + $0xc0] sm:$0xff]  ;;  %v3677_v46 = vld [vmem:[%s4744_s1 + $0x130] sm:$0xff] }
   0xe   :  { %2197 = vmatpush.bf16.msra.mxu0 %v3643_v12  ;;  %v564_v32 = vunpack.c.l.b16 %v15_v28  ;;  %v565_v36 = vunpack.c.h.b16 %v15_v28  ;;  %v3685_v47 = vld [vmem:[%s4744_s1 + $0x170] sm:$0xff]  ;;  %v3676_v50 = vld [vmem:[%s4744_s1 + $0x128] sm:$0xff]  ;;  %v3675_v54 = vld [vmem:[%s4744_s1 + $0x120] sm:$0xff] }
   0xf   :  { %2210 = vmatpush.bf16.msra.mxu1 %v3651_v13  ;;  %v3693_v48 = vld [vmem:[%s4744_s1 + $0x1b0] sm:$0xff]  ;;  %v3684_v51 = vld [vmem:[%s4744_s1 + $0x168] sm:$0xff]  ;;  %v3683_v55 = vld [vmem:[%s4744_s1 + $0x160] sm:$0xff] }
  0x10   :  { %2223 = vmatpush.bf16.msra.mxu2 %v3659_v14  ;;  %v596_v42 = vpack.c.b16 %v564_v32, %v564_v32  ;;  %v597_v44 = vpack.c.b16 %v565_v36, %v565_v36  ;;  %v3701_v49 = vld [vmem:[%s4744_s1 + $0x1f0] sm:$0xff]  ;;  %v3692_v52 = vld [vmem:[%s4744_s1 + $0x1a8] sm:$0xff]  ;;  %v3691_v56 = vld [vmem:[%s4744_s1 + $0x1a0] sm:$0xff] }
  0x11   :  { %2236 = vmatpush.bf16.msra.mxu3 %v3667_v15  ;;  %v3700_v53 = vld [vmem:[%s4744_s1 + $0x1e8] sm:$0xff]  ;;  %v3699_v57 = vld [vmem:[%s4744_s1 + $0x1e0] sm:$0xff]  ;;  %v3674_v58 = vld [vmem:[%s4744_s1 + $0x118] sm:$0xff] }
  0x12   :  { %2198 = vmatpush.bf16.msra.mxu0 %v3642_v16  ;;  %v3682_v59 = vld [vmem:[%s4744_s1 + $0x158] sm:$0xff]  ;;  %v3673_v62 = vld [vmem:[%s4744_s1 + $0x110] sm:$0xff]  ;;  %v3672_v2 = vld [vmem:[%s4744_s1 + $0x108] sm:$0xff] }
  0x13   :  { %2211 = vmatpush.bf16.msra.mxu1 %v3650_v17  ;;  %v3690_v60 = vld [vmem:[%s4744_s1 + $0x198] sm:$0xff]  ;;  %v3681_v63 = vld [vmem:[%s4744_s1 + $0x150] sm:$0xff]  ;;  %v3680_v3 = vld [vmem:[%s4744_s1 + $0x148] sm:$0xff] }
  0x14   :  { %2224 = vmatpush.bf16.msra.mxu2 %v3658_v18  ;;  %v3698_v61 = vld [vmem:[%s4744_s1 + $0x1d8] sm:$0xff]  ;;  %v3689_v0 = vld [vmem:[%s4744_s1 + $0x190] sm:$0xff]  ;;  %v3688_v4 = vld [vmem:[%s4744_s1 + $0x188] sm:$0xff] }
  0x15   :  { %2237 = vmatpush.bf16.msra.mxu3 %v3666_v19  ;;  %v3697_v1 = vld [vmem:[%s4744_s1 + $0x1d0] sm:$0xff]  ;;  %v3696_v5 = vld [vmem:[%s4744_s1 + $0x1c8] sm:$0xff]  ;;  %v17_v6 = vld [vmem:[%s4745_s0 + $0x18] sm:$0xff] }
  0x16   :  { %2199 = vmatpush.bf16.msra.mxu0 %v3641_v20  ;;  %v16_v7 = vld [vmem:[%s4745_s0 + $0x10] sm:$0xff]  ;;  %v3671_v8 = vld [vmem:[%s4744_s1 + $0x100] sm:$0xff]  ;;  %v568_v10 = vunpack.c.l.b16 %v17_v6  ;;  %v569_v14 = vunpack.c.h.b16 %v17_v6  ;;  %v3710_v16 = vld [vmem:[%s4744_s1 + $0x238] sm:$0xff] }
  0x17   :  { %2212 = vmatpush.bf16.msra.mxu1 %v3649_v21  ;;  %v3679_v9 = vld [vmem:[%s4744_s1 + $0x140] sm:$0xff]  ;;  %v566_v11 = vunpack.c.l.b16 %v16_v7  ;;  %v567_v15 = vunpack.c.h.b16 %v16_v7  ;;  %v3718_v17 = vld [vmem:[%s4744_s1 + $0x278] sm:$0xff]  ;;  %v3708_v28 = vld [vmem:[%s4744_s1 + $0x228] sm:$0xff] }
  0x18   :  { %2225 = vmatpush.bf16.msra.mxu2 %v3657_v22  ;;  %v3687_v12 = vld [vmem:[%s4744_s1 + $0x180] sm:$0xff]  ;;  %v3726_v18 = vld [vmem:[%s4744_s1 + $0x2b8] sm:$0xff]  ;;  %v600_v20 = vpack.c.b16 %v568_v10, %v568_v10  ;;  %v601_v22 = vpack.c.b16 %v569_v14, %v569_v14  ;;  %v3716_v29 = vld [vmem:[%s4744_s1 + $0x268] sm:$0xff] }
  0x19   :  { %2238 = vmatpush.bf16.msra.mxu3 %v3665_v23  ;;  %v3695_v13 = vld [vmem:[%s4744_s1 + $0x1c0] sm:$0xff]  ;;  %v3734_v19 = vld [vmem:[%s4744_s1 + $0x2f8] sm:$0xff]  ;;  %v598_v21 = vpack.c.b16 %v566_v11, %v566_v11  ;;  %v599_v23 = vpack.c.b16 %v567_v15, %v567_v15  ;;  %v3740_v6 = vld [vmem:[%s4744_s1 + $0x328] sm:$0xff] }
  0x1a   :  { %2200 = vmatpush.bf16.msra.mxu0 %v3640_v24  ;;  %v3709_v24 = vld [vmem:[%s4744_s1 + $0x230] sm:$0xff]  ;;  %v3707_v32 = vld [vmem:[%s4744_s1 + $0x220] sm:$0xff]  ;;  %v3706_v36 = vld [vmem:[%s4744_s1 + $0x218] sm:$0xff] }
  0x1b   :  { %2213 = vmatpush.bf16.msra.mxu1 %v3648_v25  ;;  %v3717_v25 = vld [vmem:[%s4744_s1 + $0x270] sm:$0xff]  ;;  %v3715_v33 = vld [vmem:[%s4744_s1 + $0x260] sm:$0xff]  ;;  %v3714_v37 = vld [vmem:[%s4744_s1 + $0x258] sm:$0xff] }
  0x1c   :  { %2226 = vmatpush.bf16.msra.mxu2 %v3656_v26  ;;  %v3725_v26 = vld [vmem:[%s4744_s1 + $0x2b0] sm:$0xff]  ;;  %v3748_v7 = vld [vmem:[%s4744_s1 + $0x368] sm:$0xff]  ;;  %v3739_v10 = vld [vmem:[%s4744_s1 + $0x320] sm:$0xff] }
  0x1d   :  { %2239 = vmatpush.bf16.msra.mxu3 %v3664_v27  ;;  %v3733_v27 = vld [vmem:[%s4744_s1 + $0x2f0] sm:$0xff]  ;;  %v3747_v11 = vld [vmem:[%s4744_s1 + $0x360] sm:$0xff]  ;;  %v3738_v14 = vld [vmem:[%s4744_s1 + $0x318] sm:$0xff] }
  0x1e   :  { %2201 = vmatpush.bf16.msra.mxu0 %v3639_v30  ;;  %v3724_v30 = vld [vmem:[%s4744_s1 + $0x2a8] sm:$0xff]  ;;  %v3746_v15 = vld [vmem:[%s4744_s1 + $0x358] sm:$0xff] }
  0x1f   :  { %2214 = vmatpush.bf16.msra.mxu1 %v3647_v31  ;;  %v3732_v31 = vld [vmem:[%s4744_s1 + $0x2e8] sm:$0xff] }
  0x20   :  { %2227 = vmatpush.bf16.msra.mxu2 %v3655_v34  ;;  %v3723_v34 = vld [vmem:[%s4744_s1 + $0x2a0] sm:$0xff] }
  0x21   :  { %2240 = vmatpush.bf16.msra.mxu3 %v3663_v35  ;;  %2202 = vmatmul.bf16.vlgmr.msra.gmra.mxu0 %v594_v43  ;;  %v3731_v35 = vld [vmem:[%s4744_s1 + $0x2e0] sm:$0xff]  ;;  %v3729_v43 = vld [vmem:[%s4744_s1 + $0x2d0] sm:$0xff] }
  0x22   :  { %2246 = vmatpush.bf16.msrb.mxu0 %v3678_v38  ;;  %2215 = vmatmul.bf16.vlgmr.msra.gmra.mxu1 %v595_v45  ;;  %v3722_v38 = vld [vmem:[%s4744_s1 + $0x298] sm:$0xff]  ;;  %v3712_v45 = vld [vmem:[%s4744_s1 + $0x248] sm:$0xff] }
  0x23   :  { %2259 = vmatpush.bf16.msrb.mxu1 %v3686_v39  ;;  %2228 = vmatmul.bf16.vlgmr.msra.gmra.mxu2 %v596_v42  ;;  %v3730_v39 = vld [vmem:[%s4744_s1 + $0x2d8] sm:$0xff]  ;;  %v3721_v42 = vld [vmem:[%s4744_s1 + $0x290] sm:$0xff] }
  0x24   :  { %2272 = vmatpush.bf16.msrb.mxu2 %v3694_v40  ;;  %2241 = vmatmul.bf16.vlgmr.msra.gmra.mxu3 %v597_v44  ;;  %v3705_v40 = vld [vmem:[%s4744_s1 + $0x210] sm:$0xff]  ;;  %v3704_v44 = vld [vmem:[%s4744_s1 + $0x208] sm:$0xff] }
  0x25   :  { %2285 = vmatpush.bf16.msrb.mxu3 %v3702_v41  ;;  %v3713_v41 = vld [vmem:[%s4744_s1 + $0x250] sm:$0xff] }
  0x26   :  { %2247 = vmatpush.bf16.msrb.mxu0 %v3677_v46  ;;  %v3720_v46 = vld [vmem:[%s4744_s1 + $0x288] sm:$0xff] }
  0x27   :  { %2260 = vmatpush.bf16.msrb.mxu1 %v3685_v47  ;;  %v3728_v47 = vld [vmem:[%s4744_s1 + $0x2c8] sm:$0xff] }
  0x28   :  { %2273 = vmatpush.bf16.msrb.mxu2 %v3693_v48  ;;  %v18_v48 = vld [vmem:[%s4745_s0 + $0x20] sm:$0xff] }
  0x29   :  { %2286 = vmatpush.bf16.msrb.mxu3 %v3701_v49  ;;  %v19_v49 = vld [vmem:[%s4745_s0 + $0x28] sm:$0xff] }
  0x2a   :  { %2248 = vmatpush.bf16.msrb.mxu0 %v3676_v50  ;;  %v3703_v50 = vld [vmem:[%s4744_s1 + $0x200] sm:$0xff] }
  0x2b   :  { %2261 = vmatpush.bf16.msrb.mxu1 %v3684_v51  ;;  %v3711_v51 = vld [vmem:[%s4744_s1 + $0x240] sm:$0xff] }
  0x2c   :  { %2274 = vmatpush.bf16.msrb.mxu2 %v3692_v52  ;;  %v570_v52 = vunpack.c.l.b16 %v18_v48 }
  0x2d   :  { %2287 = vmatpush.bf16.msrb.mxu3 %v3700_v53  ;;  %v572_v53 = vunpack.c.l.b16 %v19_v49 }
  0x2e   :  { %2249 = vmatpush.bf16.msrb.mxu0 %v3675_v54  ;;  %v3719_v54 = vld [vmem:[%s4744_s1 + $0x280] sm:$0xff] }
  0x2f   :  { %2262 = vmatpush.bf16.msrb.mxu1 %v3683_v55  ;;  %v3727_v55 = vld [vmem:[%s4744_s1 + $0x2c0] sm:$0xff] }
  0x30   :  { %2275 = vmatpush.bf16.msrb.mxu2 %v3691_v56  ;;  %v571_v56 = vunpack.c.h.b16 %v18_v48  ;;  %v3772_v48 = vld [vmem:[%s4744_s1 + $0x428] sm:$0xff] }
  0x31   :  { %2288 = vmatpush.bf16.msrb.mxu3 %v3699_v57  ;;  %v573_v57 = vunpack.c.h.b16 %v19_v49  ;;  %v3780_v49 = vld [vmem:[%s4744_s1 + $0x468] sm:$0xff] }
  0x32   :  { %2250 = vmatpush.bf16.msrb.mxu0 %v3674_v58  ;;  %v3742_v58 = vld [vmem:[%s4744_s1 + $0x338] sm:$0xff] }
  0x33   :  { %2263 = vmatpush.bf16.msrb.mxu1 %v3682_v59  ;;  %v3750_v59 = vld [vmem:[%s4744_s1 + $0x378] sm:$0xff] }
  0x34   :  { %2276 = vmatpush.bf16.msrb.mxu2 %v3690_v60  ;;  %v3758_v60 = vld [vmem:[%s4744_s1 + $0x3b8] sm:$0xff] }
  0x35   :  { %2289 = vmatpush.bf16.msrb.mxu3 %v3698_v61  ;;  %v3766_v61 = vld [vmem:[%s4744_s1 + $0x3f8] sm:$0xff] }
  0x36   :  { %2251 = vmatpush.bf16.msrb.mxu0 %v3673_v62  ;;  %v602_v62 = vpack.c.b16 %v570_v52, %v570_v52  ;;  %v3771_v52 = vld [vmem:[%s4744_s1 + $0x420] sm:$0xff] }
  0x37   :  { %2264 = vmatpush.bf16.msrb.mxu1 %v3681_v63  ;;  %v604_v63 = vpack.c.b16 %v572_v53, %v572_v53  ;;  %v3779_v53 = vld [vmem:[%s4744_s1 + $0x460] sm:$0xff] }
  0x38   :  { %2277 = vmatpush.bf16.msrb.mxu2 %v3689_v0  ;;  %v603_v0 = vpack.c.b16 %v571_v56, %v571_v56  ;;  %v3770_v56 = vld [vmem:[%s4744_s1 + $0x418] sm:$0xff] }
  0x39   :  { %2290 = vmatpush.bf16.msrb.mxu3 %v3697_v1  ;;  %v605_v1 = vpack.c.b16 %v573_v57, %v573_v57  ;;  %v3778_v57 = vld [vmem:[%s4744_s1 + $0x458] sm:$0xff] }
  0x3a   :  { %2252 = vmatpush.bf16.msrb.mxu0 %v3672_v2  ;;  %v3741_v2 = vld [vmem:[%s4744_s1 + $0x330] sm:$0xff] }
  0x3b   :  { %2265 = vmatpush.bf16.msrb.mxu1 %v3680_v3  ;;  %v3749_v3 = vld [vmem:[%s4744_s1 + $0x370] sm:$0xff] }
  0x3c   :  { %2278 = vmatpush.bf16.msrb.mxu2 %v3688_v4  ;;  %v3757_v4 = vld [vmem:[%s4744_s1 + $0x3b0] sm:$0xff] }
  0x3d   :  { %2291 = vmatpush.bf16.msrb.mxu3 %v3696_v5  ;;  %v3765_v5 = vld [vmem:[%s4744_s1 + $0x3f0] sm:$0xff] }
  0x3e   :  { %2253 = vmatpush.bf16.msrb.mxu0 %v3671_v8  ;;  %v3756_v8 = vld [vmem:[%s4744_s1 + $0x3a8] sm:$0xff] }
  0x3f   :  { %2266 = vmatpush.bf16.msrb.mxu1 %v3679_v9  ;;  %v3764_v9 = vld [vmem:[%s4744_s1 + $0x3e8] sm:$0xff] }
  0x40   :  { %2279 = vmatpush.bf16.msrb.mxu2 %v3687_v12  ;;  %v3755_v12 = vld [vmem:[%s4744_s1 + $0x3a0] sm:$0xff] }
  0x41   :  { %2292 = vmatpush.bf16.msrb.mxu3 %v3695_v13  ;;  %2254 = vmatmul.bf16.vlgmr.msrb.gmra.mxu0 %v598_v21  ;;  %v3763_v13 = vld [vmem:[%s4744_s1 + $0x3e0] sm:$0xff]  ;;  %v3761_v21 = vld [vmem:[%s4744_s1 + $0x3d0] sm:$0xff] }
  0x42   :  { %2298 = vmatpush.bf16.msra.mxu0 %v3710_v16  ;;  %2267 = vmatmul.bf16.vlgmr.msrb.gmra.mxu1 %v599_v23  ;;  %v3754_v16 = vld [vmem:[%s4744_s1 + $0x398] sm:$0xff]  ;;  %v3744_v23 = vld [vmem:[%s4744_s1 + $0x348] sm:$0xff] }
  0x43   :  { %2311 = vmatpush.bf16.msra.mxu1 %v3718_v17  ;;  %2280 = vmatmul.bf16.vlgmr.msrb.gmra.mxu2 %v600_v20  ;;  %v3762_v17 = vld [vmem:[%s4744_s1 + $0x3d8] sm:$0xff]  ;;  %v3753_v20 = vld [vmem:[%s4744_s1 + $0x390] sm:$0xff] }
  0x44   :  { %2324 = vmatpush.bf16.msra.mxu2 %v3726_v18  ;;  %2293 = vmatmul.bf16.vlgmr.msrb.gmra.mxu3 %v601_v22  ;;  %v3737_v18 = vld [vmem:[%s4744_s1 + $0x310] sm:$0xff]  ;;  %v3736_v22 = vld [vmem:[%s4744_s1 + $0x308] sm:$0xff] }
  0x45   :  { %2337 = vmatpush.bf16.msra.mxu3 %v3734_v19  ;;  %v3745_v19 = vld [vmem:[%s4744_s1 + $0x350] sm:$0xff] }
  0x46   :  { %2299 = vmatpush.bf16.msra.mxu0 %v3709_v24  ;;  %v3752_v24 = vld [vmem:[%s4744_s1 + $0x388] sm:$0xff] }
  0x47   :  { %2312 = vmatpush.bf16.msra.mxu1 %v3717_v25  ;;  %v3760_v25 = vld [vmem:[%s4744_s1 + $0x3c8] sm:$0xff] }
  0x48   :  { %2325 = vmatpush.bf16.msra.mxu2 %v3725_v26  ;;  %v20_v26 = vld [vmem:[%s4745_s0 + $0x30] sm:$0xff] }
  0x49   :  { %2338 = vmatpush.bf16.msra.mxu3 %v3733_v27  ;;  %v21_v27 = vld [vmem:[%s4745_s0 + $0x38] sm:$0xff] }
  0x4a   :  { %2300 = vmatpush.bf16.msra.mxu0 %v3708_v28  ;;  %v3735_v28 = vld [vmem:[%s4744_s1 + $0x300] sm:$0xff] }
  0x4b   :  { %2313 = vmatpush.bf16.msra.mxu1 %v3716_v29  ;;  %v3743_v29 = vld [vmem:[%s4744_s1 + $0x340] sm:$0xff] }
  0x4c   :  { %2326 = vmatpush.bf16.msra.mxu2 %v3724_v30  ;;  %v574_v30 = vunpack.c.l.b16 %v20_v26 }
  0x4d   :  { %2339 = vmatpush.bf16.msra.mxu3 %v3732_v31  ;;  %v576_v31 = vunpack.c.l.b16 %v21_v27 }
  0x4e   :  { %2301 = vmatpush.bf16.msra.mxu0 %v3707_v32  ;;  %v3751_v32 = vld [vmem:[%s4744_s1 + $0x380] sm:$0xff] }
  0x4f   :  { %2314 = vmatpush.bf16.msra.mxu1 %v3715_v33  ;;  %v3759_v33 = vld [vmem:[%s4744_s1 + $0x3c0] sm:$0xff] }
  0x50   :  { %2327 = vmatpush.bf16.msra.mxu2 %v3723_v34  ;;  %v575_v34 = vunpack.c.h.b16 %v20_v26  ;;  %v3804_v26 = vld [vmem:[%s4744_s1 + $0x528] sm:$0xff] }
  0x51   :  { %2340 = vmatpush.bf16.msra.mxu3 %v3731_v35  ;;  %v577_v35 = vunpack.c.h.b16 %v21_v27  ;;  %v3812_v27 = vld [vmem:[%s4744_s1 + $0x568] sm:$0xff] }
  0x52   :  { %2302 = vmatpush.bf16.msra.mxu0 %v3706_v36  ;;  %v3774_v36 = vld [vmem:[%s4744_s1 + $0x438] sm:$0xff] }
  0x53   :  { %2315 = vmatpush.bf16.msra.mxu1 %v3714_v37  ;;  %v3782_v37 = vld [vmem:[%s4744_s1 + $0x478] sm:$0xff] }
  0x54   :  { %2328 = vmatpush.bf16.msra.mxu2 %v3722_v38  ;;  %v3790_v38 = vld [vmem:[%s4744_s1 + $0x4b8] sm:$0xff] }
  0x55   :  { %2341 = vmatpush.bf16.msra.mxu3 %v3730_v39  ;;  %v3798_v39 = vld [vmem:[%s4744_s1 + $0x4f8] sm:$0xff] }
  0x56   :  { %2303 = vmatpush.bf16.msra.mxu0 %v3705_v40  ;;  %v606_v40 = vpack.c.b16 %v574_v30, %v574_v30  ;;  %v3828_v30 = vld [vmem:[%s4744_s1 + $0x5e8] sm:$0xff] }
  0x57   :  { %2316 = vmatpush.bf16.msra.mxu1 %v3713_v41  ;;  %v608_v41 = vpack.c.b16 %v576_v31, %v576_v31 }
  0x58   :  { %2329 = vmatpush.bf16.msra.mxu2 %v3721_v42  ;;  %v607_v42 = vpack.c.b16 %v575_v34, %v575_v34 }
  0x59   :  { %2342 = vmatpush.bf16.msra.mxu3 %v3729_v43  ;;  %v609_v43 = vpack.c.b16 %v577_v35, %v577_v35 }
  0x5a   :  { %2304 = vmatpush.bf16.msra.mxu0 %v3704_v44  ;;  %v3773_v44 = vld [vmem:[%s4744_s1 + $0x430] sm:$0xff] }
  0x5b   :  { %2317 = vmatpush.bf16.msra.mxu1 %v3712_v45  ;;  %v3781_v45 = vld [vmem:[%s4744_s1 + $0x470] sm:$0xff] }
  0x5c   :  { %2330 = vmatpush.bf16.msra.mxu2 %v3720_v46  ;;  %v3789_v46 = vld [vmem:[%s4744_s1 + $0x4b0] sm:$0xff] }
  0x5d   :  { %2343 = vmatpush.bf16.msra.mxu3 %v3728_v47  ;;  %v3797_v47 = vld [vmem:[%s4744_s1 + $0x4f0] sm:$0xff] }
  0x5e   :  { %2305 = vmatpush.bf16.msra.mxu0 %v3703_v50  ;;  %v3788_v50 = vld [vmem:[%s4744_s1 + $0x4a8] sm:$0xff] }
  0x5f   :  { %2318 = vmatpush.bf16.msra.mxu1 %v3711_v51  ;;  %v3796_v51 = vld [vmem:[%s4744_s1 + $0x4e8] sm:$0xff] }
  0x60   :  { %2331 = vmatpush.bf16.msra.mxu2 %v3719_v54  ;;  %v3787_v54 = vld [vmem:[%s4744_s1 + $0x4a0] sm:$0xff] }
  0x61   :  { %2344 = vmatpush.bf16.msra.mxu3 %v3727_v55  ;;  %2306 = vmatmul.bf16.vlgmr.msra.gmra.mxu0 %v602_v62  ;;  %v3795_v55 = vld [vmem:[%s4744_s1 + $0x4e0] sm:$0xff]  ;;  %v3785_v62 = vld [vmem:[%s4744_s1 + $0x490] sm:$0xff] }
  0x62   :  { %2350 = vmatpush.bf16.msrb.mxu0 %v3742_v58  ;;  %2319 = vmatmul.bf16.vlgmr.msra.gmra.mxu1 %v603_v0  ;;  %v3786_v58 = vld [vmem:[%s4744_s1 + $0x498] sm:$0xff]  ;;  %v3768_v0 = vld [vmem:[%s4744_s1 + $0x408] sm:$0xff] }
  0x63   :  { %2363 = vmatpush.bf16.msrb.mxu1 %v3750_v59  ;;  %2332 = vmatmul.bf16.vlgmr.msra.gmra.mxu2 %v604_v63  ;;  %v3794_v59 = vld [vmem:[%s4744_s1 + $0x4d8] sm:$0xff]  ;;  %v3793_v63 = vld [vmem:[%s4744_s1 + $0x4d0] sm:$0xff] }
  0x64   :  { %2376 = vmatpush.bf16.msrb.mxu2 %v3758_v60  ;;  %2345 = vmatmul.bf16.vlgmr.msra.gmra.mxu3 %v605_v1  ;;  %v3769_v60 = vld [vmem:[%s4744_s1 + $0x410] sm:$0xff]  ;;  %v3776_v1 = vld [vmem:[%s4744_s1 + $0x448] sm:$0xff] }
  0x65   :  { %2389 = vmatpush.bf16.msrb.mxu3 %v3766_v61  ;;  %v3777_v61 = vld [vmem:[%s4744_s1 + $0x450] sm:$0xff] }
  0x66   :  { %2351 = vmatpush.bf16.msrb.mxu0 %v3741_v2  ;;  %v3784_v2 = vld [vmem:[%s4744_s1 + $0x488] sm:$0xff] }
  0x67   :  { %2364 = vmatpush.bf16.msrb.mxu1 %v3749_v3  ;;  %v3792_v3 = vld [vmem:[%s4744_s1 + $0x4c8] sm:$0xff] }
  0x68   :  { %2377 = vmatpush.bf16.msrb.mxu2 %v3757_v4  ;;  %v22_v4 = vld [vmem:[%s4745_s0 + $0x40] sm:$0xff] }
  0x69   :  { %2390 = vmatpush.bf16.msrb.mxu3 %v3765_v5  ;;  %v23_v5 = vld [vmem:[%s4745_s0 + $0x48] sm:$0xff] }
  0x6a   :  { %2352 = vmatpush.bf16.msrb.mxu0 %v3740_v6  ;;  %v3767_v6 = vld [vmem:[%s4744_s1 + $0x400] sm:$0xff] }
  0x6b   :  { %2365 = vmatpush.bf16.msrb.mxu1 %v3748_v7  ;;  %v3775_v7 = vld [vmem:[%s4744_s1 + $0x440] sm:$0xff] }
  0x6c   :  { %2378 = vmatpush.bf16.msrb.mxu2 %v3756_v8  ;;  %v578_v8 = vunpack.c.l.b16 %v22_v4 }
  0x6d   :  { %2391 = vmatpush.bf16.msrb.mxu3 %v3764_v9  ;;  %v580_v9 = vunpack.c.l.b16 %v23_v5 }
  0x6e   :  { %2353 = vmatpush.bf16.msrb.mxu0 %v3739_v10  ;;  %v3783_v10 = vld [vmem:[%s4744_s1 + $0x480] sm:$0xff] }
  0x6f   :  { %2366 = vmatpush.bf16.msrb.mxu1 %v3747_v11  ;;  %v3791_v11 = vld [vmem:[%s4744_s1 + $0x4c0] sm:$0xff] }
  0x70   :  { %2379 = vmatpush.bf16.msrb.mxu2 %v3755_v12  ;;  %v579_v12 = vunpack.c.h.b16 %v22_v4 }
  0x71   :  { %2392 = vmatpush.bf16.msrb.mxu3 %v3763_v13  ;;  %v581_v13 = vunpack.c.h.b16 %v23_v5  ;;  %v3838_v5 = vld [vmem:[%s4744_s1 + $0x638] sm:$0xff] }
  0x72   :  { %2354 = vmatpush.bf16.msrb.mxu0 %v3738_v14  ;;  %v3806_v14 = vld [vmem:[%s4744_s1 + $0x538] sm:$0xff] }
  0x73   :  { %2367 = vmatpush.bf16.msrb.mxu1 %v3746_v15  ;;  %v3814_v15 = vld [vmem:[%s4744_s1 + $0x578] sm:$0xff] }
  0x74   :  { %2380 = vmatpush.bf16.msrb.mxu2 %v3754_v16  ;;  %v3822_v16 = vld [vmem:[%s4744_s1 + $0x5b8] sm:$0xff] }
  0x75   :  { %2393 = vmatpush.bf16.msrb.mxu3 %v3762_v17  ;;  %v3830_v17 = vld [vmem:[%s4744_s1 + $0x5f8] sm:$0xff] }
  0x76   :  { %2355 = vmatpush.bf16.msrb.mxu0 %v3737_v18  ;;  %v610_v18 = vpack.c.b16 %v578_v8, %v578_v8  ;;  %v3862_v8 = vld [vmem:[%s4744_s1 + $0x6f8] sm:$0xff] }
  0x77   :  { %2368 = vmatpush.bf16.msrb.mxu1 %v3745_v19  ;;  %v612_v19 = vpack.c.b16 %v580_v9, %v580_v9 }
  0x78   :  { %2381 = vmatpush.bf16.msrb.mxu2 %v3753_v20  ;;  %v611_v20 = vpack.c.b16 %v579_v12, %v579_v12 }
  0x79   :  { %2394 = vmatpush.bf16.msrb.mxu3 %v3761_v21  ;;  %v613_v21 = vpack.c.b16 %v581_v13, %v581_v13  ;;  %v3837_v13 = vld [vmem:[%s4744_s1 + $0x630] sm:$0xff] }
  0x7a   :  { %2356 = vmatpush.bf16.msrb.mxu0 %v3736_v22  ;;  %v3805_v22 = vld [vmem:[%s4744_s1 + $0x530] sm:$0xff] }
  0x7b   :  { %2369 = vmatpush.bf16.msrb.mxu1 %v3744_v23  ;;  %v3813_v23 = vld [vmem:[%s4744_s1 + $0x570] sm:$0xff] }
  0x7c   :  { %2382 = vmatpush.bf16.msrb.mxu2 %v3752_v24  ;;  %v3821_v24 = vld [vmem:[%s4744_s1 + $0x5b0] sm:$0xff] }
  0x7d   :  { %2395 = vmatpush.bf16.msrb.mxu3 %v3760_v25  ;;  %v3829_v25 = vld [vmem:[%s4744_s1 + $0x5f0] sm:$0xff] }
  0x7e   :  { %2357 = vmatpush.bf16.msrb.mxu0 %v3735_v28  ;;  %v3895_v28 = vld [vmem:[%s4746_s2] ss:$0 sm:$0xff] }
  0x7f   :  { %2370 = vmatpush.bf16.msrb.mxu1 %v3743_v29  ;;  %v3820_v29 = vld [vmem:[%s4744_s1 + $0x5a8] sm:$0xff] }
  0x80   :  { %2383 = vmatpush.bf16.msrb.mxu2 %v3751_v32  ;;  %v3803_v32 = vld [vmem:[%s4744_s1 + $0x520] sm:$0xff] }
  0x81   :  { %2396 = vmatpush.bf16.msrb.mxu3 %v3759_v33  ;;  %2358 = vmatmul.bf16.vlgmr.msrb.gmra.mxu0 %v606_v40  ;;  %v3811_v33 = vld [vmem:[%s4744_s1 + $0x560] sm:$0xff]  ;;  %v3810_v40 = vld [vmem:[%s4744_s1 + $0x558] sm:$0xff] }
  0x82   :  { %2402 = vmatpush.bf16.msra.mxu0 %v3774_v36  ;;  %2371 = vmatmul.bf16.vlgmr.msrb.gmra.mxu1 %v607_v42  ;;  %v3819_v36 = vld [vmem:[%s4744_s1 + $0x5a0] sm:$0xff]  ;;  %v3826_v42 = vld [vmem:[%s4744_s1 + $0x5d8] sm:$0xff] }
  0x83   :  { %2415 = vmatpush.bf16.msra.mxu1 %v3782_v37  ;;  %2384 = vmatmul.bf16.vlgmr.msrb.gmra.mxu2 %v608_v41  ;;  %v3827_v37 = vld [vmem:[%s4744_s1 + $0x5e0] sm:$0xff]  ;;  %v3818_v41 = vld [vmem:[%s4744_s1 + $0x598] sm:$0xff] }
  0x84   :  { %2428 = vmatpush.bf16.msra.mxu2 %v3790_v38  ;;  %2397 = vmatmul.bf16.vlgmr.msrb.gmra.mxu3 %v609_v43 }
  0x85   :  { %2441 = vmatpush.bf16.msra.mxu3 %v3798_v39  ;;  %v3802_v39 = vld [vmem:[%s4744_s1 + $0x518] sm:$0xff] }
  0x86   :  { %2403 = vmatpush.bf16.msra.mxu0 %v3773_v44 }
  0x87   :  { %2416 = vmatpush.bf16.msra.mxu1 %v3781_v45 }
  0x88   :  { %2429 = vmatpush.bf16.msra.mxu2 %v3789_v46 }
  0x89   :  { %2442 = vmatpush.bf16.msra.mxu3 %v3797_v47  ;;  %v3801_v47 = vld [vmem:[%s4744_s1 + $0x510] sm:$0xff] }
  0x8a   :  { %2404 = vmatpush.bf16.msra.mxu0 %v3772_v48  ;;  %v3809_v48 = vld [vmem:[%s4744_s1 + $0x550] sm:$0xff] }
  0x8b   :  { %2417 = vmatpush.bf16.msra.mxu1 %v3780_v49 }
  0x8c   :  { %2430 = vmatpush.bf16.msra.mxu2 %v3788_v50 }
  0x8d   :  { %2443 = vmatpush.bf16.msra.mxu3 %v3796_v51  ;;  %v3817_v51 = vld [vmem:[%s4744_s1 + $0x590] sm:$0xff] }
  0x8e   :  { %2405 = vmatpush.bf16.msra.mxu0 %v3771_v52  ;;  %v3825_v52 = vld [vmem:[%s4744_s1 + $0x5d0] sm:$0xff] }
  0x8f   :  { %2418 = vmatpush.bf16.msra.mxu1 %v3779_v53  ;;  %v3800_v53 = vld [vmem:[%s4744_s1 + $0x508] sm:$0xff] }
  0x90   :  { %2431 = vmatpush.bf16.msra.mxu2 %v3787_v54  ;;  %v3808_v54 = vld [vmem:[%s4744_s1 + $0x548] sm:$0xff] }
  0x91   :  { %2444 = vmatpush.bf16.msra.mxu3 %v3795_v55  ;;  %v3816_v55 = vld [vmem:[%s4744_s1 + $0x588] sm:$0xff] }
  0x92   :  { %2406 = vmatpush.bf16.msra.mxu0 %v3770_v56  ;;  %v3824_v56 = vld [vmem:[%s4744_s1 + $0x5c8] sm:$0xff] }
  0x93   :  { %2419 = vmatpush.bf16.msra.mxu1 %v3778_v57  ;;  %v24_v57 = vld [vmem:[%s4745_s0 + $0x50] sm:$0xff] }
  0x94   :  { %2432 = vmatpush.bf16.msra.mxu2 %v3786_v58  ;;  %v25_v58 = vld [vmem:[%s4745_s0 + $0x58] sm:$0xff] }
  0x95   :  { %2445 = vmatpush.bf16.msra.mxu3 %v3794_v59  ;;  %v585_v4 = vunpack.c.h.b16 %v25_v58 }
  0x96   :  { %2407 = vmatpush.bf16.msra.mxu0 %v3769_v60 }
  0x97   :  { %2420 = vmatpush.bf16.msra.mxu1 %v3777_v61  ;;  %v3799_v61 = vld [vmem:[%s4744_s1 + $0x500] sm:$0xff]  ;;  %v617_v12 = vpack.c.b16 %v585_v4, %v585_v4  ;;  %v3877_v4 = vld [vmem:[%s4744_s1 + $0x770] sm:$0xff] }
  0x98   :  { %2433 = vmatpush.bf16.msra.mxu2 %v3785_v62  ;;  %v3807_v62 = vld [vmem:[%s4744_s1 + $0x540] sm:$0xff] }
  0x99   :  { %2446 = vmatpush.bf16.msra.mxu3 %v3793_v63  ;;  %v582_v63 = vunpack.c.l.b16 %v24_v57 }
  0x9a   :  { %2408 = vmatpush.bf16.msra.mxu0 %v3768_v0  ;;  %v584_v0 = vunpack.c.l.b16 %v25_v58 }
  0x9b   :  { %2421 = vmatpush.bf16.msra.mxu1 %v3776_v1  ;;  %v3815_v1 = vld [vmem:[%s4744_s1 + $0x580] sm:$0xff]  ;;  %v614_v9 = vpack.c.b16 %v582_v63, %v582_v63 }
  0x9c   :  { %2434 = vmatpush.bf16.msra.mxu2 %v3784_v2  ;;  %v3823_v2 = vld [vmem:[%s4744_s1 + $0x5c0] sm:$0xff] }
  0x9d   :  { %2447 = vmatpush.bf16.msra.mxu3 %v3792_v3  ;;  %v583_v3 = vunpack.c.h.b16 %v24_v57 }
  0x9e   :  { %2409 = vmatpush.bf16.msra.mxu0 %v3767_v6  ;;  %v2203_v31 = vpop.f32.mrf.mxu0  ;;  %v3846_v6 = vld [vmem:[%s4744_s1 + $0x678] sm:$0xff] }
  0x9f   :  { %2422 = vmatpush.bf16.msra.mxu1 %v3775_v7  ;;  %v2204_v34 = vadd.f32 %v3895_v28, %v2203_v31  ;;  %v2216_v35 = vpop.f32.mrf.mxu1  ;;  %v3854_v7 = vld [vmem:[%s4744_s1 + $0x6b8] sm:$0xff] }
  0xa0   :  { %2435 = vmatpush.bf16.msra.mxu2 %v3783_v10  ;;  %v616_v10 = vpack.c.b16 %v584_v0, %v584_v0  ;;  %v3850_v31 = vld [vmem:[%s4744_s1 + $0x698] sm:$0xff] }
  0xa1   :  { %2448 = vmatpush.bf16.msra.mxu3 %v3791_v11  ;;  %2410 = vmatmul.bf16.vlgmr.msra.gmra.mxu0 %v610_v18  ;;  %v2217_v38 = vadd.f32 %v2216_v35, %v2204_v34  ;;  %v615_v11 = vpack.c.b16 %v583_v3, %v583_v3  ;;  %v3844_v18 = vld [vmem:[%s4744_s1 + $0x668] sm:$0xff]  ;;  %v3869_v3 = vld [vmem:[%s4744_s1 + $0x730] sm:$0xff] }
  0xa2   :  { %2454 = vmatpush.bf16.msrb.mxu0 %v3806_v14  ;;  %2423 = vmatmul.bf16.vlgmr.msra.gmra.mxu1 %v611_v20  ;;  %v3845_v14 = vld [vmem:[%s4744_s1 + $0x670] sm:$0xff]  ;;  %v3860_v20 = vld [vmem:[%s4744_s1 + $0x6e8] sm:$0xff] }
  0xa3   :  { %2467 = vmatpush.bf16.msrb.mxu1 %v3814_v15  ;;  %2436 = vmatmul.bf16.vlgmr.msra.gmra.mxu2 %v612_v19  ;;  %v3853_v15 = vld [vmem:[%s4744_s1 + $0x6b0] sm:$0xff]  ;;  %v3852_v19 = vld [vmem:[%s4744_s1 + $0x6a8] sm:$0xff] }
  0xa4   :  { %2480 = vmatpush.bf16.msrb.mxu2 %v3822_v16  ;;  %2449 = vmatmul.bf16.vlgmr.msra.gmra.mxu3 %v613_v21  ;;  %v3861_v16 = vld [vmem:[%s4744_s1 + $0x6f0] sm:$0xff] }
  0xa5   :  { %2493 = vmatpush.bf16.msrb.mxu3 %v3830_v17  ;;  %v3836_v17 = vld [vmem:[%s4744_s1 + $0x628] sm:$0xff] }
  0xa6   :  { %2455 = vmatpush.bf16.msrb.mxu0 %v3805_v22  ;;  %v2229_v43 = vpop.f32.mrf.mxu2  ;;  %v2205_v46 = vpop.f32.mrf.mxu0  ;;  %v3835_v22 = vld [vmem:[%s4744_s1 + $0x620] sm:$0xff] }
  0xa7   :  { %2468 = vmatpush.bf16.msrb.mxu1 %v3813_v23  ;;  %v2230_v44 = vadd.f32 %v2229_v43, %v2217_v38  ;;  %v2242_v45 = vpop.f32.mrf.mxu3  ;;  %v2218_v50 = vpop.f32.mrf.mxu1  ;;  %v3843_v23 = vld [vmem:[%s4744_s1 + $0x660] sm:$0xff]  ;;  %v3841_v38 = vld [vmem:[%s4744_s1 + $0x650] sm:$0xff]  ;;  %v3832_v43 = vld [vmem:[%s4744_s1 + $0x608] sm:$0xff] }
  0xa8   :  { %2481 = vmatpush.bf16.msrb.mxu2 %v3821_v24  ;;  %v3856_v46 = vld [vmem:[%s4744_s1 + $0x6c8] sm:$0xff] }
  0xa9   :  { %2494 = vmatpush.bf16.msrb.mxu3 %v3829_v25  ;;  %v4495_v49 = vadd.f32 %v2242_v45, %v2230_v44  ;;  %v3840_v44 = vld [vmem:[%s4744_s1 + $0x648] sm:$0xff] }
  0xaa   :  { %2456 = vmatpush.bf16.msrb.mxu0 %v3804_v26  ;;  %v3851_v26 = vld [vmem:[%s4744_s1 + $0x6a0] sm:$0xff]  ;;  %v3848_v45 = vld [vmem:[%s4744_s1 + $0x688] sm:$0xff] }
  0xab   :  { %2469 = vmatpush.bf16.msrb.mxu1 %v3812_v27  ;;  %v3859_v27 = vld [vmem:[%s4744_s1 + $0x6e0] sm:$0xff] }
  0xac   :  { %2482 = vmatpush.bf16.msrb.mxu2 %v3820_v29  ;;  %v3834_v29 = vld [vmem:[%s4744_s1 + $0x618] sm:$0xff] }
  0xad   :  { %2495 = vmatpush.bf16.msrb.mxu3 %v3828_v30  ;;  %v3842_v30 = vld [vmem:[%s4744_s1 + $0x658] sm:$0xff] }
  0xae   :  { %2457 = vmatpush.bf16.msrb.mxu0 %v3803_v32  ;;  %v2231_v59 = vpop.f32.mrf.mxu2  ;;  %v3858_v32 = vld [vmem:[%s4744_s1 + $0x6d8] sm:$0xff] }
  0xaf   :  { %2470 = vmatpush.bf16.msrb.mxu1 %v3811_v33  ;;  %v2244_v60 = vpop.f32.mrf.mxu3  ;;  %v3870_v59 = vld [vmem:[%s4744_s1 + $0x738] sm:$0xff] }
  0xb0   :  { %2483 = vmatpush.bf16.msrb.mxu2 %v3819_v36  ;;  %v3878_v60 = vld [vmem:[%s4744_s1 + $0x778] sm:$0xff] }
  0xb1   :  { %2496 = vmatpush.bf16.msrb.mxu3 %v3827_v37  ;;  %v3833_v37 = vld [vmem:[%s4744_s1 + $0x610] sm:$0xff] }
  0xb2   :  { %2458 = vmatpush.bf16.msrb.mxu0 %v3802_v39 }
  0xb3   :  { %2471 = vmatpush.bf16.msrb.mxu1 %v3810_v40 }
  0xb4   :  { %2484 = vmatpush.bf16.msrb.mxu2 %v3818_v41  ;;  %v3849_v41 = vld [vmem:[%s4744_s1 + $0x690] sm:$0xff] }
  0xb5   :  { %2497 = vmatpush.bf16.msrb.mxu3 %v3826_v42  ;;  %v3857_v42 = vld [vmem:[%s4744_s1 + $0x6d0] sm:$0xff] }
  0xb6   :  { %2459 = vmatpush.bf16.msrb.mxu0 %v3801_v47  ;;  %v26_v47 = vld [vmem:[%s4745_s0 + $0x60] sm:$0xff] }
  0xb7   :  { %2472 = vmatpush.bf16.msrb.mxu1 %v3809_v48  ;;  %v27_v48 = vld [vmem:[%s4745_s0 + $0x68] sm:$0xff]  ;;  %v587_v57 = vunpack.c.h.b16 %v26_v47 }
  0xb8   :  { %2485 = vmatpush.bf16.msrb.mxu2 %v3817_v51  ;;  %v3831_v51 = vld [vmem:[%s4744_s1 + $0x600] sm:$0xff]  ;;  %v589_v58 = vunpack.c.h.b16 %v27_v48 }
  0xb9   :  { %2498 = vmatpush.bf16.msrb.mxu3 %v3825_v52  ;;  %v3839_v52 = vld [vmem:[%s4744_s1 + $0x640] sm:$0xff] }
  0xba   :  { %2460 = vmatpush.bf16.msrb.mxu0 %v3800_v53  ;;  %v586_v53 = vunpack.c.l.b16 %v26_v47  ;;  %v3879_v47 = vld [vmem:[%s4744_s1 + $0x780] sm:$0xff] }
  0xbb   :  { %2473 = vmatpush.bf16.msrb.mxu1 %v3808_v54  ;;  %v588_v54 = vunpack.c.l.b16 %v27_v48  ;;  %v3887_v48 = vld [vmem:[%s4744_s1 + $0x7c0] sm:$0xff] }
  0xbc   :  { %2486 = vmatpush.bf16.msrb.mxu2 %v3816_v55  ;;  %v3847_v55 = vld [vmem:[%s4744_s1 + $0x680] sm:$0xff]  ;;  %v618_v63 = vpack.c.b16 %v586_v53, %v586_v53 }
  0xbd   :  { %2499 = vmatpush.bf16.msrb.mxu3 %v3824_v56  ;;  %v3855_v56 = vld [vmem:[%s4744_s1 + $0x6c0] sm:$0xff]  ;;  %v620_v0 = vpack.c.b16 %v588_v54, %v588_v54 }
  0xbe   :  { %2461 = vmatpush.bf16.msrb.mxu0 %v3799_v61  ;;  %v2255_v21 = vpop.f32.mrf.mxu0  ;;  %v3886_v61 = vld [vmem:[%s4744_s1 + $0x7b8] sm:$0xff] }
  0xbf   :  { %2474 = vmatpush.bf16.msrb.mxu1 %v3807_v62  ;;  %v2256_v24 = vadd.f32 %v2255_v21, %v4495_v49  ;;  %v2268_v25 = vpop.f32.mrf.mxu1  ;;  %v3894_v62 = vld [vmem:[%s4744_s1 + $0x7f8] sm:$0xff] }
  0xc0   :  { %2487 = vmatpush.bf16.msrb.mxu2 %v3815_v1  ;;  %v619_v1 = vpack.c.b16 %v587_v57, %v587_v57  ;;  %v3882_v21 = vld [vmem:[%s4744_s1 + $0x798] sm:$0xff] }
  0xc1   :  { %2500 = vmatpush.bf16.msrb.mxu3 %v3823_v2  ;;  %2462 = vmatmul.bf16.vlgmr.msrb.gmra.mxu0 %v614_v9  ;;  %v2269_v28 = vadd.f32 %v2268_v25, %v2256_v24  ;;  %v621_v2 = vpack.c.b16 %v589_v58, %v589_v58  ;;  %v3884_v9 = vld [vmem:[%s4744_s1 + $0x7a8] sm:$0xff] }
  0xc2   :  { %2506 = vmatpush.bf16.msra.mxu0 %v3838_v5  ;;  %2475 = vmatmul.bf16.vlgmr.msrb.gmra.mxu1 %v615_v11  ;;  %v3885_v5 = vld [vmem:[%s4744_s1 + $0x7b0] sm:$0xff] }
  0xc3   :  { %2519 = vmatpush.bf16.msra.mxu1 %v3846_v6  ;;  %2488 = vmatmul.bf16.vlgmr.msrb.gmra.mxu2 %v616_v10  ;;  %v3893_v6 = vld [vmem:[%s4744_s1 + $0x7f0] sm:$0xff]  ;;  %v3892_v10 = vld [vmem:[%s4744_s1 + $0x7e8] sm:$0xff] }
  0xc4   :  { %2532 = vmatpush.bf16.msra.mxu2 %v3854_v7  ;;  %2501 = vmatmul.bf16.vlgmr.msrb.gmra.mxu3 %v617_v12  ;;  %v3868_v7 = vld [vmem:[%s4744_s1 + $0x728] sm:$0xff] }
  0xc5   :  { %2545 = vmatpush.bf16.msra.mxu3 %v3862_v8  ;;  %v3876_v8 = vld [vmem:[%s4744_s1 + $0x768] sm:$0xff] }
  0xc6   :  { %2507 = vmatpush.bf16.msra.mxu0 %v3837_v13  ;;  %v2281_v33 = vpop.f32.mrf.mxu2  ;;  %v2257_v36 = vpop.f32.mrf.mxu0  ;;  %v3867_v13 = vld [vmem:[%s4744_s1 + $0x720] sm:$0xff] }
  0xc7   :  { %2520 = vmatpush.bf16.msra.mxu1 %v3845_v14  ;;  %v2282_v34 = vadd.f32 %v2281_v33, %v2269_v28  ;;  %v2294_v35 = vpop.f32.mrf.mxu3  ;;  %v2270_v40 = vpop.f32.mrf.mxu1  ;;  %v3875_v14 = vld [vmem:[%s4744_s1 + $0x760] sm:$0xff]  ;;  %v3865_v28 = vld [vmem:[%s4744_s1 + $0x710] sm:$0xff]  ;;  %v3864_v33 = vld [vmem:[%s4744_s1 + $0x708] sm:$0xff] }
  0xc8   :  { %2533 = vmatpush.bf16.msra.mxu2 %v3853_v15  ;;  %v3880_v36 = vld [vmem:[%s4744_s1 + $0x788] sm:$0xff] }
  0xc9   :  { %2546 = vmatpush.bf16.msra.mxu3 %v3861_v16  ;;  %v4600_v39 = vadd.f32 %v2294_v35, %v2282_v34  ;;  %v3883_v16 = vld [vmem:[%s4744_s1 + $0x7a0] sm:$0xff]  ;;  %v3872_v34 = vld [vmem:[%s4744_s1 + $0x748] sm:$0xff]  ;;  %v28_v35 = vld [vmem:[%s4745_s0 + $0x70] sm:$0xff] }
  0xca   :  { %2508 = vmatpush.bf16.msra.mxu0 %v3836_v17  ;;  %v3891_v17 = vld [vmem:[%s4744_s1 + $0x7e0] sm:$0xff] }
  0xcb   :  { %2521 = vmatpush.bf16.msra.mxu1 %v3844_v18 }
  0xcc   :  { %2534 = vmatpush.bf16.msra.mxu2 %v3852_v19  ;;  %v3866_v19 = vld [vmem:[%s4744_s1 + $0x718] sm:$0xff] }
  0xcd   :  { %2547 = vmatpush.bf16.msra.mxu3 %v3860_v20  ;;  %v3874_v20 = vld [vmem:[%s4744_s1 + $0x758] sm:$0xff] }
  0xce   :  { %2509 = vmatpush.bf16.msra.mxu0 %v3835_v22  ;;  %v2283_v49 = vpop.f32.mrf.mxu2  ;;  %v3890_v22 = vld [vmem:[%s4744_s1 + $0x7d8] sm:$0xff] }
  0xcf   :  { %2522 = vmatpush.bf16.msra.mxu1 %v3843_v23  ;;  %v2296_v50 = vpop.f32.mrf.mxu3 }
  0xd0   :  { %2535 = vmatpush.bf16.msra.mxu2 %v3851_v26 }
  0xd1   :  { %2548 = vmatpush.bf16.msra.mxu3 %v3859_v27 }
  0xd2   :  { %2510 = vmatpush.bf16.msra.mxu0 %v3834_v29  ;;  %v3873_v29 = vld [vmem:[%s4744_s1 + $0x750] sm:$0xff] }
  0xd3   :  { %2523 = vmatpush.bf16.msra.mxu1 %v3842_v30 }
  0xd4   :  { %2536 = vmatpush.bf16.msra.mxu2 %v3850_v31  ;;  %v3881_v31 = vld [vmem:[%s4744_s1 + $0x790] sm:$0xff] }
  0xd5   :  { %2549 = vmatpush.bf16.msra.mxu3 %v3858_v32  ;;  %v3889_v32 = vld [vmem:[%s4744_s1 + $0x7d0] sm:$0xff] }
  0xd6   :  { %2511 = vmatpush.bf16.msra.mxu0 %v3833_v37  ;;  %v3888_v37 = vld [vmem:[%s4744_s1 + $0x7c8] sm:$0xff] }
  0xd7   :  { %2524 = vmatpush.bf16.msra.mxu1 %v3841_v38  ;;  %v29_v38 = vld [vmem:[%s4745_s0 + $0x78] sm:$0xff] }
  0xd8   :  { %2537 = vmatpush.bf16.msra.mxu2 %v3849_v41  ;;  %v590_v41 = vunpack.c.l.b16 %v28_v35 }
  0xd9   :  { %2550 = vmatpush.bf16.msra.mxu3 %v3857_v42  ;;  %v591_v42 = vunpack.c.h.b16 %v28_v35 }
  0xda   :  { %2512 = vmatpush.bf16.msra.mxu0 %v3832_v43  ;;  %v3863_v43 = vld [vmem:[%s4744_s1 + $0x700] sm:$0xff]  ;;  %v622_v49 = vpack.c.b16 %v590_v41, %v590_v41 }
  0xdb   :  { %2525 = vmatpush.bf16.msra.mxu1 %v3840_v44  ;;  %v3871_v44 = vld [vmem:[%s4744_s1 + $0x740] sm:$0xff]  ;;  %v623_v50 = vpack.c.b16 %v591_v42, %v591_v42 }
  0xdc   :  { %2538 = vmatpush.bf16.msra.mxu2 %v3848_v45  ;;  %v592_v45 = vunpack.c.l.b16 %v29_v38 }
  0xdd   :  { %2551 = vmatpush.bf16.msra.mxu3 %v3856_v46  ;;  %v593_v46 = vunpack.c.h.b16 %v29_v38 }
  0xde   :  { %2513 = vmatpush.bf16.msra.mxu0 %v3831_v51  ;;  %v2307_v11 = vpop.f32.mrf.mxu0  ;;  %v624_v51 = vpack.c.b16 %v592_v45, %v592_v45 }
  0xdf   :  { %2526 = vmatpush.bf16.msra.mxu1 %v3839_v52  ;;  %v2308_v12 = vadd.f32 %v2307_v11, %v4600_v39  ;;  %v2320_v15 = vpop.f32.mrf.mxu1  ;;  %v625_v52 = vpack.c.b16 %v593_v46, %v593_v46 }
  0xe0   :  { %2539 = vmatpush.bf16.msra.mxu2 %v3847_v55 }
  0xe1   :  { %2552 = vmatpush.bf16.msra.mxu3 %v3855_v56  ;;  %2514 = vmatmul.bf16.vlgmr.msra.gmra.mxu0 %v618_v63  ;;  %v2321_v18 = vadd.f32 %v2320_v15, %v2308_v12 }
  0xe2   :  { %2558 = vmatpush.bf16.msrb.mxu0 %v3870_v59  ;;  %2527 = vmatmul.bf16.vlgmr.msra.gmra.mxu1 %v619_v1 }
  0xe3   :  { %2571 = vmatpush.bf16.msrb.mxu1 %v3878_v60  ;;  %2540 = vmatmul.bf16.vlgmr.msra.gmra.mxu2 %v620_v0 }
  0xe4   :  { %2584 = vmatpush.bf16.msrb.mxu2 %v3886_v61  ;;  %2553 = vmatmul.bf16.vlgmr.msra.gmra.mxu3 %v621_v2 }
  0xe5   :  { %2597 = vmatpush.bf16.msrb.mxu3 %v3894_v62 }
  0xe6   :  { %2559 = vmatpush.bf16.msrb.mxu0 %v3869_v3  ;;  %v2333_v23 = vpop.f32.mrf.mxu2  ;;  %v2309_v26 = vpop.f32.mrf.mxu0 }
  0xe7   :  { %2572 = vmatpush.bf16.msrb.mxu1 %v3877_v4  ;;  %v2334_v24 = vadd.f32 %v2333_v23, %v2321_v18  ;;  %v2346_v25 = vpop.f32.mrf.mxu3  ;;  %v2322_v30 = vpop.f32.mrf.mxu1 }
  0xe8   :  { %2585 = vmatpush.bf16.msrb.mxu2 %v3885_v5 }
  0xe9   :  { %2598 = vmatpush.bf16.msrb.mxu3 %v3893_v6  ;;  %v2347_v27 = vadd.f32 %v2346_v25, %v2334_v24 }
  0xea   :  { %2560 = vmatpush.bf16.msrb.mxu0 %v3868_v7 }
  0xeb   :  { %2573 = vmatpush.bf16.msrb.mxu1 %v3876_v8 }
  0xec   :  { %2586 = vmatpush.bf16.msrb.mxu2 %v3884_v9 }
  0xed   :  { %2599 = vmatpush.bf16.msrb.mxu3 %v3892_v10 }
  0xee   :  { %2561 = vmatpush.bf16.msrb.mxu0 %v3867_v13  ;;  %v2335_v39 = vpop.f32.mrf.mxu2 }
  0xef   :  { %2574 = vmatpush.bf16.msrb.mxu1 %v3875_v14  ;;  %v2348_v40 = vpop.f32.mrf.mxu3 }
  0xf0   :  { %2587 = vmatpush.bf16.msrb.mxu2 %v3883_v16 }
  0xf1   :  { %2600 = vmatpush.bf16.msrb.mxu3 %v3891_v17 }
  0xf2   :  { %2562 = vmatpush.bf16.msrb.mxu0 %v3866_v19 }
  0xf3   :  { %2575 = vmatpush.bf16.msrb.mxu1 %v3874_v20 }
  0xf4   :  { %2588 = vmatpush.bf16.msrb.mxu2 %v3882_v21 }
  0xf5   :  { %2601 = vmatpush.bf16.msrb.mxu3 %v3890_v22 }
  0xf6   :  { %2563 = vmatpush.bf16.msrb.mxu0 %v3865_v28 }
  0xf7   :  { %2576 = vmatpush.bf16.msrb.mxu1 %v3873_v29 }
  0xf8   :  { %2589 = vmatpush.bf16.msrb.mxu2 %v3881_v31 }
  0xf9   :  { %2602 = vmatpush.bf16.msrb.mxu3 %v3889_v32 }
  0xfa   :  { %2564 = vmatpush.bf16.msrb.mxu0 %v3864_v33 }
  0xfb   :  { %2577 = vmatpush.bf16.msrb.mxu1 %v3872_v34 }
  0xfc   :  { %2590 = vmatpush.bf16.msrb.mxu2 %v3880_v36 }
  0xfd   :  { %2603 = vmatpush.bf16.msrb.mxu3 %v3888_v37 }
  0xfe   :  { %2565 = vmatpush.bf16.msrb.mxu0 %v3863_v43  ;;  %v2359_v53 = vpop.f32.mrf.mxu0 }
  0xff   :  { %2578 = vmatpush.bf16.msrb.mxu1 %v3871_v44  ;;  %v2360_v54 = vadd.f32 %v2359_v53, %v2347_v27  ;;  %v2372_v55 = vpop.f32.mrf.mxu1 }
 0x100   :  { %2591 = vmatpush.bf16.msrb.mxu2 %v3879_v47 }
 0x101   :  { %2604 = vmatpush.bf16.msrb.mxu3 %v3887_v48  ;;  %2566 = vmatmul.bf16.vlgmr.msrb.gmra.mxu0 %v622_v49  ;;  %v2373_v56 = vadd.f32 %v2372_v55, %v2360_v54 }
 0x102   :  { %2579 = vmatmul.bf16.vlgmr.msrb.gmra.mxu1 %v623_v50 }
 0x103   :  { %2592 = vmatmul.bf16.vlgmr.msrb.gmra.mxu2 %v624_v51 }
 0x104   :  { %2605 = vmatmul.bf16.vlgmr.msrb.gmra.mxu3 %v625_v52 }
 0x106   :  { %v2385_v57 = vpop.f32.mrf.mxu2  ;;  %v2361_v60 = vpop.f32.mrf.mxu0 }
 0x107   :  { %v2386_v58 = vadd.f32 %v2385_v57, %v2373_v56  ;;  %v2398_v59 = vpop.f32.mrf.mxu3  ;;  %v2374_v62 = vpop.f32.mrf.mxu1 }
 0x109   :  { %v2399_v61 = vadd.f32 %v2398_v59, %v2386_v58 }
 0x10e   :  { %v2387_v63 = vpop.f32.mrf.mxu2 }
 0x10f   :  { %v2400_v0 = vpop.f32.mrf.mxu3 }
 0x11e   :  { %v2411_v1 = vpop.f32.mrf.mxu0 }
 0x11f   :  { %v2412_v2 = vadd.f32 %v2411_v1, %v2399_v61  ;;  %v2424_v3 = vpop.f32.mrf.mxu1 }
 0x121   :  { %v2425_v4 = vadd.f32 %v2424_v3, %v2412_v2 }
 0x126   :  { %v2437_v5 = vpop.f32.mrf.mxu2  ;;  %v2413_v8 = vpop.f32.mrf.mxu0 }
 0x127   :  { %v2438_v6 = vadd.f32 %v2437_v5, %v2425_v4  ;;  %v2450_v7 = vpop.f32.mrf.mxu3  ;;  %v2426_v10 = vpop.f32.mrf.mxu1 }
 0x129   :  { %v2451_v9 = vadd.f32 %v2450_v7, %v2438_v6 }
 0x12e   :  { %v2439_v11 = vpop.f32.mrf.mxu2 }
 0x12f   :  { %v2452_v12 = vpop.f32.mrf.mxu3 }
 0x13e   :  { %v2463_v13 = vpop.f32.mrf.mxu0 }
 0x13f   :  { %v2476_v14 = vpop.f32.mrf.mxu1  ;;  %v2464_v24 = vadd.f32 %v2463_v13, %v2451_v9 }
 0x141   :  { %v2477_v28 = vadd.f32 %v2476_v14, %v2464_v24 }
 0x146   :  { %v2489_v15 = vpop.f32.mrf.mxu2  ;;  %v2465_v17 = vpop.f32.mrf.mxu0 }
 0x147   :  { %v2502_v16 = vpop.f32.mrf.mxu3  ;;  %v2478_v18 = vpop.f32.mrf.mxu1  ;;  %v2490_v29 = vadd.f32 %v2489_v15, %v2477_v28 }
 0x149   :  { %v2503_v32 = vadd.f32 %v2502_v16, %v2490_v29 }
 0x14e   :  { %v2491_v19 = vpop.f32.mrf.mxu2 }
 0x14f   :  { %v2504_v20 = vpop.f32.mrf.mxu3 }
 0x15e   :  { %v2515_v21 = vpop.f32.mrf.mxu0 }
 0x15f   :  { %v2528_v22 = vpop.f32.mrf.mxu1  ;;  %v2516_v33 = vadd.f32 %v2515_v21, %v2503_v32 }
 0x161   :  { %v2529_v34 = vadd.f32 %v2528_v22, %v2516_v33 }
 0x166   :  { %v2541_v23 = vpop.f32.mrf.mxu2  ;;  %v2517_v26 = vpop.f32.mrf.mxu0 }
 0x167   :  { %v2554_v25 = vpop.f32.mrf.mxu3  ;;  %v2530_v27 = vpop.f32.mrf.mxu1  ;;  %v2542_v35 = vadd.f32 %v2541_v23, %v2529_v34 }
 0x169   :  { %v2555_v36 = vadd.f32 %v2554_v25, %v2542_v35 }
 0x16e   :  { %v2543_v30 = vpop.f32.mrf.mxu2 }
 0x16f   :  { %v2556_v31 = vpop.f32.mrf.mxu3 }
 0x17e   :  { %v2567_v37 = vpop.f32.mrf.mxu0 }
 0x17f   :  { %v2580_v38 = vpop.f32.mrf.mxu1  ;;  %v2568_v39 = vadd.f32 %v2567_v37, %v2555_v36 }
 0x181   :  { %v2581_v40 = vadd.f32 %v2580_v38, %v2568_v39 }
 0x186   :  { %v2593_v41 = vpop.f32.mrf.mxu2  ;;  %v2569_v44 = vpop.f32.mrf.mxu0 }
 0x187   :  { %v2606_v42 = vpop.f32.mrf.mxu3  ;;  %v2594_v43 = vadd.f32 %v2593_v41, %v2581_v40  ;;  %v2582_v45 = vpop.f32.mrf.mxu1 }
 0x189   :  { %v2607_v46 = vadd.f32 %v2606_v42, %v2594_v43 }
 0x18b   :  { %2610 = vst [vmem:[%s4747_s3] sm:$0xff] %v2607_v46 }
 0x18e   :  { %v2595_v47 = vpop.f32.mrf.mxu2 }
 0x18f   :  { %v2608_v48 = vpop.f32.mrf.mxu3 }

</bundles_post_ra>
